<compile_context>
chip_gen: v7x
topology: tpu7x:2x2x1
jax: 0.10.0
libtpu: 0.0.40
codegen_flags: <defaults>
</compile_context>

<pallas_src>
import math
import jax
import jax.numpy as jnp
from jax.experimental import pallas as pl
from jax.experimental.pallas import tpu as pltpu

GEM_P = 3.0
GEM_EPS = 1e-6
BN_EPS = 1e-5
NORM_EPS = 1e-12


# ------------------------------ fused kernel -------------------------------- #

def _fused_net_kernel(x_ref, wcol_ref, b_ref, fcw_ref, fcb_ref, a_ref, arcw_ref,
                      emb_ref, logits_ref, conf_ref, cls_ref):
    x = x_ref[...]                                   # (Cin, N*HW), lane-dense
    cin, n_hw = x.shape
    cout = b_ref.shape[0]
    nb = emb_ref.shape[1]                            # batch size N (static)
    hw = n_hw // nb                                  # spatial size per sample (static)

    # ---- stand-in backbone: 1x1 conv (+ ReLU, subsumed by the GeM clamp) ------
    # TODO(synk): the real timm backbone is not replicated; this is a stand-in.
    y = jnp.broadcast_to(b_ref[...], (cout, n_hw))   # hoisted bias broadcast
    for k in range(cin):                             # K=Cin=4 -> VPU broadcast-FMAs
        y = y + wcol_ref[k] * x[k:k + 1, :]          # (Cout,1)*(1,N*HW) -> (Cout,N*HW)

    # ---- GeM pool (p=3): clamp(eps), cube, per-sample lane-window mean --------
    yc = jnp.maximum(y, GEM_EPS)                     # relu(y) then clamp(eps) == clamp(eps)
    y3 = yc * yc * yc
    cols = [jnp.mean(y3[:, s * hw:(s + 1) * hw], axis=1, keepdims=True)
            for s in range(nb)]                      # static 128-aligned lane windows
    pooled = jnp.concatenate(cols, axis=1)           # (Cout, N), mean of cubes
    pooled = jnp.exp(jnp.log(pooled) * (1.0 / GEM_P))  # cube root (>= eps^3 > 0)

    # ---- neck 'option-D' (eval): Linear with BatchNorm1d folded in, then PReLU -
    z = jnp.dot(fcw_ref[...], pooled,
                preferred_element_type=jnp.float32) + fcb_ref[...]   # (emb, N)
    a = a_ref[0, 0]                                  # PReLU slope (SMEM scalar)
    e = jnp.where(z > 0.0, z, a * z)
    emb_ref[...] = e

    # ---- ArcMarginProduct: cosine = normalize(emb) @ normalize(W)^T -----------
    # (W pre-normalized in the wrapper; only embeddings normalized here)
    inv_n = jax.lax.rsqrt(jnp.maximum(jnp.sum(e * e, axis=0, keepdims=True),
                                      NORM_EPS * NORM_EPS))          # (1, N)
    logits = jnp.dot(arcw_ref[...], e * inv_n,
                     preferred_element_type=jnp.float32)             # (ncls, N)
    logits_ref[...] = logits

    # ---- softmax max-prob == 1 / sum(exp(logits - max)); argmax on logits -----
    mx = jnp.max(logits, axis=0, keepdims=True)                      # (1, N)
    denom = jnp.sum(jnp.exp(logits - mx), axis=0, keepdims=True)
    conf_ref[...] = pl.reciprocal(denom, approx=False)

    ncls = logits.shape[0]
    ids = jax.lax.broadcasted_iota(jnp.int32, logits.shape, 0).astype(jnp.float32)
    cls_f = jnp.min(jnp.where(logits == mx, ids, float(ncls)),
                    axis=0, keepdims=True)                           # first index of max
    cls_ref[...] = cls_f.astype(jnp.int32)


# --------------------------- pallas_call wrapper ----------------------------- #

def fused_net_forward(x2, conv_w_cols, conv_b, fcw_eff, fcb_eff, prelu_a, arc_w_n, n):
    emb = fcw_eff.shape[0]
    ncls = arc_w_n.shape[0]

    vmem = pltpu.MemorySpace.VMEM
    smem = pltpu.MemorySpace.SMEM

    return pl.pallas_call(
        _fused_net_kernel,
        # single invocation (no grid): whole batch at once, everything resident
        in_specs=[
            pl.BlockSpec(memory_space=vmem),   # x2 (Cin, N*HW)
            pl.BlockSpec(memory_space=vmem),   # conv weight columns (Cin, Cout, 1)
            pl.BlockSpec(memory_space=vmem),   # conv bias (Cout, 1)
            pl.BlockSpec(memory_space=vmem),   # neck weight, BN folded (emb, Cout)
            pl.BlockSpec(memory_space=vmem),   # neck bias, BN folded (emb, 1)
            pl.BlockSpec(memory_space=smem),   # PReLU slope (1, 1) scalar
            pl.BlockSpec(memory_space=vmem),   # pre-normalized ArcFace W (ncls, emb)
        ],
        out_specs=(
            pl.BlockSpec(memory_space=vmem),
            pl.BlockSpec(memory_space=vmem),
            pl.BlockSpec(memory_space=vmem),
            pl.BlockSpec(memory_space=vmem),
        ),
        out_shape=(
            jax.ShapeDtypeStruct((emb, n), jnp.float32),   # embeddings (transposed)
            jax.ShapeDtypeStruct((ncls, n), jnp.float32),  # logits (transposed)
            jax.ShapeDtypeStruct((1, n), jnp.float32),     # preds_conf
            jax.ShapeDtypeStruct((1, n), jnp.int32),       # preds_cls
        ),
    )(x2, conv_w_cols, conv_b, fcw_eff, fcb_eff, prelu_a, arc_w_n)


# ------------------------------- the model ----------------------------------- #

class PallasNet:
    """cfg: pool='gem' (p=3, not trainable), neck='option-D', headless=False, eval mode."""

    def __init__(self, key, in_channels=4, backbone_out=64, embedding_size=32, n_classes=16):
        k = jax.random.split(key, 4)

        # backbone stand-in (1x1 conv + ReLU). Weight stored as (Cin, Cout, 1) columns so
        # the kernel does Cin broadcast-FMAs with zero in-kernel slicing/transpose.
        # TODO(synk): real timm backbone not replicated.
        w = 0.1 * jax.random.normal(k[0], (backbone_out, in_channels), jnp.float32)
        self.conv_w_cols = jnp.transpose(w, (1, 0)).reshape(in_channels, backbone_out, 1)
        self.conv_b = jnp.zeros((backbone_out, 1), jnp.float32)

        # neck 'option-D': Linear(backbone_out, emb) + BatchNorm1d(eval) + PReLU.
        # BatchNorm running stats are constant at inference -> folded into the Linear.
        lim = math.sqrt(1.0 / backbone_out)
        fc_w = jax.random.uniform(k[1], (embedding_size, backbone_out), jnp.float32, -lim, lim)
        fc_b = jax.random.uniform(k[2], (embedding_size,), jnp.float32, -lim, lim)
        bn_gamma = jnp.ones((embedding_size,), jnp.float32)
        bn_beta = jnp.zeros((embedding_size,), jnp.float32)
        bn_mean = jnp.zeros((embedding_size,), jnp.float32)
        bn_var = jnp.ones((embedding_size,), jnp.float32)
        s = bn_gamma * jax.lax.rsqrt(bn_var + BN_EPS)
        self.fcw_eff = fc_w * s[:, None]                                        # (emb, Cout)
        self.fcb_eff = ((fc_b - bn_mean) * s + bn_beta).reshape(embedding_size, 1)
        self.prelu_a = jnp.full((1, 1), 0.25, jnp.float32)

        # head: ArcMarginProduct weight (xavier_uniform), pre-normalized once (eval constant).
        lim2 = math.sqrt(6.0 / (embedding_size + n_classes))
        arc_w = jax.random.uniform(k[3], (n_classes, embedding_size), jnp.float32, -lim2, lim2)
        arc_norm = jnp.maximum(jnp.sqrt(jnp.sum(arc_w * arc_w, axis=1, keepdims=True)),
                               NORM_EPS)
        self.arc_w_n = arc_w / arc_norm                                         # (ncls, emb)

    def __call__(self, batch):
        x = batch['input']                              # NCHW, like the PyTorch module
        n, c, h, w = x.shape
        # tiny (~32 KiB) relayout done in XLA: (N,Cin,H,W) -> (Cin, N*HW), lane-dense
        x2 = jnp.transpose(x.reshape(n, c, h * w), (1, 0, 2)).reshape(c, n * h * w)

        emb_t, logits_t, conf_t, cls_t = fused_net_forward(
            x2, self.conv_w_cols, self.conv_b, self.fcw_eff, self.fcb_eff,
            self.prelu_a, self.arc_w_n, n)

        loss = jnp.zeros((1,), jnp.float32)             # eval path: torch.zeros(1)
        return {'loss': loss,
                'target': batch['target'],
                'preds_conf': conf_t[0],
                'preds_cls': cls_t[0],
                'embeddings': emb_t.T,                  # tiny (emb, N) -> (N, emb)
                'logits': logits_t.T}                   # tiny (ncls, N) -> (N, ncls)


# ---------------------------------- main -------------------------------------- #

if __name__ == "__main__":
    key = jax.random.PRNGKey(0)
    kx, kp, kt = jax.random.split(key, 3)

    N, CIN, H, W = 8, 4, 16, 16
    N_CLASSES = 16

    net = PallasNet(kp, in_channels=CIN, backbone_out=64,
                    embedding_size=32, n_classes=N_CLASSES)

    x = jax.random.normal(kx, (N, CIN, H, W), jnp.float32)
    target = jax.random.randint(kt, (N,), 0, N_CLASSES, dtype=jnp.int32)

    out = net({'input': x, 'target': target})
    jax.block_until_ready(out)

    assert out['logits'].shape == (N, N_CLASSES)
    assert out['embeddings'].shape == (N, 32)
    assert out['preds_conf'].shape == (N,)
    assert out['preds_cls'].shape == (N,)
    assert bool(jnp.all(jnp.isfinite(out['logits'])))
    assert bool(jnp.all(jnp.abs(out['logits']) <= 1.0 + 1e-4))   # cosine logits
    assert bool(jnp.all((out['preds_cls'] >= 0) & (out['preds_cls'] < N_CLASSES)))
    assert bool(jnp.all((out['preds_conf'] > 0.0) & (out['preds_conf'] <= 1.0)))
    print("KERNEL_OK")
</pallas_src>

<mosaic_0001>
module attributes {stable_mosaic.version = 11 : i64} {
  func.func @_fused_net_kernel(%arg0: memref<4x2048xf32, #tpu.memory_space<vmem>>, %arg1: memref<4x64x1xf32, #tpu.memory_space<vmem>>, %arg2: memref<64x1xf32, #tpu.memory_space<vmem>>, %arg3: memref<32x64xf32, #tpu.memory_space<vmem>>, %arg4: memref<32x1xf32, #tpu.memory_space<vmem>>, %arg5: memref<1x1xf32, #tpu.memory_space<smem>>, %arg6: memref<16x32xf32, #tpu.memory_space<vmem>>, %arg7: memref<32x8xf32, #tpu.memory_space<vmem>>, %arg8: memref<16x8xf32, #tpu.memory_space<vmem>>, %arg9: memref<1x8xf32, #tpu.memory_space<vmem>>, %arg10: memref<1x8xi32, #tpu.memory_space<vmem>>) attributes {dimension_semantics = [], scalar_prefetch = 0 : i64, scratch_operands = 0 : i64, tpu.core_type = #tpu.core_type<tc>} {
    %c0 = arith.constant 0 : index
    %c0_0 = arith.constant 0 : index
    %0 = vector.load %arg0[%c0, %c0_0] : memref<4x2048xf32, #tpu.memory_space<vmem>>, vector<4x2048xf32>
    %c0_1 = arith.constant 0 : index
    %c0_2 = arith.constant 0 : index
    %1 = vector.load %arg2[%c0_1, %c0_2] : memref<64x1xf32, #tpu.memory_space<vmem>>, vector<64x1xf32>
    %2 = vector.shape_cast %1 : vector<64x1xf32> to vector<64x1xf32>
    %3 = vector.broadcast %2 : vector<64x1xf32> to vector<64x2048xf32>
    %c0_3 = arith.constant 0 : index
    %c0_4 = arith.constant 0 : index
    %c0_5 = arith.constant 0 : index
    %4 = vector.load %arg1[%c0_3, %c0_4, %c0_5] : memref<4x64x1xf32, #tpu.memory_space<vmem>>, vector<1x64x1xf32>
    %5 = vector.shape_cast %4 : vector<1x64x1xf32> to vector<64x1xf32>
    %6 = vector.extract_strided_slice %0 {offsets = [0, 0], sizes = [1, 2048], strides = [1, 1]} : vector<4x2048xf32> to vector<1x2048xf32>
    %7 = vector.broadcast %5 : vector<64x1xf32> to vector<64x2048xf32>
    %8 = vector.broadcast %6 : vector<1x2048xf32> to vector<64x2048xf32>
    %9 = arith.mulf %7, %8 : vector<64x2048xf32>
    %10 = arith.addf %3, %9 : vector<64x2048xf32>
    %c1 = arith.constant 1 : index
    %c0_6 = arith.constant 0 : index
    %c0_7 = arith.constant 0 : index
    %11 = vector.load %arg1[%c1, %c0_6, %c0_7] : memref<4x64x1xf32, #tpu.memory_space<vmem>>, vector<1x64x1xf32>
    %12 = vector.shape_cast %11 : vector<1x64x1xf32> to vector<64x1xf32>
    %13 = vector.extract_strided_slice %0 {offsets = [1, 0], sizes = [1, 2048], strides = [1, 1]} : vector<4x2048xf32> to vector<1x2048xf32>
    %14 = vector.broadcast %12 : vector<64x1xf32> to vector<64x2048xf32>
    %15 = vector.broadcast %13 : vector<1x2048xf32> to vector<64x2048xf32>
    %16 = arith.mulf %14, %15 : vector<64x2048xf32>
    %17 = arith.addf %10, %16 : vector<64x2048xf32>
    %c2 = arith.constant 2 : index
    %c0_8 = arith.constant 0 : index
    %c0_9 = arith.constant 0 : index
    %18 = vector.load %arg1[%c2, %c0_8, %c0_9] : memref<4x64x1xf32, #tpu.memory_space<vmem>>, vector<1x64x1xf32>
    %19 = vector.shape_cast %18 : vector<1x64x1xf32> to vector<64x1xf32>
    %20 = vector.extract_strided_slice %0 {offsets = [2, 0], sizes = [1, 2048], strides = [1, 1]} : vector<4x2048xf32> to vector<1x2048xf32>
    %21 = vector.broadcast %19 : vector<64x1xf32> to vector<64x2048xf32>
    %22 = vector.broadcast %20 : vector<1x2048xf32> to vector<64x2048xf32>
    %23 = arith.mulf %21, %22 : vector<64x2048xf32>
    %24 = arith.addf %17, %23 : vector<64x2048xf32>
    %c3 = arith.constant 3 : index
    %c0_10 = arith.constant 0 : index
    %c0_11 = arith.constant 0 : index
    %25 = vector.load %arg1[%c3, %c0_10, %c0_11] : memref<4x64x1xf32, #tpu.memory_space<vmem>>, vector<1x64x1xf32>
    %26 = vector.shape_cast %25 : vector<1x64x1xf32> to vector<64x1xf32>
    %27 = vector.extract_strided_slice %0 {offsets = [3, 0], sizes = [1, 2048], strides = [1, 1]} : vector<4x2048xf32> to vector<1x2048xf32>
    %28 = vector.broadcast %26 : vector<64x1xf32> to vector<64x2048xf32>
    %29 = vector.broadcast %27 : vector<1x2048xf32> to vector<64x2048xf32>
    %30 = arith.mulf %28, %29 : vector<64x2048xf32>
    %31 = arith.addf %24, %30 : vector<64x2048xf32>
    %cst = arith.constant 9.99999997E-7 : f32
    %32 = vector.broadcast %cst : f32 to vector<64x2048xf32>
    %33 = arith.maximumf %31, %32 : vector<64x2048xf32>
    %34 = arith.mulf %33, %33 : vector<64x2048xf32>
    %35 = arith.mulf %34, %33 : vector<64x2048xf32>
    %36 = vector.extract_strided_slice %35 {offsets = [0, 0], sizes = [64, 256], strides = [1, 1]} : vector<64x2048xf32> to vector<64x256xf32>
    %cst_12 = arith.constant dense<0.000000e+00> : vector<64xf32>
    %37 = vector.multi_reduction <add>, %36, %cst_12 [1] : vector<64x256xf32> to vector<64xf32>
    %38 = vector.shape_cast %37 : vector<64xf32> to vector<64x1xf32>
    %cst_13 = arith.constant 2.560000e+02 : f32
    %39 = vector.broadcast %cst_13 : f32 to vector<64x1xf32>
    %40 = arith.divf %38, %39 : vector<64x1xf32>
    %41 = vector.extract_strided_slice %35 {offsets = [0, 256], sizes = [64, 256], strides = [1, 1]} : vector<64x2048xf32> to vector<64x256xf32>
    %cst_14 = arith.constant dense<0.000000e+00> : vector<64xf32>
    %42 = vector.multi_reduction <add>, %41, %cst_14 [1] : vector<64x256xf32> to vector<64xf32>
    %43 = vector.shape_cast %42 : vector<64xf32> to vector<64x1xf32>
    %cst_15 = arith.constant 2.560000e+02 : f32
    %44 = vector.broadcast %cst_15 : f32 to vector<64x1xf32>
    %45 = arith.divf %43, %44 : vector<64x1xf32>
    %46 = vector.extract_strided_slice %35 {offsets = [0, 512], sizes = [64, 256], strides = [1, 1]} : vector<64x2048xf32> to vector<64x256xf32>
    %cst_16 = arith.constant dense<0.000000e+00> : vector<64xf32>
    %47 = vector.multi_reduction <add>, %46, %cst_16 [1] : vector<64x256xf32> to vector<64xf32>
    %48 = vector.shape_cast %47 : vector<64xf32> to vector<64x1xf32>
    %cst_17 = arith.constant 2.560000e+02 : f32
    %49 = vector.broadcast %cst_17 : f32 to vector<64x1xf32>
    %50 = arith.divf %48, %49 : vector<64x1xf32>
    %51 = vector.extract_strided_slice %35 {offsets = [0, 768], sizes = [64, 256], strides = [1, 1]} : vector<64x2048xf32> to vector<64x256xf32>
    %cst_18 = arith.constant dense<0.000000e+00> : vector<64xf32>
    %52 = vector.multi_reduction <add>, %51, %cst_18 [1] : vector<64x256xf32> to vector<64xf32>
    %53 = vector.shape_cast %52 : vector<64xf32> to vector<64x1xf32>
    %cst_19 = arith.constant 2.560000e+02 : f32
    %54 = vector.broadcast %cst_19 : f32 to vector<64x1xf32>
    %55 = arith.divf %53, %54 : vector<64x1xf32>
    %56 = vector.extract_strided_slice %35 {offsets = [0, 1024], sizes = [64, 256], strides = [1, 1]} : vector<64x2048xf32> to vector<64x256xf32>
    %cst_20 = arith.constant dense<0.000000e+00> : vector<64xf32>
    %57 = vector.multi_reduction <add>, %56, %cst_20 [1] : vector<64x256xf32> to vector<64xf32>
    %58 = vector.shape_cast %57 : vector<64xf32> to vector<64x1xf32>
    %cst_21 = arith.constant 2.560000e+02 : f32
    %59 = vector.broadcast %cst_21 : f32 to vector<64x1xf32>
    %60 = arith.divf %58, %59 : vector<64x1xf32>
    %61 = vector.extract_strided_slice %35 {offsets = [0, 1280], sizes = [64, 256], strides = [1, 1]} : vector<64x2048xf32> to vector<64x256xf32>
    %cst_22 = arith.constant dense<0.000000e+00> : vector<64xf32>
    %62 = vector.multi_reduction <add>, %61, %cst_22 [1] : vector<64x256xf32> to vector<64xf32>
    %63 = vector.shape_cast %62 : vector<64xf32> to vector<64x1xf32>
    %cst_23 = arith.constant 2.560000e+02 : f32
    %64 = vector.broadcast %cst_23 : f32 to vector<64x1xf32>
    %65 = arith.divf %63, %64 : vector<64x1xf32>
    %66 = vector.extract_strided_slice %35 {offsets = [0, 1536], sizes = [64, 256], strides = [1, 1]} : vector<64x2048xf32> to vector<64x256xf32>
    %cst_24 = arith.constant dense<0.000000e+00> : vector<64xf32>
    %67 = vector.multi_reduction <add>, %66, %cst_24 [1] : vector<64x256xf32> to vector<64xf32>
    %68 = vector.shape_cast %67 : vector<64xf32> to vector<64x1xf32>
    %cst_25 = arith.constant 2.560000e+02 : f32
    %69 = vector.broadcast %cst_25 : f32 to vector<64x1xf32>
    %70 = arith.divf %68, %69 : vector<64x1xf32>
    %71 = vector.extract_strided_slice %35 {offsets = [0, 1792], sizes = [64, 256], strides = [1, 1]} : vector<64x2048xf32> to vector<64x256xf32>
    %cst_26 = arith.constant dense<0.000000e+00> : vector<64xf32>
    %72 = vector.multi_reduction <add>, %71, %cst_26 [1] : vector<64x256xf32> to vector<64xf32>
    %73 = vector.shape_cast %72 : vector<64xf32> to vector<64x1xf32>
    %cst_27 = arith.constant 2.560000e+02 : f32
    %74 = vector.broadcast %cst_27 : f32 to vector<64x1xf32>
    %75 = arith.divf %73, %74 : vector<64x1xf32>
    %76 = tpu.concatenate %40, %45, %50, %55, %60, %65, %70, %75 in 1 : vector<64x1xf32>, vector<64x1xf32>, vector<64x1xf32>, vector<64x1xf32>, vector<64x1xf32>, vector<64x1xf32>, vector<64x1xf32>, vector<64x1xf32> -> vector<64x8xf32>
    %77 = math.log %76 : vector<64x8xf32>
    %cst_28 = arith.constant 0.333333343 : f32
    %78 = vector.broadcast %cst_28 : f32 to vector<64x8xf32>
    %79 = arith.mulf %77, %78 : vector<64x8xf32>
    %80 = math.exp %79 : vector<64x8xf32>
    %c0_29 = arith.constant 0 : index
    %c0_30 = arith.constant 0 : index
    %81 = vector.load %arg3[%c0_29, %c0_30] : memref<32x64xf32, #tpu.memory_space<vmem>>, vector<32x64xf32>
    %cst_31 = arith.constant dense<0.000000e+00> : vector<32x8xf32>
    %82 = tpu.matmul %81, %80, %cst_31 {dimension_numbers = #tpu.dot_dimension_numbers<[1], [0], [0], [1], [0, 0, 1, 1], [], []>} : vector<32x64xf32>, vector<64x8xf32>, vector<32x8xf32> -> vector<32x8xf32>
    %c0_32 = arith.constant 0 : index
    %c0_33 = arith.constant 0 : index
    %83 = vector.load %arg4[%c0_32, %c0_33] : memref<32x1xf32, #tpu.memory_space<vmem>>, vector<32x1xf32>
    %84 = vector.broadcast %83 : vector<32x1xf32> to vector<32x8xf32>
    %85 = arith.addf %82, %84 : vector<32x8xf32>
    %c0_34 = arith.constant 0 : index
    %c0_35 = arith.constant 0 : index
    %86 = memref.load %arg5[%c0_34, %c0_35] : memref<1x1xf32, #tpu.memory_space<smem>>
    %cst_36 = arith.constant 0.000000e+00 : f32
    %87 = vector.broadcast %cst_36 : f32 to vector<32x8xf32>
    %88 = arith.cmpf ogt, %85, %87 : vector<32x8xf32>
    %89 = vector.broadcast %86 : f32 to vector<32x8xf32>
    %90 = arith.mulf %89, %85 : vector<32x8xf32>
    %91 = arith.select %88, %85, %90 : vector<32x8xi1>, vector<32x8xf32>
    %c0_37 = arith.constant 0 : index
    %c0_38 = arith.constant 0 : index
    %92 = vector.load %arg7[%c0_37, %c0_38] : memref<32x8xf32, #tpu.memory_space<vmem>>, vector<32x8xf32>
    tpu.vector_store %arg7[%c0_37, %c0_38], %91 {strides = array<i32>} : memref<32x8xf32, #tpu.memory_space<vmem>>, vector<32x8xf32>,
    %93 = arith.mulf %91, %91 : vector<32x8xf32>
    %cst_39 = arith.constant dense<0.000000e+00> : vector<8xf32>
    %94 = vector.multi_reduction <add>, %93, %cst_39 [0] : vector<32x8xf32> to vector<8xf32>
    %95 = vector.shape_cast %94 : vector<8xf32> to vector<1x8xf32>
    %cst_40 = arith.constant 1.000000e-24 : f32
    %96 = vector.broadcast %cst_40 : f32 to vector<1x8xf32>
    %97 = arith.maximumf %95, %96 : vector<1x8xf32>
    %98 = math.rsqrt %97 : vector<1x8xf32>
    %c0_41 = arith.constant 0 : index
    %c0_42 = arith.constant 0 : index
    %99 = vector.load %arg6[%c0_41, %c0_42] : memref<16x32xf32, #tpu.memory_space<vmem>>, vector<16x32xf32>
    %100 = vector.broadcast %98 : vector<1x8xf32> to vector<32x8xf32>
    %101 = arith.mulf %91, %100 : vector<32x8xf32>
    %cst_43 = arith.constant dense<0.000000e+00> : vector<16x8xf32>
    %102 = tpu.matmul %99, %101, %cst_43 {dimension_numbers = #tpu.dot_dimension_numbers<[1], [0], [0], [1], [0, 0, 1, 1], [], []>} : vector<16x32xf32>, vector<32x8xf32>, vector<16x8xf32> -> vector<16x8xf32>
    %c0_44 = arith.constant 0 : index
    %c0_45 = arith.constant 0 : index
    %103 = vector.load %arg8[%c0_44, %c0_45] : memref<16x8xf32, #tpu.memory_space<vmem>>, vector<16x8xf32>
    tpu.vector_store %arg8[%c0_44, %c0_45], %102 {strides = array<i32>} : memref<16x8xf32, #tpu.memory_space<vmem>>, vector<16x8xf32>,
    %cst_46 = arith.constant dense<0xFF800000> : vector<8xf32>
    %104 = vector.multi_reduction <maximumf>, %102, %cst_46 [0] : vector<16x8xf32> to vector<8xf32>
    %105 = vector.shape_cast %104 : vector<8xf32> to vector<1x8xf32>
    %106 = vector.broadcast %105 : vector<1x8xf32> to vector<16x8xf32>
    %107 = arith.subf %102, %106 : vector<16x8xf32>
    %108 = math.exp %107 : vector<16x8xf32>
    %cst_47 = arith.constant dense<0.000000e+00> : vector<8xf32>
    %109 = vector.multi_reduction <add>, %108, %cst_47 [0] : vector<16x8xf32> to vector<8xf32>
    %110 = vector.shape_cast %109 : vector<8xf32> to vector<1x8xf32>
    %111 = tpu.reciprocal %110 : vector<1x8xf32> -> vector<1x8xf32>
    %c0_48 = arith.constant 0 : index
    %c0_49 = arith.constant 0 : index
    %112 = vector.load %arg9[%c0_48, %c0_49] : memref<1x8xf32, #tpu.memory_space<vmem>>, vector<1x8xf32>
    tpu.vector_store %arg9[%c0_48, %c0_49], %111 {strides = array<i32>} : memref<1x8xf32, #tpu.memory_space<vmem>>, vector<1x8xf32>,
    %113 = tpu.iota {dimensions = array<i32: 0>} : vector<16x8xi32>
    %114 = arith.sitofp %113 : vector<16x8xi32> to vector<16x8xf32>
    %115 = vector.broadcast %105 : vector<1x8xf32> to vector<16x8xf32>
    %116 = arith.cmpf oeq, %102, %115 : vector<16x8xf32>
    %cst_50 = arith.constant 1.600000e+01 : f32
    %117 = vector.broadcast %cst_50 : f32 to vector<16x8xf32>
    %118 = arith.select %116, %114, %117 : vector<16x8xi1>, vector<16x8xf32>
    %cst_51 = arith.constant dense<0x7F800000> : vector<8xf32>
    %119 = vector.multi_reduction <minimumf>, %118, %cst_51 [0] : vector<16x8xf32> to vector<8xf32>
    %120 = vector.shape_cast %119 : vector<8xf32> to vector<1x8xf32>
    %121 = arith.fptosi %120 : vector<1x8xf32> to vector<1x8xi32>
    %c0_52 = arith.constant 0 : index
    %c0_53 = arith.constant 0 : index
    %122 = vector.load %arg10[%c0_52, %c0_53] : memref<1x8xi32, #tpu.memory_space<vmem>>, vector<1x8xi32>
    tpu.vector_store %arg10[%c0_52, %c0_53], %121 {strides = array<i32>} : memref<1x8xi32, #tpu.memory_space<vmem>>, vector<1x8xi32>,
    return
  }
}

</mosaic_0001>

<bundles_post_ra>
// kernel: tpu_custom_call.1
= control target key start
LH: loop header
LB: loop body
LE: loop exit
PB: predicated region body
PF: predicated region fallthrough
CT: control target
= control target key end

     0   :  { %17 = vsyncpa [#allocation4], 0  ;;  %v3174_v2 = vmov 0   ;;  %s5221_s0 = inlined_call_operand.vmem [shape: f32[4,2048], index: 0, kind: input, shape index: {}]   ;;  %s5222_s1 = inlined_call_operand.vmem [shape: f32[4,64,1], index: 1, kind: input, shape index: {}]   ;;  %s5223_s2 = inlined_call_operand.vmem [shape: f32[64,1], index: 2, kind: input, shape index: {}]   ;;  %s5224_s3 = inlined_call_operand.vmem [shape: f32[32,64], index: 3, kind: input, shape index: {}]   ;;  %s5225_s4 = inlined_call_operand.vmem [shape: f32[32,1], index: 4, kind: input, shape index: {}]   ;;  %s5226_s5 = inlined_call_operand.<no memory space> [shape: f32[1,1], index: 5, kind: input, shape index: {}]   ;;  %s5227_s6 = inlined_call_operand.vmem [shape: f32[16,32], index: 6, kind: input, shape index: {}]   ;;  %s5228_s7 = inlined_call_operand.vmem [shape: f32[32,8], index: 7, kind: output, shape index: {0}]   ;;  %s5229_s8 = inlined_call_operand.vmem [shape: f32[16,8], index: 8, kind: output, shape index: {1}]   ;;  %s5230_s9 = inlined_call_operand.hbm [shape: f32[1,8], index: 9, kind: output, shape index: {2}]   ;;  %s5231_s10 = inlined_call_operand.hbm [shape: s32[1,8], index: 10, kind: output, shape index: {3}]  }
   0x1   :  { %v89_v0 = vld [vmem:[%s5222_s1] sm:$0xff]  ;;  %3084 = vset.pattern.permute.xlu1 %v3174_v2  ;;  %3083 = vset.pattern.permute.xlu0 %v3174_v2  ;;  %v90_v3 = vld [vmem:[%s5222_s1 + $0x8] sm:$0xff]  ;;  %v91_v7 = vld [vmem:[%s5222_s1 + $0x10] sm:$0xff] }
   0x2   :  { %v41_v1 = vld [vmem:[%s5223_s2] sm:$0xff]  ;;  %99 = vperm.xlu0 %3083, %v89_v0   ;;  %v42_v4 = vld [vmem:[%s5223_s2 + $0x8] sm:$0xff]  ;;  %v92_v8 = vld [vmem:[%s5222_s1 + $0x18] sm:$0xff] }
   0x3   :  { %51 = vperm.xlu1 %3084, %v41_v1   ;;  %v2973_v5 = vld [vmem:[%s5222_s1 + $0x40] sm:$0xff]  ;;  %v2974_v6 = vld [vmem:[%s5222_s1 + $0x48] sm:$0xff] }
   0x4   :  { %v2981_v9 = vld [vmem:[%s5222_s1 + $0x80] sm:$0xff]  ;;  %v2982_v10 = vld [vmem:[%s5222_s1 + $0x88] sm:$0xff] }
   0x6   :  { %104 = vperm.xlu0 %3083, %v90_v3  }
   0x7   :  { %56 = vperm.xlu1 %3084, %v42_v4  }
   0xa   :  { %556 = vperm.xlu0 %3083, %v2973_v5  }
   0xb   :  { %561 = vperm.xlu1 %3084, %v2974_v6  }
   0xe   :  { %109 = vperm.xlu0 %3083, %v91_v7  }
   0xf   :  { %114 = vperm.xlu1 %3084, %v92_v8  }
  0x10   :  { %18 = vsyncpa [#allocation6], 0  ;;  %v43_v11 = vld [vmem:[%s5223_s2 + $0x10] sm:$0xff]  ;;  %v44_v12 = vld [vmem:[%s5223_s2 + $0x18] sm:$0xff]  ;;  %v145_v41 = vlaneseq  ;;  %vm2533_vm0 = vcmask 7168   ;;  %vm2542_vm1 = vcmask 15360  }
  0x11   :  { %v2975_v13 = vld [vmem:[%s5222_s1 + $0x50] sm:$0xff]  ;;  %v2976_v14 = vld [vmem:[%s5222_s1 + $0x58] sm:$0xff]  ;;  %v2989_v15 = vld [vmem:[%s5222_s1 + $0xc0] sm:$0xff]  ;;  %vm2551_vm2 = vcmask 23552   ;;  %vm2560_vm3 = vcmask 31744   ;;  %vm2569_vm4 = vcmask 39936  }
  0x12   :  { %1005 = vperm.xlu0 %3083, %v2981_v9   ;;  %v2990_v16 = vld [vmem:[%s5222_s1 + $0xc8] sm:$0xff]  ;;  %v93_v17 = vld [vmem:[%s5222_s1 + $0x20] sm:$0xff]  ;;  %v2983_v19 = vld [vmem:[%s5222_s1 + $0x90] sm:$0xff]  ;;  %v3352_v42 = vshrl.u32 %v145_v41, 7  ;;  %vm2578_vm5 = vcmask 48128   ;;  %vm2587_vm6 = vcmask 56320  }
  0x13   :  { %1010 = vperm.xlu1 %3084, %v2982_v10   ;;  %v94_v18 = vld [vmem:[%s5222_s1 + $0x28] sm:$0xff]  ;;  %v2984_v20 = vld [vmem:[%s5222_s1 + $0x98] sm:$0xff]  ;;  %v45_v21 = vld [vmem:[%s5223_s2 + $0x20] sm:$0xff]  ;;  %vm2664_vm7 = vcmask 523264   ;;  %vm2806_vm8 = vcmask 261120   ;;  %vm2776_vm10 = vcmask 64512  }
  0x14   :  { %v46_v22 = vld [vmem:[%s5223_s2 + $0x28] sm:$0xff]  ;;  %v2977_v23 = vld [vmem:[%s5222_s1 + $0x60] sm:$0xff]  ;;  %v2991_v25 = vld [vmem:[%s5222_s1 + $0xd0] sm:$0xff]  ;;  %5493 = vst [vmem:[#allocation9_spill] sm:$0xff] %v3352_v42  ;;  %v3355_v43 = vsub.s32 0, %v3352_v42  ;;  %v3358_v44 = vsub.s32 4, %v3352_v42 }
  0x15   :  { %v2978_v24 = vld [vmem:[%s5222_s1 + $0x68] sm:$0xff]  ;;  %v2992_v26 = vld [vmem:[%s5222_s1 + $0xd8] sm:$0xff]  ;;  %v95_v27 = vld [vmem:[%s5222_s1 + $0x30] sm:$0xff]  ;;  %v3364_v46 = vsub.s32 1, %v3352_v42  ;;  %v3367_v47 = vsub.s32 5, %v3352_v42  ;;  %v3370_v48 = vsub.s32 2, %v3352_v42 }
  0x16   :  { %61 = vperm.xlu0 %3083, %v43_v11   ;;  %v96_v28 = vld [vmem:[%s5222_s1 + $0x38] sm:$0xff]  ;;  %v2985_v29 = vld [vmem:[%s5222_s1 + $0xa0] sm:$0xff]  ;;  %v2986_v30 = vld [vmem:[%s5222_s1 + $0xa8] sm:$0xff]  ;;  %v3373_v49 = vsub.s32 6, %v3352_v42  ;;  %v3412_v6 = vsub.s32 3, %v3352_v42  ;;  %v3415_v7 = vsub.s32 7, %v3352_v42 }
  0x17   :  { %66 = vperm.xlu1 %3084, %v44_v12   ;;  %v47_v31 = vld [vmem:[%s5223_s2 + $0x30] sm:$0xff]  ;;  %v48_v32 = vld [vmem:[%s5223_s2 + $0x38] sm:$0xff]  ;;  %v2993_v35 = vld [vmem:[%s5222_s1 + $0xe0] sm:$0xff]  ;;  %5494 = vst [vmem:[#allocation10_spill] sm:$0xff] %v3370_v48 }
  0x18   :  { %v2979_v33 = vld [vmem:[%s5222_s1 + $0x70] sm:$0xff]  ;;  %v2980_v34 = vld [vmem:[%s5222_s1 + $0x78] sm:$0xff]  ;;  %v2994_v36 = vld [vmem:[%s5222_s1 + $0xe8] sm:$0xff]  ;;  %5495 = vst [vmem:[#allocation11_spill] sm:$0xff] %v3373_v49 }
  0x19   :  { %v2987_v37 = vld [vmem:[%s5222_s1 + $0xb0] sm:$0xff]  ;;  %v2988_v38 = vld [vmem:[%s5222_s1 + $0xb8] sm:$0xff]  ;;  %v33_v45 = vld [vmem:[%s5221_s0] sm:$0xff]  ;;  %5502 = vst [vmem:[#allocation18_spill] sm:$0xff] %v3412_v6 }
  0x1a   :  { %566 = vperm.xlu0 %3083, %v2975_v13   ;;  %v2995_v39 = vld [vmem:[%s5222_s1 + $0xf0] sm:$0xff]  ;;  %v2996_v40 = vld [vmem:[%s5222_s1 + $0xf8] sm:$0xff]  ;;  %v148_v51 = vrot.slane %v33_v45, %v3355_v43  ;;  %v152_v52 = vrot.slane %v33_v45, %v3358_v44  ;;  %v597_v53 = vrot.slane %v33_v45, %v3364_v46  ;;  %v601_v54 = vrot.slane %v33_v45, %v3367_v47  ;;  %v34_v1 = vld [vmem:[%s5221_s0 + $0x8] sm:$0xff] }
  0x1b   :  { %571 = vperm.xlu1 %3084, %v2976_v14   ;;  %v35_v50 = vld [vmem:[%s5221_s0 + $0x10] sm:$0xff]  ;;  %v1046_v55 = vrot.slane %v33_v45, %v3370_v48  ;;  %v1050_v56 = vrot.slane %v33_v45, %v3373_v49  ;;  %5503 = vst [vmem:[#allocation19_spill] sm:$0xff] %v3415_v7  ;;  %v36_v10 = vld [vmem:[%s5221_s0 + $0x18] sm:$0xff]  ;;  %v156_v13 = vrot.slane %v34_v1, %v3355_v43 }
  0x1c   :  { %v164_v57 = vrot.slane %v35_v50, %v3355_v43  ;;  %v168_v58 = vrot.slane %v35_v50, %v3358_v44  ;;  %v613_v59 = vrot.slane %v35_v50, %v3364_v46  ;;  %v617_v60 = vrot.slane %v35_v50, %v3367_v47 }
  0x1d   :  { %v3389_v61 = vrot.slane %v148_v51, %v3355_v43  ;;  %v3392_v62 = vrot.slane %v152_v52, %v3355_v43  ;;  %v1062_v63 = vrot.slane %v35_v50, %v3370_v48  ;;  %v1066_v0 = vrot.slane %v35_v50, %v3373_v49 }
  0x1e   :  { %1454 = vperm.xlu0 %3083, %v2989_v15   ;;  %v3400_v2 = vrot.slane %v597_v53, %v3364_v46  ;;  %v3403_v3 = vrot.slane %v601_v54, %v3364_v46  ;;  %v3406_v4 = vrot.slane %v1046_v55, %v3370_v48  ;;  %v3409_v5 = vrot.slane %v1050_v56, %v3370_v48 }
  0x1f   :  { %1459 = vperm.xlu1 %3084, %v2990_v16   ;;  %5496 = vst [vmem:[#allocation12_spill] sm:$0xff] %v3389_v61  ;;  %5497 = vst [vmem:[#allocation13_spill] sm:$0xff] %v3392_v62  ;;  %v3418_v8 = vrot.slane %v164_v57, %v3355_v43  ;;  %v3421_v9 = vrot.slane %v168_v58, %v3355_v43  ;;  %v3427_v11 = vrot.slane %v613_v59, %v3364_v46  ;;  %v38_v59 = vld [vmem:[%s5221_s0 + $0x28] sm:$0xff] }
  0x20   :  { %5498 = vst [vmem:[#allocation14_spill] sm:$0xff] %v3400_v2  ;;  %5499 = vst [vmem:[#allocation15_spill] sm:$0xff] %v3403_v3  ;;  %v3430_v12 = vrot.slane %v617_v60, %v3364_v46  ;;  %v160_v14 = vrot.slane %v34_v1, %v3358_v44  ;;  %v3435_v15 = vrot.slane %v1062_v63, %v3370_v48 }
  0x21   :  { %5500 = vst [vmem:[#allocation16_spill] sm:$0xff] %v3406_v4  ;;  %5501 = vst [vmem:[#allocation17_spill] sm:$0xff] %v3409_v5  ;;  %v3438_v16 = vrot.slane %v1066_v0, %v3370_v48  ;;  %v1070_v53 = vrot.slane %v36_v10, %v3370_v48  ;;  %v1074_v54 = vrot.slane %v36_v10, %v3373_v49 }
  0x22   :  { %119 = vperm.xlu0 %3083, %v93_v17   ;;  %5504 = vst [vmem:[#allocation20_spill] sm:$0xff] %v3418_v8  ;;  %5505 = vst [vmem:[#allocation21_spill] sm:$0xff] %v3421_v9  ;;  %v605_v17 = vrot.slane %v34_v1, %v3364_v46  ;;  %v1519_v57 = vrot.slane %v36_v10, %v3412_v6  ;;  %v1523_v58 = vrot.slane %v36_v10, %v3415_v7 }
  0x23   :  { %124 = vperm.xlu1 %3084, %v94_v18   ;;  %5506 = vst [vmem:[#allocation22_spill] sm:$0xff] %v3427_v11  ;;  %5507 = vst [vmem:[#allocation23_spill] sm:$0xff] %v3430_v12  ;;  %v609_v18 = vrot.slane %v34_v1, %v3367_v47 }
  0x24   :  { %5508 = vst [vmem:[#allocation24_spill] sm:$0xff] %v3435_v15  ;;  %5509 = vst [vmem:[#allocation25_spill] sm:$0xff] %v3438_v16 }
  0x26   :  { %1015 = vperm.xlu0 %3083, %v2983_v19   ;;  %v1054_v19 = vrot.slane %v34_v1, %v3370_v48 }
  0x27   :  { %1020 = vperm.xlu1 %3084, %v2984_v20   ;;  %v1058_v20 = vrot.slane %v34_v1, %v3373_v49 }
  0x2a   :  { %71 = vperm.xlu0 %3083, %v45_v21   ;;  %v172_v21 = vrot.slane %v36_v10, %v3355_v43 }
  0x2b   :  { %76 = vperm.xlu1 %3084, %v46_v22   ;;  %v176_v22 = vrot.slane %v36_v10, %v3358_v44 }
  0x2e   :  { %576 = vperm.xlu0 %3083, %v2977_v23   ;;  %v1495_v23 = vrot.slane %v33_v45, %v3412_v6 }
  0x2f   :  { %581 = vperm.xlu1 %3084, %v2978_v24   ;;  %v1499_v24 = vrot.slane %v33_v45, %v3415_v7 }
  0x32   :  { %1464 = vperm.xlu0 %3083, %v2991_v25   ;;  %v621_v25 = vrot.slane %v36_v10, %v3364_v46 }
  0x33   :  { %1469 = vperm.xlu1 %3084, %v2992_v26   ;;  %v625_v26 = vrot.slane %v36_v10, %v3367_v47 }
  0x34   :  { %v3485_v41 = vrot.slane %v621_v25, %v3364_v46  ;;  %v3534_v25 = vrot.slane %v1523_v58, %v3412_v6 }
  0x35   :  { %v3488_v45 = vrot.slane %v625_v26, %v3364_v46 }
  0x36   :  { %129 = vperm.xlu0 %3083, %v95_v27   ;;  %v1511_v27 = vrot.slane %v35_v50, %v3412_v6  ;;  %5520 = vst [vmem:[#allocation36_spill] sm:$0xff] %v3485_v41  ;;  %5529 = vst [vmem:[#allocation45_spill] sm:$0xff] %v3534_v25 }
  0x37   :  { %134 = vperm.xlu1 %3084, %v96_v28   ;;  %v1515_v28 = vrot.slane %v35_v50, %v3415_v7  ;;  %5521 = vst [vmem:[#allocation37_spill] sm:$0xff] %v3488_v45  ;;  %v37_v50 = vld [vmem:[%s5221_s0 + $0x20] sm:$0xff] }
  0x38   :  { %v3494_v51 = vrot.slane %v1511_v27, %v3412_v6  ;;  %v180_v60 = vrot.slane %v37_v50, %v3355_v43  ;;  %v184_v63 = vrot.slane %v37_v50, %v3358_v44  ;;  %v629_v0 = vrot.slane %v37_v50, %v3364_v46 }
  0x39   :  { %v3497_v52 = vrot.slane %v1515_v28, %v3412_v6  ;;  %v1531_v10 = vrot.slane %v37_v50, %v3415_v7 }
  0x3a   :  { %1025 = vperm.xlu0 %3083, %v2985_v29   ;;  %v3453_v29 = vrot.slane %v156_v13, %v3355_v43  ;;  %5522 = vst [vmem:[#allocation38_spill] sm:$0xff] %v3494_v51  ;;  %v1078_v13 = vrot.slane %v37_v50, %v3370_v48  ;;  %v3537_v26 = vrot.slane %v180_v60, %v3355_v43 }
  0x3b   :  { %1030 = vperm.xlu1 %3084, %v2986_v30   ;;  %v3456_v30 = vrot.slane %v160_v14, %v3355_v43  ;;  %5523 = vst [vmem:[#allocation39_spill] sm:$0xff] %v3497_v52  ;;  %v1082_v14 = vrot.slane %v37_v50, %v3373_v49  ;;  %v3540_v27 = vrot.slane %v184_v63, %v3355_v43 }
  0x3c   :  { %5510 = vst [vmem:[#allocation26_spill] sm:$0xff] %v3453_v29  ;;  %5530 = vst [vmem:[#allocation46_spill] sm:$0xff] %v3537_v26  ;;  %v3543_v28 = vrot.slane %v629_v0, %v3364_v46 }
  0x3d   :  { %5511 = vst [vmem:[#allocation27_spill] sm:$0xff] %v3456_v30  ;;  %5531 = vst [vmem:[#allocation47_spill] sm:$0xff] %v3540_v27 }
  0x3e   :  { %81 = vperm.xlu0 %3083, %v47_v31   ;;  %v3459_v31 = vrot.slane %v605_v17, %v3364_v46  ;;  %v1527_v17 = vrot.slane %v37_v50, %v3412_v6  ;;  %5532 = vst [vmem:[#allocation48_spill] sm:$0xff] %v3543_v28 }
  0x3f   :  { %86 = vperm.xlu1 %3084, %v48_v32   ;;  %v3462_v32 = vrot.slane %v609_v18, %v3364_v46  ;;  %v188_v18 = vrot.slane %v38_v59, %v3355_v43 }
  0x40   :  { %5512 = vst [vmem:[#allocation28_spill] sm:$0xff] %v3459_v31 }
  0x41   :  { %5513 = vst [vmem:[#allocation29_spill] sm:$0xff] %v3462_v32  ;;  %v3564_v58 = vrot.slane %v188_v18, %v3355_v43  ;;  %v1535_v18 = vrot.slane %v38_v59, %v3412_v6 }
  0x42   :  { %586 = vperm.xlu0 %3083, %v2979_v33   ;;  %v1503_v33 = vrot.slane %v34_v1, %v3412_v6 }
  0x43   :  { %591 = vperm.xlu1 %3084, %v2980_v34   ;;  %v1507_v34 = vrot.slane %v34_v1, %v3415_v7  ;;  %v633_v1 = vrot.slane %v37_v50, %v3367_v47  ;;  %v3552_v50 = vrot.slane %v1078_v13, %v3370_v48  ;;  %5538 = vst [vmem:[#allocation54_spill] sm:$0xff] %v3564_v58 }
  0x44   :  { %v3502_v55 = vrot.slane %v1503_v33, %v3412_v6  ;;  %v1086_v13 = vrot.slane %v38_v59, %v3370_v48 }
  0x45   :  { %v3505_v56 = vrot.slane %v1507_v34, %v3412_v6  ;;  %v3546_v33 = vrot.slane %v633_v1, %v3364_v46  ;;  %v39_v34 = vld [vmem:[%s5221_s0 + $0x30] sm:$0xff]  ;;  %5534 = vst [vmem:[#allocation50_spill] sm:$0xff] %v3552_v50  ;;  %v40_v1 = vld [vmem:[%s5221_s0 + $0x38] sm:$0xff] }
  0x46   :  { %1474 = vperm.xlu0 %3083, %v2993_v35   ;;  %v3467_v35 = vrot.slane %v1054_v19, %v3370_v48  ;;  %5524 = vst [vmem:[#allocation40_spill] sm:$0xff] %v3502_v55  ;;  %v192_v19 = vrot.slane %v38_v59, %v3358_v44  ;;  %v1094_v42 = vrot.slane %v39_v34, %v3370_v48 }
  0x47   :  { %1479 = vperm.xlu1 %3084, %v2994_v36   ;;  %v3470_v36 = vrot.slane %v1058_v20, %v3370_v48  ;;  %5525 = vst [vmem:[#allocation41_spill] sm:$0xff] %v3505_v56  ;;  %v637_v20 = vrot.slane %v38_v59, %v3364_v46  ;;  %5533 = vst [vmem:[#allocation49_spill] sm:$0xff] %v3546_v33  ;;  %v1543_v58 = vrot.slane %v39_v34, %v3412_v6 }
  0x48   :  { %5514 = vst [vmem:[#allocation30_spill] sm:$0xff] %v3467_v35  ;;  %v3567_v60 = vrot.slane %v192_v19, %v3355_v43  ;;  %v1539_v19 = vrot.slane %v38_v59, %v3415_v7  ;;  %v3595_v25 = vrot.slane %v1086_v13, %v3370_v48  ;;  %v3619_v13 = vrot.slane %v1094_v42, %v3370_v48 }
  0x49   :  { %5515 = vst [vmem:[#allocation31_spill] sm:$0xff] %v3470_v36  ;;  %v3570_v63 = vrot.slane %v637_v20, %v3364_v46  ;;  %v645_v20 = vrot.slane %v39_v34, %v3364_v46 }
  0x4a   :  { %1035 = vperm.xlu0 %3083, %v2987_v37   ;;  %v3473_v37 = vrot.slane %v172_v21, %v3355_v43  ;;  %v641_v21 = vrot.slane %v38_v59, %v3367_v47  ;;  %5539 = vst [vmem:[#allocation55_spill] sm:$0xff] %v3567_v60  ;;  %v208_v60 = vrot.slane %v40_v1, %v3358_v44  ;;  %5542 = vst [vmem:[#allocation58_spill] sm:$0xff] %v3595_v25 }
  0x4b   :  { %1040 = vperm.xlu1 %3084, %v2988_v38   ;;  %v3476_v38 = vrot.slane %v176_v22, %v3355_v43  ;;  %v3525_v22 = vrot.slane %v1070_v53, %v3370_v48  ;;  %v3555_v53 = vrot.slane %v1082_v14, %v3370_v48  ;;  %5540 = vst [vmem:[#allocation56_spill] sm:$0xff] %v3570_v63  ;;  %5550 = vst [vmem:[#allocation66_spill] sm:$0xff] %v3619_v13 }
  0x4c   :  { %5516 = vst [vmem:[#allocation32_spill] sm:$0xff] %v3473_v37  ;;  %v3573_v0 = vrot.slane %v641_v21, %v3364_v46  ;;  %v1090_v14 = vrot.slane %v38_v59, %v3373_v49  ;;  %v649_v21 = vrot.slane %v39_v34, %v3367_v47  ;;  %v204_v63 = vrot.slane %v40_v1, %v3355_v43 }
  0x4d   :  { %5517 = vst [vmem:[#allocation33_spill] sm:$0xff] %v3476_v38  ;;  %5526 = vst [vmem:[#allocation42_spill] sm:$0xff] %v3525_v22  ;;  %v657_v59 = vrot.slane %v40_v1, %v3367_v47  ;;  %v3613_v47 = vrot.slane %v645_v20, %v3364_v46  ;;  %v3635_v20 = vrot.slane %v1543_v58, %v3412_v6 }
  0x4e   :  { %1484 = vperm.xlu0 %3083, %v2995_v39   ;;  %v3479_v39 = vrot.slane %v1495_v23, %v3412_v6  ;;  %v3528_v23 = vrot.slane %v1074_v54, %v3370_v48  ;;  %5535 = vst [vmem:[#allocation51_spill] sm:$0xff] %v3555_v53  ;;  %v3558_v54 = vrot.slane %v1527_v17, %v3412_v6  ;;  %5541 = vst [vmem:[#allocation57_spill] sm:$0xff] %v3573_v0 }
  0x4f   :  { %1489 = vperm.xlu1 %3084, %v2996_v40   ;;  %v3482_v40 = vrot.slane %v1499_v24, %v3412_v6  ;;  %v3531_v24 = vrot.slane %v1519_v57, %v3412_v6  ;;  %v3561_v57 = vrot.slane %v1531_v10, %v3412_v6  ;;  %v196_v17 = vrot.slane %v39_v34, %v3355_v43 }
  0x50   :  { %5518 = vst [vmem:[#allocation34_spill] sm:$0xff] %v3479_v39  ;;  %5527 = vst [vmem:[#allocation43_spill] sm:$0xff] %v3528_v23  ;;  %v200_v10 = vrot.slane %v39_v34, %v3358_v44  ;;  %v1098_v0 = vrot.slane %v39_v34, %v3373_v49  ;;  %v3607_v44 = vrot.slane %v1535_v18, %v3412_v6 }
  0x51   :  { %5519 = vst [vmem:[#allocation35_spill] sm:$0xff] %v3482_v40  ;;  %5528 = vst [vmem:[#allocation44_spill] sm:$0xff] %v3531_v24  ;;  %v3598_v24 = vrot.slane %v1090_v14, %v3370_v48  ;;  %v3601_v49 = vrot.slane %v196_v17, %v3355_v43  ;;  %v3625_v17 = vrot.slane %v204_v63, %v3355_v43 }
  0x52   :  { %5536 = vst [vmem:[#allocation52_spill] sm:$0xff] %v3558_v54  ;;  %5537 = vst [vmem:[#allocation53_spill] sm:$0xff] %v3561_v57  ;;  %v1547_v57 = vrot.slane %v39_v34, %v3415_v7  ;;  %v653_v54 = vrot.slane %v40_v1, %v3364_v46  ;;  %v3604_v56 = vrot.slane %v200_v10, %v3355_v43 }
  0x53   :  { %5543 = vst [vmem:[#allocation59_spill] sm:$0xff] %v3598_v24  ;;  %5544 = vst [vmem:[#allocation60_spill] sm:$0xff] %v3601_v49  ;;  %v3610_v34 = vrot.slane %v1539_v19, %v3412_v6  ;;  %v3616_v1 = vrot.slane %v649_v21, %v3364_v46  ;;  %v3622_v14 = vrot.slane %v1098_v0, %v3370_v48 }
  0x54   :  { %5545 = vst [vmem:[#allocation61_spill] sm:$0xff] %v3604_v56  ;;  %5546 = vst [vmem:[#allocation62_spill] sm:$0xff] %v3607_v44  ;;  %v3628_v10 = vrot.slane %v208_v60, %v3355_v43  ;;  %v3638_v21 = vrot.slane %v1547_v57, %v3412_v6  ;;  %v3641_v42 = vrot.slane %v653_v54, %v3364_v46 }
  0x55   :  { %5547 = vst [vmem:[#allocation63_spill] sm:$0xff] %v3610_v34  ;;  %5548 = vst [vmem:[#allocation64_spill] sm:$0xff] %v3613_v47  ;;  %v3644_v0 = vrot.slane %v657_v59, %v3364_v46 }
  0x56   :  { %5549 = vst [vmem:[#allocation65_spill] sm:$0xff] %v3616_v1  ;;  %5551 = vst [vmem:[#allocation67_spill] sm:$0xff] %v3622_v14 }
  0x57   :  { %5552 = vst [vmem:[#allocation68_spill] sm:$0xff] %v3625_v17  ;;  %5553 = vst [vmem:[#allocation69_spill] sm:$0xff] %v3628_v10 }
  0x58   :  { %5556 = vst [vmem:[#allocation72_spill] sm:$0xff] %v3635_v20  ;;  %5557 = vst [vmem:[#allocation73_spill] sm:$0xff] %v3638_v21 }
  0x59   :  { %5558 = vst [vmem:[#allocation74_spill] sm:$0xff] %v3641_v42  ;;  %5559 = vst [vmem:[#allocation75_spill] sm:$0xff] %v3644_v0 }
  0x81   :  { %v3630_v18 = vpop.permute.xlu0 %99 }
  0x82   :  { %5554 = vst [vmem:[#allocation70_spill] sm:$0xff] %v3630_v18  ;;  %v3632_v19 = vpop.permute.xlu1 %51  ;;  %v289_v43 = vmul.f32 %v3389_v61, %v3630_v18  ;;  %v290_v60 = vmul.f32 %v3392_v62, %v3630_v18  ;;  %v293_v63 = vmul.f32 %v3418_v8, %v3630_v18  ;;  %v294_v58 = vmul.f32 %v3421_v9, %v3630_v18 }
  0x83   :  { %5555 = vst [vmem:[#allocation71_spill] sm:$0xff] %v3632_v19  ;;  %v291_v57 = vmul.f32 %v3453_v29, %v3630_v18  ;;  %v292_v54 = vmul.f32 %v3456_v30, %v3630_v18  ;;  %v295_v46 = vmul.f32 %v3473_v37, %v3630_v18  ;;  %v296_v59 = vmul.f32 %v3476_v38, %v3630_v18 }
  0x84   :  { %v417_v7 = vadd.f32 %v289_v43, %v3632_v19  ;;  %v418_v6 = vadd.f32 %v290_v60, %v3632_v19  ;;  %v421_v48 = vadd.f32 %v293_v63, %v3632_v19  ;;  %v422_v0 = vadd.f32 %v294_v58, %v3632_v19 }
  0x85   :  { %v3666_v42 = vpop.permute.xlu0 %104  ;;  %v419_v17 = vadd.f32 %v291_v57, %v3632_v19  ;;  %v420_v21 = vadd.f32 %v292_v54, %v3632_v19  ;;  %v423_v20 = vadd.f32 %v295_v46, %v3632_v19  ;;  %v424_v14 = vadd.f32 %v296_v59, %v3632_v19 }
  0x86   :  { %5560 = vst [vmem:[#allocation76_spill] sm:$0xff] %v3666_v42  ;;  %v3668_v10 = vpop.permute.xlu1 %56  ;;  %v305_v43 = vmul.f32 %v3389_v61, %v3666_v42  ;;  %v306_v60 = vmul.f32 %v3392_v62, %v3666_v42  ;;  %v307_v63 = vmul.f32 %v3453_v29, %v3666_v42  ;;  %v308_v58 = vmul.f32 %v3456_v30, %v3666_v42 }
  0x87   :  { %5561 = vst [vmem:[#allocation77_spill] sm:$0xff] %v3668_v10  ;;  %v297_v57 = vmul.f32 %v3537_v26, %v3630_v18  ;;  %v298_v54 = vmul.f32 %v3540_v27, %v3630_v18  ;;  %v309_v46 = vmul.f32 %v3418_v8, %v3666_v42  ;;  %v310_v59 = vmul.f32 %v3421_v9, %v3666_v42 }
  0x88   :  { %v433_v13 = vadd.f32 %v305_v43, %v3668_v10  ;;  %v434_v1 = vadd.f32 %v306_v60, %v3668_v10  ;;  %v435_v47 = vadd.f32 %v307_v63, %v3668_v10  ;;  %v436_v56 = vadd.f32 %v308_v58, %v3668_v10 }
  0x89   :  { %v3694_v49 = vpop.permute.xlu0 %556  ;;  %v425_v44 = vadd.f32 %v297_v57, %v3632_v19  ;;  %v426_v24 = vadd.f32 %v298_v54, %v3632_v19  ;;  %v437_v8 = vadd.f32 %v309_v46, %v3668_v10  ;;  %v438_v9 = vadd.f32 %v310_v59, %v3668_v10 }
  0x8a   :  { %5562 = vst [vmem:[#allocation78_spill] sm:$0xff] %v3694_v49  ;;  %v3696_v34 = vpop.permute.xlu1 %561  ;;  %v738_v63 = vmul.f32 %v3400_v2, %v3694_v49  ;;  %v739_v58 = vmul.f32 %v3403_v3, %v3694_v49  ;;  %v742_v57 = vmul.f32 %v3427_v11, %v3694_v49  ;;  %v743_v54 = vmul.f32 %v3430_v12, %v3694_v49 }
  0x8b   :  { %5563 = vst [vmem:[#allocation79_spill] sm:$0xff] %v3696_v34  ;;  %v754_v43 = vmul.f32 %v3400_v2, %v3696_v34  ;;  %v755_v60 = vmul.f32 %v3403_v3, %v3696_v34  ;;  %v740_v46 = vmul.f32 %v3459_v31, %v3694_v49  ;;  %v741_v59 = vmul.f32 %v3462_v32, %v3694_v49 }
  0x8c   :  { %v866_v18 = vadd.f32 %v738_v63, %v417_v7  ;;  %v867_v30 = vadd.f32 %v739_v58, %v418_v6  ;;  %v870_v52 = vadd.f32 %v742_v57, %v421_v48  ;;  %v871_v51 = vadd.f32 %v743_v54, %v422_v0 }
  0x8d   :  { %v882_v25 = vadd.f32 %v754_v43, %v433_v13  ;;  %v883_v19 = vadd.f32 %v755_v60, %v434_v1  ;;  %v3718_v29 = vpop.permute.xlu0 %109  ;;  %v868_v40 = vadd.f32 %v740_v46, %v419_v17  ;;  %v869_v39 = vadd.f32 %v741_v59, %v420_v21 }
  0x8e   :  { %5564 = vst [vmem:[#allocation80_spill] sm:$0xff] %v3718_v29  ;;  %v3720_v55 = vpop.permute.xlu1 %114  ;;  %v744_v27 = vmul.f32 %v3485_v41, %v3694_v49  ;;  %v745_v26 = vmul.f32 %v3488_v45, %v3694_v49  ;;  %v756_v13 = vmul.f32 %v3459_v31, %v3696_v34  ;;  %v757_v6 = vmul.f32 %v3462_v32, %v3696_v34 }
  0x8f   :  { %5565 = vst [vmem:[#allocation81_spill] sm:$0xff] %v3720_v55  ;;  %v746_v7 = vmul.f32 %v3543_v28, %v3694_v49  ;;  %v747_v48 = vmul.f32 %v3546_v33, %v3694_v49  ;;  %v758_v1 = vmul.f32 %v3427_v11, %v3696_v34  ;;  %v759_v17 = vmul.f32 %v3430_v12, %v3696_v34 }
  0x90   :  { %v872_v21 = vadd.f32 %v744_v27, %v423_v20  ;;  %v873_v0 = vadd.f32 %v745_v26, %v424_v14  ;;  %v884_v43 = vadd.f32 %v756_v13, %v435_v47  ;;  %v885_v60 = vadd.f32 %v757_v6, %v436_v56 }
  0x91   :  { %v3738_v63 = vpop.permute.xlu0 %1005  ;;  %v874_v57 = vadd.f32 %v746_v7, %v425_v44  ;;  %v875_v54 = vadd.f32 %v747_v48, %v426_v24  ;;  %v886_v46 = vadd.f32 %v758_v1, %v437_v8  ;;  %v887_v59 = vadd.f32 %v759_v17, %v438_v9 }
  0x92   :  { %5566 = vst [vmem:[#allocation82_spill] sm:$0xff] %v3738_v63  ;;  %v3740_v58 = vpop.permute.xlu1 %1010  ;;  %v1187_v27 = vmul.f32 %v3406_v4, %v3738_v63  ;;  %v1188_v56 = vmul.f32 %v3409_v5, %v3738_v63  ;;  %v1191_v26 = vmul.f32 %v3435_v15, %v3738_v63  ;;  %v1192_v24 = vmul.f32 %v3438_v16, %v3738_v63 }
  0x93   :  { %5567 = vst [vmem:[#allocation83_spill] sm:$0xff] %v3740_v58  ;;  %v1203_v49 = vmul.f32 %v3406_v4, %v3740_v58  ;;  %v1204_v11 = vmul.f32 %v3409_v5, %v3740_v58  ;;  %v1189_v8 = vmul.f32 %v3467_v35, %v3738_v63  ;;  %v1190_v9 = vmul.f32 %v3470_v36, %v3738_v63 }
  0x94   :  { %v1315_v14 = vadd.f32 %v1187_v27, %v866_v18  ;;  %v1316_v20 = vadd.f32 %v1188_v56, %v867_v30  ;;  %v1319_v7 = vadd.f32 %v1191_v26, %v870_v52  ;;  %v1320_v48 = vadd.f32 %v1192_v24, %v871_v51 }
  0x95   :  { %v1331_v44 = vadd.f32 %v1203_v49, %v882_v25  ;;  %v1332_v47 = vadd.f32 %v1204_v11, %v883_v19  ;;  %v3758_v13 = vpop.permute.xlu0 %61  ;;  %v1317_v1 = vadd.f32 %v1189_v8, %v868_v40  ;;  %v1318_v17 = vadd.f32 %v1190_v9, %v869_v39 }
  0x96   :  { %5568 = vst [vmem:[#allocation84_spill] sm:$0xff] %v3758_v13  ;;  %v3760_v6 = vpop.permute.xlu1 %66  ;;  %v1193_v12 = vmul.f32 %v3525_v22, %v3738_v63  ;;  %v1194_v55 = vmul.f32 %v3528_v23, %v3738_v63  ;;  %v1205_v49 = vmul.f32 %v3467_v35, %v3740_v58  ;;  %v1206_v11 = vmul.f32 %v3470_v36, %v3740_v58 }
  0x97   :  { %5569 = vst [vmem:[#allocation85_spill] sm:$0xff] %v3760_v6  ;;  %v1195_v30 = vmul.f32 %v3552_v50, %v3738_v63  ;;  %v1196_v51 = vmul.f32 %v3555_v53, %v3738_v63  ;;  %v1207_v39 = vmul.f32 %v3435_v15, %v3740_v58  ;;  %v1208_v40 = vmul.f32 %v3438_v16, %v3740_v58  ;;  %v5578_v16 = vld [vmem:[#allocation38_spill] sm:$0xff]  ;;  %v5579_v15 = vld [vmem:[#allocation39_spill] sm:$0xff]  ;;  %v5581_v6 = vld [vmem:[#allocation41_spill] sm:$0xff] }
  0x98   :  { %v3778_v52 = vadd.f32 %v1193_v12, %v872_v21  ;;  %v3780_v25 = vadd.f32 %v1194_v55, %v873_v0  ;;  %v3782_v18 = vadd.f32 %v1205_v49, %v884_v43  ;;  %v3784_v19 = vadd.f32 %v1206_v11, %v885_v60  ;;  %v5583_v50 = vld [vmem:[#allocation44_spill] sm:$0xff] }
  0x99   :  { %v3786_v27 = vpop.permute.xlu0 %566  ;;  %v3790_v26 = vadd.f32 %v1195_v30, %v874_v57  ;;  %v3792_v24 = vadd.f32 %v1196_v51, %v875_v54  ;;  %v3794_v8 = vadd.f32 %v1207_v39, %v886_v46  ;;  %v3796_v9 = vadd.f32 %v1208_v40, %v887_v59 }
  0x9a   :  { %5570 = vst [vmem:[#allocation86_spill] sm:$0xff] %v3786_v27  ;;  %v3788_v56 = vpop.permute.xlu1 %571  ;;  %v311_v12 = vmul.f32 %v3473_v37, %v3666_v42  ;;  %v312_v55 = vmul.f32 %v3476_v38, %v3666_v42  ;;  %v3804_v21 = vmul.f32 %v3485_v41, %v3696_v34  ;;  %v3808_v0 = vmul.f32 %v3488_v45, %v3696_v34  ;;  %v5576_v45 = vld [vmem:[#allocation34_spill] sm:$0xff]  ;;  %v5577_v38 = vld [vmem:[#allocation35_spill] sm:$0xff] }
  0x9b   :  { %5571 = vst [vmem:[#allocation87_spill] sm:$0xff] %v3788_v56  ;;  %v3812_v43 = vmul.f32 %v3525_v22, %v3740_v58  ;;  %v3816_v60 = vmul.f32 %v3528_v23, %v3740_v58  ;;  %v321_v57 = vmul.f32 %v3389_v61, %v3718_v29  ;;  %v322_v54 = vmul.f32 %v3392_v62, %v3718_v29  ;;  %v5574_v23 = vld [vmem:[#allocation47_spill] sm:$0xff] }
  0x9c   :  { %v3823_v46 = vadd.f32 %v311_v12, %v3668_v10  ;;  %v3826_v59 = vadd.f32 %v312_v55, %v3668_v10  ;;  %v3830_v49 = vmul.f32 %v3400_v2, %v3786_v27  ;;  %v3834_v11 = vmul.f32 %v3403_v3, %v3786_v27  ;;  %v5572_v12 = vld [vmem:[#allocation46_spill] sm:$0xff] }
  0x9d   :  { %v3836_v30 = vpop.permute.xlu0 %1454  ;;  %v3841_v39 = vadd.f32 %v321_v57, %v3758_v13  ;;  %v3844_v40 = vadd.f32 %v322_v54, %v3758_v13  ;;  %v3848_v55 = vmul.f32 %v5572_v12, %v3666_v42  ;;  %v3852_v22 = vmul.f32 %v5574_v23, %v3666_v42  ;;  %v5580_v23 = vld [vmem:[#allocation40_spill] sm:$0xff] }
  0x9e   :  { %v3838_v51 = vpop.permute.xlu1 %1459  ;;  %v1636_v57 = vmul.f32 %v5576_v45, %v3836_v30  ;;  %v1637_v54 = vmul.f32 %v5577_v38, %v3836_v30  ;;  %v1640_v12 = vmul.f32 %v5578_v16, %v3836_v30  ;;  %v1641_v63 = vmul.f32 %v5579_v15, %v3836_v30 }
  0x9f   :  { %5573 = vst [vmem:[#allocation88_spill] sm:$0xff] %v3848_v55  ;;  %5575 = vst [vmem:[#allocation89_spill] sm:$0xff] %v3852_v22  ;;  %v1652_v41 = vmul.f32 %v5576_v45, %v3838_v51  ;;  %v1653_v37 = vmul.f32 %v5577_v38, %v3838_v51  ;;  %v1638_v42 = vmul.f32 %v5580_v23, %v3836_v30 }
  0xa0   :  { %v1639_v3 = vmul.f32 %v5581_v6, %v3836_v30  ;;  %v1764_v62 = vadd.f32 %v1636_v57, %v1315_v14  ;;  %v1765_v61 = vadd.f32 %v1637_v54, %v1316_v20  ;;  %v1768_v35 = vadd.f32 %v1640_v12, %v1319_v7 }
  0xa1   :  { %v1780_v2 = vadd.f32 %v1652_v41, %v1331_v44  ;;  %v1781_v56 = vadd.f32 %v1653_v37, %v1332_v47  ;;  %v3870_v36 = vpop.permute.xlu0 %119  ;;  %v1769_v32 = vadd.f32 %v1641_v63, %v1320_v48  ;;  %v1766_v13 = vadd.f32 %v1638_v42, %v1317_v1  ;;  %v5584_v41 = vld [vmem:[#allocation45_spill] sm:$0xff] }
  0xa2   :  { %5582 = vst [vmem:[#allocation90_spill] sm:$0xff] %v3870_v36  ;;  %v1767_v31 = vadd.f32 %v1639_v3, %v1318_v17  ;;  %v1892_v53 = vmax.f32 %v1764_v62, 1e-06  ;;  %v1642_v58 = vmul.f32 %v5583_v50, %v3836_v30  ;;  %v1893_v33 = vmax.f32 %v1765_v61, 1e-06 }
  0xa3   :  { %v1908_v27 = vmax.f32 %v1780_v2, 1e-06  ;;  %v1909_v29 = vmax.f32 %v1781_v56, 1e-06  ;;  %v1896_v28 = vmax.f32 %v1768_v35, 1e-06  ;;  %v1643_v37 = vmul.f32 %v5584_v41, %v3836_v30 }
  0xa4   :  { %v1897_v34 = vmax.f32 %v1769_v32, 1e-06  ;;  %v2020_v14 = vmul.f32 %v1892_v53, %v1892_v53  ;;  %v1894_v20 = vmax.f32 %v1766_v13, 1e-06  ;;  %v2021_v42 = vmul.f32 %v1893_v33, %v1893_v33 }
  0xa5   :  { %v2036_v44 = vmul.f32 %v1908_v27, %v1908_v27  ;;  %v2037_v47 = vmul.f32 %v1909_v29, %v1909_v29  ;;  %v3876_v7 = vpop.permute.xlu0 %1015  ;;  %v2024_v3 = vmul.f32 %v1896_v28, %v1896_v28  ;;  %v1895_v63 = vmax.f32 %v1767_v31, 1e-06 }
  0xa6   :  { %v2025_v2 = vmul.f32 %v1897_v34, %v1897_v34  ;;  %v2148_v1 = vmul.f32 %v2020_v14, %v1892_v53  ;;  %v2022_v17 = vmul.f32 %v1894_v20, %v1894_v20  ;;  %v2149_v61 = vmul.f32 %v2021_v42, %v1893_v33  ;;  %v5586_v53 = vld [vmem:[#allocation52_spill] sm:$0xff] }
  0xa7   :  { %v2164_v62 = vmul.f32 %v2036_v44, %v1908_v27  ;;  %v2165_v48 = vmul.f32 %v2037_v47, %v1909_v29  ;;  %v2152_v35 = vmul.f32 %v2024_v3, %v1896_v28  ;;  %v2023_v56 = vmul.f32 %v1895_v63, %v1895_v63  ;;  %v3893_v44 = vpop.permute.xlu1 %124 }
  0xa8   :  { %v2153_v32 = vmul.f32 %v2025_v2, %v1897_v34  ;;  %v2150_v57 = vmul.f32 %v2022_v17, %v1894_v20  ;;  %v1770_v54 = vadd.f32 %v1642_v58, %v3778_v52  ;;  %v1771_v13 = vadd.f32 %v1643_v37, %v3780_v25  ;;  %v5587_v25 = vld [vmem:[#allocation53_spill] sm:$0xff]  ;;  %5588 = vst [vmem:[#allocation92_spill] sm:$0xff] %v3893_v44 }
  0xa9   :  { %v2279_v12 = vadd.f32 %v2165_v48, %v2164_v62  ;;  %v3880_v36 = vpop.permute.xlu0 %71  ;;  %v2276_v22 = vadd.f32 %v2149_v61, %v2148_v1  ;;  %v2151_v10 = vmul.f32 %v2023_v56, %v1895_v63  ;;  %v1654_v29 = vmul.f32 %v5580_v23, %v3838_v51 }
  0xaa   :  { %5585 = vst [vmem:[#allocation91_spill] sm:$0xff] %v3880_v36  ;;  %v2341_v55 = vadd.f32 %v2153_v32, %v2152_v35  ;;  %v1898_v31 = vmax.f32 %v1770_v54, 1e-06  ;;  %v1899_v33 = vmax.f32 %v1771_v13, 1e-06  ;;  %v1655_v28 = vmul.f32 %v5581_v6, %v3838_v51 }
  0xab   :  { %2280 = vadd.xlane.f32.xlu1 %v2279_v12  ;;  %v1644_v34 = vmul.f32 %v5586_v53, %v3836_v30  ;;  %2277 = vadd.xlane.f32.xlu0 %v2276_v22  ;;  %v2309_v58 = vadd.f32 %v2151_v10, %v2150_v57  ;;  %v1782_v52 = vadd.f32 %v1654_v29, %v3782_v18  ;;  %v3906_v54 = vpop.permute.xlu1 %1020 }
  0xac   :  { %v1645_v27 = vmul.f32 %v5587_v25, %v3836_v30  ;;  %v1656_v37 = vmul.f32 %v5578_v16, %v3838_v51  ;;  %v2026_v47 = vmul.f32 %v1898_v31, %v1898_v31  ;;  %v2027_v14 = vmul.f32 %v1899_v33, %v1899_v33 }
  0xad   :  { %v1783_v20 = vadd.f32 %v1655_v28, %v3784_v19  ;;  %v1772_v42 = vadd.f32 %v1644_v34, %v3790_v26  ;;  %v3897_v3 = vpop.permute.xlu0 %576  ;;  %v1910_v22 = vmax.f32 %v1782_v52, 1e-06  ;;  %v1657_v18 = vmul.f32 %v5579_v15, %v3838_v51 }
  0xae   :  { %5589 = vst [vmem:[#allocation93_spill] sm:$0xff] %v3897_v3  ;;  %v1773_v10 = vadd.f32 %v1645_v27, %v3792_v24  ;;  %v1784_v2 = vadd.f32 %v1656_v37, %v3794_v8  ;;  %v2154_v63 = vmul.f32 %v2026_v47, %v1898_v31  ;;  %v2155_v62 = vmul.f32 %v2027_v14, %v1899_v33  ;;  %v5625_v3 = vld [vmem:[#allocation58_spill] sm:$0xff] }
  0xaf   :  { %2342 = vadd.xlane.f32.xlu1 %v2341_v55  ;;  %v1911_v48 = vmax.f32 %v1783_v20, 1e-06  ;;  %v1900_v1 = vmax.f32 %v1772_v42, 1e-06  ;;  %2310 = vadd.xlane.f32.xlu0 %v2309_v58  ;;  %v2038_v17 = vmul.f32 %v1910_v22, %v1910_v22  ;;  %v1785_v26 = vadd.f32 %v1657_v18, %v3796_v9  ;;  %v5591_v18 = vld [vmem:[#allocation88_spill] sm:$0xff] }
  0xb0   :  { %v1901_v19 = vmax.f32 %v1773_v10, 1e-06  ;;  %v1912_v61 = vmax.f32 %v1784_v2, 1e-06  ;;  %v2373_v35 = vadd.f32 %v2155_v62, %v2154_v63  ;;  %v888_v24 = vadd.f32 %v3804_v21, %v3823_v46  ;;  %v5590_v10 = vld [vmem:[#allocation77_spill] sm:$0xff] }
  0xb1   :  { %v2039_v32 = vmul.f32 %v1911_v48, %v1911_v48  ;;  %v2028_v56 = vmul.f32 %v1900_v1, %v1900_v1  ;;  %v2166_v12 = vmul.f32 %v2038_v17, %v1910_v22  ;;  %v1913_v8 = vmax.f32 %v1785_v26, 1e-06  ;;  %v3911_v33 = vpop.permute.xlu0 %1464  ;;  %v5595_v26 = vld [vmem:[#allocation48_spill] sm:$0xff] }
  0xb2   :  { %v2029_v57 = vmul.f32 %v1901_v19, %v1901_v19  ;;  %v2040_v55 = vmul.f32 %v1912_v61, %v1912_v61  ;;  %v889_v31 = vadd.f32 %v3808_v0, %v3826_v59  ;;  %v1337_v9 = vadd.f32 %v3812_v43, %v888_v24  ;;  %v5598_v24 = vld [vmem:[#allocation50_spill] sm:$0xff] }
  0xb3   :  { %2374 = vadd.xlane.f32.xlu1 %v2373_v35  ;;  %v2167_v13 = vmul.f32 %v2039_v32, %v1911_v48  ;;  %v2156_v29 = vmul.f32 %v2028_v56, %v1900_v1  ;;  %v2041_v34 = vmul.f32 %v1913_v8, %v1913_v8  ;;  %v1658_v21 = vmul.f32 %v5583_v50, %v3838_v51  ;;  %v5593_v48 = vld [vmem:[#allocation89_spill] sm:$0xff]  ;;  %v5597_v56 = vld [vmem:[#allocation83_spill] sm:$0xff] }
  0xb4   :  { %v2157_v28 = vmul.f32 %v2029_v57, %v1901_v19  ;;  %v2168_v58 = vmul.f32 %v2040_v55, %v1912_v61  ;;  %v1338_v52 = vadd.f32 %v3816_v60, %v889_v31  ;;  %v1659_v27 = vmul.f32 %v5584_v41, %v3838_v51  ;;  %v5594_v19 = vld [vmem:[#allocation79_spill] sm:$0xff]  ;;  %v5596_v35 = vld [vmem:[#allocation49_spill] sm:$0xff] }
  0xb5   :  { %v2312_v46 = vadd.f32 %v2167_v13, %v2166_v12  ;;  %v898_v37 = vadd.f32 %v3830_v49, %v3841_v39  ;;  %v2169_v59 = vmul.f32 %v2041_v34, %v1913_v8  ;;  %v1786_v43 = vadd.f32 %v1658_v21, %v1337_v9  ;;  %v5599_v13 = vld [vmem:[#allocation51_spill] sm:$0xff] }
  0xb6   :  { %v2405_v0 = vadd.f32 %v2157_v28, %v2156_v29  ;;  %v899_v47 = vadd.f32 %v3834_v11, %v3844_v40  ;;  %v1787_v14 = vadd.f32 %v1659_v27, %v1338_v52  ;;  %v1219_v20 = vmul.f32 %v3406_v4, %v3876_v7  ;;  %v3932_v40 = vpop.permute.xlu1 %76 }
  0xb7   :  { %2313 = vadd.xlane.f32.xlu0 %v2312_v46  ;;  %v1220_v60 = vmul.f32 %v3409_v5, %v3876_v7  ;;  %v1668_v42 = vmul.f32 %v5576_v45, %v3911_v33  ;;  %v2344_v22 = vadd.f32 %v2169_v59, %v2168_v58  ;;  %v1914_v49 = vmax.f32 %v1786_v43, 1e-06  ;;  %5592 = vst [vmem:[#allocation77_spill] sm:$0xff] %v3932_v40  ;;  %v5601_v59 = vld [vmem:[#allocation26_spill] sm:$0xff] }
  0xb8   :  { %2406 = vadd.xlane.f32.xlu1 %v2405_v0  ;;  %v1669_v39 = vmul.f32 %v5577_v38, %v3911_v33  ;;  %v441_v11 = vadd.f32 %v5591_v18, %v5590_v10  ;;  %v1915_v2 = vmax.f32 %v1787_v14, 1e-06  ;;  %v1347_v63 = vadd.f32 %v1219_v20, %v898_v37  ;;  %v5600_v0 = vld [vmem:[#allocation80_spill] sm:$0xff] }
  0xb9   :  { %v1348_v62 = vadd.f32 %v1220_v60, %v899_v47  ;;  %v442_v1 = vadd.f32 %v5593_v48, %v5590_v10  ;;  %v2042_v17 = vmul.f32 %v1914_v49, %v1914_v49  ;;  %v762_v61 = vmul.f32 %v5595_v26, %v5594_v19  ;;  %v5602_v47 = vld [vmem:[#allocation27_spill] sm:$0xff] }
  0xba   :  { %v763_v32 = vmul.f32 %v5596_v35, %v5594_v19  ;;  %v1211_v12 = vmul.f32 %v5598_v24, %v5597_v56  ;;  %v2043_v57 = vmul.f32 %v1915_v2, %v1915_v2  ;;  %v1796_v8 = vadd.f32 %v1668_v42, %v1347_v63  ;;  %v3952_v20 = vpop.permute.xlu1 %581  ;;  %v5606_v63 = vld [vmem:[#allocation84_spill] sm:$0xff]  ;;  %v5628_v24 = vld [vmem:[#allocation63_spill] sm:$0xff] }
  0xbb   :  { %2345 = vadd.xlane.f32.xlu0 %v2344_v22  ;;  %v1797_v55 = vadd.f32 %v1669_v39, %v1348_v62  ;;  %v1212_v29 = vmul.f32 %v5599_v13, %v5597_v56  ;;  %v2170_v31 = vmul.f32 %v2042_v17, %v1914_v49  ;;  %v890_v9 = vadd.f32 %v762_v61, %v441_v11  ;;  %v5604_v49 = vld [vmem:[#allocation86_spill] sm:$0xff]  ;;  %v5605_v39 = vld [vmem:[#allocation28_spill] sm:$0xff]  ;;  %v5607_v61 = vld [vmem:[#allocation29_spill] sm:$0xff] }
  0xbc   :  { %v891_v28 = vadd.f32 %v763_v32, %v442_v1  ;;  %v1660_v34 = vmul.f32 %v5586_v53, %v3838_v51  ;;  %v2171_v58 = vmul.f32 %v2043_v57, %v1915_v2  ;;  %v1924_v21 = vmax.f32 %v1796_v8, 1e-06  ;;  %5603 = vst [vmem:[#allocation88_spill] sm:$0xff] %v3952_v20 }
  0xbd   :  { %v1925_v46 = vmax.f32 %v1797_v55, 1e-06  ;;  %v1661_v52 = vmul.f32 %v5587_v25, %v3838_v51  ;;  %v1339_v27 = vadd.f32 %v1211_v12, %v890_v9  ;;  %v323_v43 = vmul.f32 %v5601_v59, %v5600_v0  ;;  %v5608_v12 = vld [vmem:[#allocation30_spill] sm:$0xff]  ;;  %v5626_v25 = vld [vmem:[#allocation59_spill] sm:$0xff] }
  0xbe   :  { %v1340_v37 = vadd.f32 %v1212_v29, %v891_v28  ;;  %v324_v14 = vmul.f32 %v5602_v47, %v5600_v0  ;;  %v2376_v60 = vadd.f32 %v2171_v58, %v2170_v31  ;;  %v2052_v42 = vmul.f32 %v1924_v21, %v1924_v21  ;;  %v5609_v31 = vld [vmem:[#allocation31_spill] sm:$0xff] }
  0xbf   :  { %v2053_v22 = vmul.f32 %v1925_v46, %v1925_v46  ;;  %v772_v18 = vmul.f32 %v5605_v39, %v5604_v49  ;;  %v1788_v11 = vadd.f32 %v1660_v34, %v1339_v27  ;;  %v451_v62 = vadd.f32 %v323_v43, %v5606_v63  ;;  %v5611_v43 = vld [vmem:[#allocation12_spill] sm:$0xff] }
  0xc0   :  { %v1789_v2 = vadd.f32 %v1661_v52, %v1340_v37  ;;  %v452_v48 = vadd.f32 %v324_v14, %v5606_v63  ;;  %2377 = vadd.xlane.f32.xlu0 %v2376_v60  ;;  %v2180_v1 = vmul.f32 %v2052_v42, %v1924_v21  ;;  %v773_v32 = vmul.f32 %v5607_v61, %v5604_v49  ;;  %v5610_v37 = vld [vmem:[#allocation81_spill] sm:$0xff]  ;;  %v3970_v60 = vpop.permute.xlu1 %1469 }
  0xc1   :  { %v2181_v17 = vmul.f32 %v2053_v22, %v1925_v46  ;;  %v1221_v57 = vmul.f32 %v5608_v12, %v3876_v7  ;;  %v1916_v8 = vmax.f32 %v1788_v11, 1e-06  ;;  %v900_v29 = vadd.f32 %v772_v18, %v451_v62  ;;  %v5612_v22 = vld [vmem:[#allocation13_spill] sm:$0xff]  ;;  %v5613_v11 = vld [vmem:[#allocation87_spill] sm:$0xff] }
  0xc2   :  { %v1917_v55 = vmax.f32 %v1789_v2, 1e-06  ;;  %v1222_v9 = vmul.f32 %v5609_v31, %v3876_v7  ;;  %v901_v34 = vadd.f32 %v773_v32, %v452_v48  ;;  %v1670_v58 = vmul.f32 %v5580_v23, %v3911_v33  ;;  %v5614_v2 = vld [vmem:[#allocation14_spill] sm:$0xff]  ;;  %v5615_v48 = vld [vmem:[#allocation15_spill] sm:$0xff] }
  0xc3   :  { %v2282_v28 = vadd.f32 %v2181_v17, %v2180_v1  ;;  %v1671_v21 = vmul.f32 %v5581_v6, %v3911_v33  ;;  %v2044_v46 = vmul.f32 %v1916_v8, %v1916_v8  ;;  %v1349_v27 = vadd.f32 %v1221_v57, %v900_v29  ;;  %v5616_v57 = vld [vmem:[#allocation85_spill] sm:$0xff] }
  0xc4   :  { %v2045_v52 = vmul.f32 %v1917_v55, %v1917_v55  ;;  %v337_v14 = vmul.f32 %v5611_v43, %v5610_v37  ;;  %v1350_v42 = vadd.f32 %v1222_v9, %v901_v34  ;;  %v338_v18 = vmul.f32 %v5612_v22, %v5610_v37 }
  0xc5   :  { %2283 = vadd.xlane.f32.xlu1 %v2282_v28  ;;  %v786_v62 = vmul.f32 %v5614_v2, %v5613_v11  ;;  %v787_v1 = vmul.f32 %v5615_v48, %v5613_v11  ;;  %v2172_v17 = vmul.f32 %v2044_v46, %v1916_v8  ;;  %v1798_v20 = vadd.f32 %v1670_v58, %v1349_v27  ;;  %v5618_v46 = vld [vmem:[#allocation54_spill] sm:$0xff] }
  0xc6   :  { %v2173_v32 = vmul.f32 %v2045_v52, %v1917_v55  ;;  %v465_v29 = vadd.f32 %v337_v14, %v5616_v57  ;;  %v1799_v40 = vadd.f32 %v1671_v21, %v1350_v42  ;;  %v466_v44 = vadd.f32 %v338_v18, %v5616_v57  ;;  %v5617_v21 = vld [vmem:[#allocation70_spill] sm:$0xff]  ;;  %v5619_v42 = vld [vmem:[#allocation55_spill] sm:$0xff] }
  0xc7   :  { %v1235_v9 = vmul.f32 %v3406_v4, %v3906_v54  ;;  %v1236_v28 = vmul.f32 %v3409_v5, %v3906_v54  ;;  %v1926_v36 = vmax.f32 %v1798_v20, 1e-06  ;;  %v1684_v48 = vmul.f32 %v5576_v45, %v3970_v60  ;;  %v5621_v20 = vld [vmem:[#allocation56_spill] sm:$0xff]  ;;  %v5622_v45 = vld [vmem:[#allocation71_spill] sm:$0xff] }
  0xc8   :  { %v2408_v34 = vadd.f32 %v2173_v32, %v2172_v17  ;;  %v914_v2 = vadd.f32 %v786_v62, %v465_v29  ;;  %v1927_v8 = vmax.f32 %v1799_v40, 1e-06  ;;  %v915_v55 = vadd.f32 %v787_v1, %v466_v44  ;;  %v5620_v17 = vld [vmem:[#allocation78_spill] sm:$0xff]  ;;  %v5623_v44 = vld [vmem:[#allocation57_spill] sm:$0xff] }
  0xc9   :  { %v1685_v58 = vmul.f32 %v5577_v38, %v3970_v60  ;;  %v299_v52 = vmul.f32 %v5618_v46, %v5617_v21  ;;  %v2054_v27 = vmul.f32 %v1926_v36, %v1926_v36  ;;  %v300_v18 = vmul.f32 %v5619_v42, %v5617_v21 }
  0xca   :  { %2409 = vadd.xlane.f32.xlu0 %v2408_v34  ;;  %v1363_v14 = vadd.f32 %v1235_v9, %v914_v2  ;;  %v748_v62 = vmul.f32 %v5621_v20, %v5620_v17  ;;  %v2055_v32 = vmul.f32 %v1927_v8, %v1927_v8  ;;  %v1364_v29 = vadd.f32 %v1236_v28, %v915_v55  ;;  %v5624_v34 = vld [vmem:[#allocation82_spill] sm:$0xff] }
  0xcb   :  { %v427_v40 = vadd.f32 %v299_v52, %v5622_v45  ;;  %v749_v1 = vmul.f32 %v5623_v44, %v5620_v17  ;;  %v2182_v38 = vmul.f32 %v2054_v27, %v1926_v36  ;;  %v428_v4 = vadd.f32 %v300_v18, %v5622_v45  ;;  %v5627_v55 = vld [vmem:[#allocation62_spill] sm:$0xff] }
  0xcc   :  { %v1812_v5 = vadd.f32 %v1684_v48, %v1363_v14  ;;  %v1197_v2 = vmul.f32 %v5625_v3, %v5624_v34  ;;  %v2183_v9 = vmul.f32 %v2055_v32, %v1927_v8  ;;  %v1813_v22 = vadd.f32 %v1685_v58, %v1364_v29 }
  0xcd   :  { %v876_v43 = vadd.f32 %v748_v62, %v427_v40  ;;  %v1198_v53 = vmul.f32 %v5626_v25, %v5624_v34  ;;  %v877_v28 = vadd.f32 %v749_v1, %v428_v4  ;;  %v1646_v52 = vmul.f32 %v5627_v55, %v3836_v30 }
  0xce   :  { %v1940_v13 = vmax.f32 %v1812_v5, 1e-06  ;;  %v1647_v36 = vmul.f32 %v5628_v24, %v3836_v30  ;;  %v2315_v48 = vadd.f32 %v2183_v9, %v2182_v38  ;;  %v1941_v27 = vmax.f32 %v1813_v22, 1e-06 }
  0xcf   :  { %v1325_v14 = vadd.f32 %v1197_v2, %v876_v43  ;;  %v339_v18 = vmul.f32 %v5601_v59, %v5610_v37  ;;  %v1326_v58 = vadd.f32 %v1198_v53, %v877_v28  ;;  %v340_v62 = vmul.f32 %v5602_v47, %v5610_v37 }
  0xd0   :  { %v2068_v8 = vmul.f32 %v1940_v13, %v1940_v13  ;;  %v788_v4 = vmul.f32 %v5605_v39, %v5613_v11  ;;  %2316 = vadd.xlane.f32.xlu1 %v2315_v48  ;;  %v2069_v5 = vmul.f32 %v1941_v27, %v1941_v27  ;;  %v789_v38 = vmul.f32 %v5607_v61, %v5613_v11  ;;  %v5634_v61 = vld [vmem:[#allocation25_spill] sm:$0xff] }
  0xd1   :  { %v1774_v32 = vadd.f32 %v1646_v52, %v1325_v14  ;;  %v467_v29 = vadd.f32 %v339_v18, %v5616_v57  ;;  %v1775_v22 = vadd.f32 %v1647_v36, %v1326_v58  ;;  %v468_v40 = vadd.f32 %v340_v62, %v5616_v57  ;;  %v5629_v58 = vld [vmem:[#allocation20_spill] sm:$0xff] }
  0xd2   :  { %v2196_v43 = vmul.f32 %v2068_v8, %v1940_v13  ;;  %v1237_v53 = vmul.f32 %v5608_v12, %v3906_v54  ;;  %v2197_v1 = vmul.f32 %v2069_v5, %v1941_v27  ;;  %v1238_v28 = vmul.f32 %v5609_v31, %v3906_v54 }
  0xd3   :  { %v1902_v2 = vmax.f32 %v1774_v32, 1e-06  ;;  %v916_v9 = vadd.f32 %v788_v4, %v467_v29  ;;  %v1903_v48 = vmax.f32 %v1775_v22, 1e-06  ;;  %v917_v52 = vadd.f32 %v789_v38, %v468_v40  ;;  %v5630_v4 = vld [vmem:[#allocation21_spill] sm:$0xff]  ;;  %v5631_v29 = vld [vmem:[#allocation22_spill] sm:$0xff] }
  0xd4   :  { %v1686_v14 = vmul.f32 %v5580_v23, %v3970_v60  ;;  %v1687_v13 = vmul.f32 %v5581_v6, %v3970_v60  ;;  %v2285_v36 = vadd.f32 %v2197_v1, %v2196_v43  ;;  %v325_v62 = vmul.f32 %v5629_v58, %v5600_v0  ;;  %v5632_v43 = vld [vmem:[#allocation23_spill] sm:$0xff] }
  0xd5   :  { %v2030_v18 = vmul.f32 %v1902_v2, %v1902_v2  ;;  %v1365_v8 = vadd.f32 %v1237_v53, %v916_v9  ;;  %v2031_v27 = vmul.f32 %v1903_v48, %v1903_v48  ;;  %v1366_v5 = vadd.f32 %v1238_v28, %v917_v52  ;;  %v5633_v28 = vld [vmem:[#allocation24_spill] sm:$0xff] }
  0xd6   :  { %v326_v32 = vmul.f32 %v5630_v4, %v5600_v0  ;;  %v774_v38 = vmul.f32 %v5631_v29, %v5604_v49  ;;  %2286 = vadd.xlane.f32.xlu0 %v2285_v36  ;;  %v453_v23 = vadd.f32 %v325_v62, %v5606_v63  ;;  %v775_v1 = vmul.f32 %v5632_v43, %v5604_v49  ;;  %v5635_v62 = vld [vmem:[#allocation76_spill] sm:$0xff] }
  0xd7   :  { %v2158_v22 = vmul.f32 %v2030_v18, %v1902_v2  ;;  %v1814_v40 = vadd.f32 %v1686_v14, %v1365_v8  ;;  %v2159_v53 = vmul.f32 %v2031_v27, %v1903_v48  ;;  %v1815_v9 = vadd.f32 %v1687_v13, %v1366_v5 }
  0xd8   :  { %v454_v6 = vadd.f32 %v326_v32, %v5606_v63  ;;  %v1223_v52 = vmul.f32 %v5633_v28, %v3876_v7  ;;  %v902_v12 = vadd.f32 %v774_v38, %v453_v23  ;;  %v1224_v39 = vmul.f32 %v5634_v61, %v3876_v7 }
  0xd9   :  { %v1942_v31 = vmax.f32 %v1814_v40, 1e-06  ;;  %v1672_v2 = vmul.f32 %v5578_v16, %v3911_v33  ;;  %v2437_v14 = vadd.f32 %v2159_v53, %v2158_v22  ;;  %v1943_v36 = vmax.f32 %v1815_v9, 1e-06 }
  0xda   :  { %v903_v18 = vadd.f32 %v775_v1, %v454_v6  ;;  %v1673_v48 = vmul.f32 %v5579_v15, %v3911_v33  ;;  %v1351_v8 = vadd.f32 %v1223_v52, %v902_v12  ;;  %v315_v27 = vmul.f32 %v5618_v46, %v5635_v62  ;;  %v5642_v46 = vld [vmem:[#allocation72_spill] sm:$0xff] }
  0xdb   :  { %v2070_v13 = vmul.f32 %v1942_v31, %v1942_v31  ;;  %v316_v23 = vmul.f32 %v5619_v42, %v5635_v62  ;;  %2438 = vadd.xlane.f32.xlu1 %v2437_v14  ;;  %v2071_v5 = vmul.f32 %v1943_v36, %v1943_v36  ;;  %v764_v38 = vmul.f32 %v5621_v20, %v5594_v19 }
  0xdc   :  { %v1352_v32 = vadd.f32 %v1224_v39, %v903_v18  ;;  %v765_v6 = vmul.f32 %v5623_v44, %v5594_v19  ;;  %v1800_v40 = vadd.f32 %v1672_v2, %v1351_v8  ;;  %v443_v1 = vadd.f32 %v315_v27, %v5590_v10 }
  0xdd   :  { %v2198_v22 = vmul.f32 %v2070_v13, %v1942_v31  ;;  %v444_v12 = vadd.f32 %v316_v23, %v5590_v10  ;;  %v2199_v53 = vmul.f32 %v2071_v5, %v1943_v36  ;;  %v1213_v52 = vmul.f32 %v5625_v3, %v5597_v56  ;;  %v5636_v36 = vld [vmem:[#allocation60_spill] sm:$0xff]  ;;  %v5637_v5 = vld [vmem:[#allocation61_spill] sm:$0xff] }
  0xde   :  { %v1801_v9 = vadd.f32 %v1673_v48, %v1352_v32  ;;  %v1214_v39 = vmul.f32 %v5626_v25, %v5597_v56  ;;  %v1928_v14 = vmax.f32 %v1800_v40, 1e-06  ;;  %v892_v18 = vadd.f32 %v764_v38, %v443_v1  ;;  %v5638_v40 = vld [vmem:[#allocation64_spill] sm:$0xff]  ;;  %v5639_v1 = vld [vmem:[#allocation65_spill] sm:$0xff] }
  0xdf   :  { %v893_v20 = vadd.f32 %v765_v6, %v444_v12  ;;  %v1662_v44 = vmul.f32 %v5627_v55, %v3838_v51  ;;  %v2318_v31 = vadd.f32 %v2199_v53, %v2198_v22  ;;  %v1663_v13 = vmul.f32 %v5628_v24, %v3838_v51 }
  0xe0   :  { %v1929_v2 = vmax.f32 %v1801_v9, 1e-06  ;;  %v301_v48 = vmul.f32 %v5636_v36, %v5617_v21  ;;  %v2056_v8 = vmul.f32 %v1928_v14, %v1928_v14  ;;  %v1341_v27 = vadd.f32 %v1213_v52, %v892_v18 }
  0xe1   :  { %v1342_v23 = vadd.f32 %v1214_v39, %v893_v20  ;;  %v302_v32 = vmul.f32 %v5637_v5, %v5617_v21  ;;  %2319 = vadd.xlane.f32.xlu0 %v2318_v31  ;;  %v750_v22 = vmul.f32 %v5638_v40, %v5620_v17  ;;  %v751_v12 = vmul.f32 %v5639_v1, %v5620_v17  ;;  %v5640_v39 = vld [vmem:[#allocation66_spill] sm:$0xff]  ;;  %v5641_v31 = vld [vmem:[#allocation67_spill] sm:$0xff] }
  0xe2   :  { %v2057_v38 = vmul.f32 %v1929_v2, %v1929_v2  ;;  %v429_v6 = vadd.f32 %v301_v48, %v5622_v45  ;;  %v2184_v53 = vmul.f32 %v2056_v8, %v1928_v14  ;;  %v1790_v9 = vadd.f32 %v1662_v44, %v1341_v27  ;;  %v5643_v44 = vld [vmem:[#allocation73_spill] sm:$0xff] }
  0xe3   :  { %v1791_v24 = vadd.f32 %v1663_v13, %v1342_v23  ;;  %v430_v55 = vadd.f32 %v302_v32, %v5622_v45  ;;  %v1199_v18 = vmul.f32 %v5640_v39, %v5624_v34  ;;  %v1200_v25 = vmul.f32 %v5641_v31, %v5624_v34 }
  0xe4   :  { %v2185_v52 = vmul.f32 %v2057_v38, %v1929_v2  ;;  %v878_v20 = vadd.f32 %v750_v22, %v429_v6  ;;  %v1918_v48 = vmax.f32 %v1790_v9, 1e-06  ;;  %v1648_v47 = vmul.f32 %v5642_v46, %v3836_v30 }
  0xe5   :  { %v1919_v3 = vmax.f32 %v1791_v24, 1e-06  ;;  %v879_v42 = vadd.f32 %v751_v12, %v430_v55  ;;  %v1649_v13 = vmul.f32 %v5643_v44, %v3836_v30  ;;  %v341_v2 = vmul.f32 %v5629_v58, %v5610_v37 }
  0xe6   :  { %v2347_v59 = vadd.f32 %v2185_v52, %v2184_v53  ;;  %v1327_v14 = vadd.f32 %v1199_v18, %v878_v20  ;;  %v2046_v8 = vmul.f32 %v1918_v48, %v1918_v48  ;;  %v342_v32 = vmul.f32 %v5630_v4, %v5610_v37 }
  0xe7   :  { %v2047_v27 = vmul.f32 %v1919_v3, %v1919_v3  ;;  %v1328_v23 = vadd.f32 %v1200_v25, %v879_v42  ;;  %v469_v55 = vadd.f32 %v341_v2, %v5616_v57  ;;  %v790_v38 = vmul.f32 %v5631_v29, %v5613_v11 }
  0xe8   :  { %2348 = vadd.xlane.f32.xlu1 %v2347_v59  ;;  %v1776_v24 = vadd.f32 %v1648_v47, %v1327_v14  ;;  %v791_v6 = vmul.f32 %v5632_v43, %v5613_v11  ;;  %v2174_v22 = vmul.f32 %v2046_v8, %v1918_v48  ;;  %v470_v9 = vadd.f32 %v342_v32, %v5616_v57  ;;  %v5645_v32 = vld [vmem:[#allocation33_spill] sm:$0xff] }
  0xe9   :  { %v2175_v12 = vmul.f32 %v2047_v27, %v1919_v3  ;;  %v1777_v53 = vadd.f32 %v1649_v13, %v1328_v23  ;;  %v918_v25 = vadd.f32 %v790_v38, %v469_v55  ;;  %v1239_v42 = vmul.f32 %v5633_v28, %v3906_v54  ;;  %v5644_v13 = vld [vmem:[#allocation32_spill] sm:$0xff] }
  0xea   :  { %v1904_v52 = vmax.f32 %v1776_v24, 1e-06  ;;  %v1240_v59 = vmul.f32 %v5634_v61, %v3906_v54  ;;  %v919_v18 = vadd.f32 %v791_v6, %v470_v9  ;;  %v1688_v14 = vmul.f32 %v5578_v16, %v3970_v60  ;;  %v5646_v55 = vld [vmem:[#allocation36_spill] sm:$0xff]  ;;  %v5649_v61 = vld [vmem:[#allocation43_spill] sm:$0xff] }
  0xeb   :  { %v2440_v47 = vadd.f32 %v2175_v12, %v2174_v22  ;;  %v1905_v20 = vmax.f32 %v1777_v53, 1e-06  ;;  %v1367_v48 = vadd.f32 %v1239_v42, %v918_v25  ;;  %v1689_v3 = vmul.f32 %v5579_v15, %v3970_v60  ;;  %v5647_v53 = vld [vmem:[#allocation37_spill] sm:$0xff] }
  0xec   :  { %v2032_v2 = vmul.f32 %v1904_v52, %v1904_v52  ;;  %v327_v8 = vmul.f32 %v5644_v13, %v5600_v0  ;;  %v1368_v23 = vadd.f32 %v1240_v59, %v919_v18  ;;  %v328_v24 = vmul.f32 %v5645_v32, %v5600_v0 }
  0xed   :  { %2441 = vadd.xlane.f32.xlu0 %v2440_v47  ;;  %v2033_v27 = vmul.f32 %v1905_v20, %v1905_v20  ;;  %v776_v38 = vmul.f32 %v5646_v55, %v5604_v49  ;;  %v1816_v22 = vadd.f32 %v1688_v14, %v1367_v48  ;;  %v777_v9 = vmul.f32 %v5647_v53, %v5604_v49  ;;  %v5648_v47 = vld [vmem:[#allocation42_spill] sm:$0xff] }
  0xee   :  { %v2160_v6 = vmul.f32 %v2032_v2, %v1904_v52  ;;  %v455_v12 = vadd.f32 %v327_v8, %v5606_v63  ;;  %v1817_v42 = vadd.f32 %v1689_v3, %v1368_v23  ;;  %v456_v15 = vadd.f32 %v328_v24, %v5606_v63 }
  0xef   :  { %v2161_v25 = vmul.f32 %v2033_v27, %v1905_v20  ;;  %v1225_v59 = vmul.f32 %v5648_v47, %v3876_v7  ;;  %v1944_v18 = vmax.f32 %v1816_v22, 1e-06  ;;  %v1226_v28 = vmul.f32 %v5649_v61, %v3876_v7 }
  0xf0   :  { %v904_v16 = vadd.f32 %v776_v38, %v455_v12  ;;  %v1674_v52 = vmul.f32 %v5583_v50, %v3911_v33  ;;  %v1945_v2 = vmax.f32 %v1817_v42, 1e-06  ;;  %v905_v48 = vadd.f32 %v777_v9, %v456_v15 }
  0xf1   :  { %v2469_v14 = vadd.f32 %v2161_v25, %v2160_v6  ;;  %v1675_v20 = vmul.f32 %v5584_v41, %v3911_v33  ;;  %v2072_v3 = vmul.f32 %v1944_v18, %v1944_v18  ;;  %v317_v27 = vmul.f32 %v5636_v36, %v5635_v62  ;;  %v5657_v36 = vld [vmem:[#allocation18_spill] sm:$0xff] }
  0xf2   :  { %v1353_v8 = vadd.f32 %v1225_v59, %v904_v16  ;;  %v318_v23 = vmul.f32 %v5637_v5, %v5635_v62  ;;  %v2073_v24 = vmul.f32 %v1945_v2, %v1945_v2  ;;  %v1354_v38 = vadd.f32 %v1226_v28, %v905_v48 }
  0xf3   :  { %2470 = vadd.xlane.f32.xlu1 %v2469_v14  ;;  %v766_v22 = vmul.f32 %v5638_v40, %v5594_v19  ;;  %v767_v15 = vmul.f32 %v5639_v1, %v5594_v19  ;;  %v2200_v6 = vmul.f32 %v2072_v3, %v1944_v18  ;;  %v445_v9 = vadd.f32 %v317_v27, %v5590_v10 }
  0xf4   :  { %v1802_v12 = vadd.f32 %v1674_v52, %v1353_v8  ;;  %v446_v16 = vadd.f32 %v318_v23, %v5590_v10  ;;  %v2201_v25 = vmul.f32 %v2073_v24, %v1945_v2  ;;  %v1803_v42 = vadd.f32 %v1675_v20, %v1354_v38  ;;  %v5650_v2 = vld [vmem:[#allocation68_spill] sm:$0xff]  ;;  %v5651_v24 = vld [vmem:[#allocation69_spill] sm:$0xff] }
  0xf5   :  { %v1215_v59 = vmul.f32 %v5640_v39, %v5597_v56  ;;  %v1216_v28 = vmul.f32 %v5641_v31, %v5597_v56  ;;  %v894_v48 = vadd.f32 %v766_v22, %v445_v9  ;;  %v1664_v1 = vmul.f32 %v5642_v46, %v3838_v51 }
  0xf6   :  { %v1930_v14 = vmax.f32 %v1802_v12, 1e-06  ;;  %v895_v40 = vadd.f32 %v767_v15, %v446_v16  ;;  %v2350_v18 = vadd.f32 %v2201_v25, %v2200_v6  ;;  %v1931_v52 = vmax.f32 %v1803_v42, 1e-06  ;;  %v4136_v12 = vpop.permute.xlu0 %129  ;;  %v5653_v6 = vld [vmem:[#allocation74_spill] sm:$0xff]  ;;  %v5654_v16 = vld [vmem:[#allocation75_spill] sm:$0xff] }
  0xf7   :  { %v1665_v3 = vmul.f32 %v5643_v44, %v3838_v51  ;;  %v303_v20 = vmul.f32 %v5650_v2, %v5617_v21  ;;  %v1343_v27 = vadd.f32 %v1215_v59, %v894_v48  ;;  %v304_v38 = vmul.f32 %v5651_v24, %v5617_v21  ;;  %5652 = vst [vmem:[#allocation89_spill] sm:$0xff] %v4136_v12  ;;  %v3125_v21 = vld [vmem:[%s5221_s0 + $0x38] sm:$0xff]  ;;  %v5655_v48 = vld [vmem:[#allocation10_spill] sm:$0xff] }
  0xf8   :  { %v2058_v8 = vmul.f32 %v1930_v14, %v1930_v14  ;;  %v1344_v23 = vadd.f32 %v1216_v28, %v895_v40  ;;  %2351 = vadd.xlane.f32.xlu0 %v2350_v18  ;;  %v2059_v22 = vmul.f32 %v1931_v52, %v1931_v52  ;;  %v752_v9 = vmul.f32 %v5653_v6, %v5620_v17 }
  0xf9   :  { %v431_v15 = vadd.f32 %v303_v20, %v5622_v45  ;;  %v753_v25 = vmul.f32 %v5654_v16, %v5620_v17  ;;  %v1792_v44 = vadd.f32 %v1664_v1, %v1343_v27  ;;  %v432_v40 = vadd.f32 %v304_v38, %v5622_v45  ;;  %v5656_v20 = vld [vmem:[#allocation11_spill] sm:$0xff] }
  0xfa   :  { %v2186_v42 = vmul.f32 %v2058_v8, %v1930_v14  ;;  %v1793_v46 = vadd.f32 %v1665_v3, %v1344_v23  ;;  %v2187_v59 = vmul.f32 %v2059_v22, %v1931_v52  ;;  %v1102_v18 = vrot.slane %v3125_v21, %v5655_v48  ;;  %v5660_v52 = vld [vmem:[#allocation19_spill] sm:$0xff] }
  0xfb   :  { %v880_v28 = vadd.f32 %v752_v9, %v431_v15  ;;  %v1106_v12 = vrot.slane %v3125_v21, %v5656_v20  ;;  %v1920_v31 = vmax.f32 %v1792_v44, 1e-06  ;;  %v881_v5 = vadd.f32 %v753_v25, %v432_v40  ;;  %v4162_v44 = vpop.permute.xlu0 %1025 }
  0xfc   :  { %v1921_v39 = vmax.f32 %v1793_v46, 1e-06  ;;  %v1551_v17 = vrot.slane %v3125_v21, %v5657_v36  ;;  %v2379_v14 = vadd.f32 %v2187_v59, %v2186_v42  ;;  %v4151_v1 = vrot.slane %v1102_v18, %v5655_v48 }
  0xfd   :  { %v4154_v45 = vrot.slane %v1106_v12, %v5655_v48  ;;  %v1555_v3 = vrot.slane %v3125_v21, %v5660_v52  ;;  %v2048_v8 = vmul.f32 %v1920_v31, %v1920_v31  ;;  %v343_v46 = vmul.f32 %v5644_v13, %v5610_v37 }
  0xfe   :  { %5658 = vst [vmem:[#allocation79_spill] sm:$0xff] %v4151_v1  ;;  %v2049_v27 = vmul.f32 %v1921_v39, %v1921_v39  ;;  %v4158_v23 = vrot.slane %v1551_v17, %v5657_v36  ;;  %2380 = vadd.xlane.f32.xlu1 %v2379_v14  ;;  %v1201_v38 = vmul.f32 %v4151_v1, %v5624_v34 }
  0xff   :  { %5659 = vst [vmem:[#allocation83_spill] sm:$0xff] %v4154_v45  ;;  %v1202_v12 = vmul.f32 %v4154_v45, %v5624_v34  ;;  %v4169_v22 = vrot.slane %v1555_v3, %v5657_v36  ;;  %v344_v15 = vmul.f32 %v5645_v32, %v5610_v37  ;;  %v2176_v9 = vmul.f32 %v2048_v8, %v1920_v31  ;;  %v5663_v3 = vld [vmem:[#allocation46_spill] sm:$0xff] }
 0x100   :  { %5661 = vst [vmem:[#allocation80_spill] sm:$0xff] %v4158_v23  ;;  %v2177_v25 = vmul.f32 %v2049_v27, %v1921_v39  ;;  %v1650_v42 = vmul.f32 %v4158_v23, %v3836_v30  ;;  %v471_v40 = vadd.f32 %v343_v46, %v5616_v57  ;;  %v1329_v59 = vadd.f32 %v1201_v38, %v880_v28  ;;  %v4193_v27 = vpop.permute.xlu0 %81 }
 0x101   :  { %5662 = vst [vmem:[#allocation86_spill] sm:$0xff] %v4169_v22  ;;  %v1330_v21 = vadd.f32 %v1202_v12, %v881_v5  ;;  %v1651_v48 = vmul.f32 %v4169_v22, %v3836_v30  ;;  %v472_v34 = vadd.f32 %v344_v15, %v5616_v57  ;;  %v792_v36 = vmul.f32 %v5646_v55, %v5613_v11  ;;  %v5665_v12 = vld [vmem:[#allocation47_spill] sm:$0xff]  ;;  %v4211_v55 = vpop.permute.xlu1 %134 }
 0x102   :  { %v2472_v18 = vadd.f32 %v2177_v25, %v2176_v9  ;;  %v793_v31 = vmul.f32 %v5647_v53, %v5613_v11  ;;  %v1241_v39 = vmul.f32 %v5648_v47, %v3906_v54  ;;  %v1778_v20 = vadd.f32 %v1650_v42, %v1329_v59  ;;  %5664 = vst [vmem:[#allocation84_spill] sm:$0xff] %v4193_v27  ;;  %v5667_v27 = vld [vmem:[#allocation51_spill] sm:$0xff] }
 0x103   :  { %v1779_v17 = vadd.f32 %v1651_v48, %v1330_v21  ;;  %v1242_v5 = vmul.f32 %v5649_v61, %v3906_v54  ;;  %v1690_v30 = vmul.f32 %v5583_v50, %v3970_v60  ;;  %v920_v28 = vadd.f32 %v792_v36, %v471_v40  ;;  %5670 = vst [vmem:[#allocation81_spill] sm:$0xff] %v4211_v55  ;;  %v5678_v55 = vld [vmem:[#allocation91_spill] sm:$0xff] }
 0x104   :  { %2473 = vadd.xlane.f32.xlu0 %v2472_v18  ;;  %v921_v14 = vadd.f32 %v793_v31, %v472_v34  ;;  %v1691_v52 = vmul.f32 %v5584_v41, %v3970_v60  ;;  %v329_v8 = vmul.f32 %v5663_v3, %v5600_v0  ;;  %v1906_v46 = vmax.f32 %v1778_v20, 1e-06  ;;  %v5666_v18 = vld [vmem:[#allocation50_spill] sm:$0xff] }
 0x105   :  { %v1907_v38 = vmax.f32 %v1779_v17, 1e-06  ;;  %v330_v15 = vmul.f32 %v5665_v12, %v5600_v0  ;;  %v778_v9 = vmul.f32 %v5595_v26, %v5604_v49  ;;  %v1369_v25 = vadd.f32 %v1241_v39, %v920_v28 }
 0x106   :  { %v1370_v42 = vadd.f32 %v1242_v5, %v921_v14  ;;  %v457_v40 = vadd.f32 %v329_v8, %v5606_v63  ;;  %v779_v59 = vmul.f32 %v5596_v35, %v5604_v49  ;;  %v2034_v21 = vmul.f32 %v1906_v46, %v1906_v46  ;;  %v5668_v14 = vld [vmem:[#allocation52_spill] sm:$0xff] }
 0x107   :  { %v2035_v48 = vmul.f32 %v1907_v38, %v1907_v38  ;;  %v458_v34 = vadd.f32 %v330_v15, %v5606_v63  ;;  %v1227_v36 = vmul.f32 %v5666_v18, %v3876_v7  ;;  %v1818_v31 = vadd.f32 %v1690_v30, %v1369_v25  ;;  %v5669_v15 = vld [vmem:[#allocation53_spill] sm:$0xff]  ;;  %v4213_v30 = vpop.permute.xlu0 %586 }
 0x108   :  { %v1819_v20 = vadd.f32 %v1691_v52, %v1370_v42  ;;  %v906_v17 = vadd.f32 %v778_v9, %v457_v40  ;;  %v1228_v41 = vmul.f32 %v5667_v27, %v3876_v7  ;;  %v2162_v39 = vmul.f32 %v2034_v21, %v1906_v46  ;;  %5671 = vst [vmem:[#allocation87_spill] sm:$0xff] %v4213_v30 }
 0x109   :  { %v2163_v5 = vmul.f32 %v2035_v48, %v1907_v38  ;;  %v907_v28 = vadd.f32 %v779_v59, %v458_v34  ;;  %v1676_v8 = vmul.f32 %v5668_v14, %v3911_v33  ;;  %v1946_v50 = vmax.f32 %v1818_v31, 1e-06 }
 0x10a   :  { %v1947_v61 = vmax.f32 %v1819_v20, 1e-06  ;;  %v1355_v47 = vadd.f32 %v1227_v36, %v906_v17  ;;  %v1677_v53 = vmul.f32 %v5669_v15, %v3911_v33  ;;  %v319_v46 = vmul.f32 %v5650_v2, %v5635_v62 }
 0x10b   :  { %v2501_v52 = vadd.f32 %v2163_v5, %v2162_v39  ;;  %v1356_v9 = vadd.f32 %v1228_v41, %v907_v28  ;;  %v320_v38 = vmul.f32 %v5651_v24, %v5635_v62  ;;  %v2074_v25 = vmul.f32 %v1946_v50, %v1946_v50 }
 0x10c   :  { %v2075_v42 = vmul.f32 %v1947_v61, %v1947_v61  ;;  %v1804_v40 = vadd.f32 %v1676_v8, %v1355_v47  ;;  %v768_v59 = vmul.f32 %v5653_v6, %v5594_v19  ;;  %v447_v48 = vadd.f32 %v319_v46, %v5590_v10  ;;  %v5672_v46 = vld [vmem:[#allocation90_spill] sm:$0xff] }
 0x10d   :  { %2502 = vadd.xlane.f32.xlu1 %v2501_v52  ;;  %v1805_v21 = vadd.f32 %v1677_v53, %v1356_v9  ;;  %v448_v34 = vadd.f32 %v320_v38, %v5590_v10  ;;  %v769_v41 = vmul.f32 %v5654_v16, %v5594_v19  ;;  %v2202_v36 = vmul.f32 %v2074_v25, %v1946_v50  ;;  %v4233_v50 = vpop.permute.xlu1 %1030  ;;  %v5673_v38 = vld [vmem:[#allocation12_spill] sm:$0xff] }
 0x10e   :  { %v2203_v31 = vmul.f32 %v2075_v42, %v1947_v61  ;;  %v1932_v20 = vmax.f32 %v1804_v40, 1e-06  ;;  %v1217_v62 = vmul.f32 %v4151_v1, %v5597_v56  ;;  %v896_v47 = vadd.f32 %v768_v59, %v447_v48  ;;  %v4235_v61 = vpop.permute.xlu0 %1474  ;;  %v5674_v42 = vld [vmem:[#allocation13_spill] sm:$0xff] }
 0x10f   :  { %v1933_v17 = vmax.f32 %v1805_v21, 1e-06  ;;  %v897_v39 = vadd.f32 %v769_v41, %v448_v34  ;;  %v1218_v5 = vmul.f32 %v4154_v45, %v5597_v56  ;;  %v1666_v10 = vmul.f32 %v4158_v23, %v3838_v51  ;;  %v5675_v59 = vld [vmem:[#allocation93_spill] sm:$0xff]  ;;  %v5676_v21 = vld [vmem:[#allocation14_spill] sm:$0xff] }
 0x110   :  { %v2382_v53 = vadd.f32 %v2203_v31, %v2202_v36  ;;  %v2060_v28 = vmul.f32 %v1932_v20, %v1932_v20  ;;  %v1667_v19 = vmul.f32 %v4169_v22, %v3838_v51  ;;  %v1345_v52 = vadd.f32 %v1217_v62, %v896_v47  ;;  %v5677_v51 = vld [vmem:[#allocation15_spill] sm:$0xff] }
 0x111   :  { %v2061_v8 = vmul.f32 %v1933_v17, %v1933_v17  ;;  %v1346_v9 = vadd.f32 %v1218_v5, %v897_v39  ;;  %v353_v25 = vmul.f32 %v5673_v38, %v5672_v46  ;;  %v354_v40 = vmul.f32 %v5674_v42, %v5672_v46  ;;  %v5679_v39 = vld [vmem:[#allocation16_spill] sm:$0xff] }
 0x112   :  { %2383 = vadd.xlane.f32.xlu0 %v2382_v53  ;;  %v2188_v56 = vmul.f32 %v2060_v28, %v1932_v20  ;;  %v802_v48 = vmul.f32 %v5676_v21, %v5675_v59  ;;  %v803_v34 = vmul.f32 %v5677_v51, %v5675_v59  ;;  %v1794_v36 = vadd.f32 %v1666_v10, %v1345_v52  ;;  %v5680_v20 = vld [vmem:[#allocation17_spill] sm:$0xff]  ;;  %v5681_v28 = vld [vmem:[#allocation34_spill] sm:$0xff]  ;;  %v5682_v10 = vld [vmem:[#allocation35_spill] sm:$0xff] }
 0x113   :  { %v2189_v41 = vmul.f32 %v2061_v8, %v1933_v17  ;;  %v1795_v31 = vadd.f32 %v1667_v19, %v1346_v9  ;;  %v481_v62 = vadd.f32 %v353_v25, %v5678_v55  ;;  %v482_v47 = vadd.f32 %v354_v40, %v5678_v55  ;;  %v4259_v9 = vpop.permute.xlu1 %86 }
 0x114   :  { %v1251_v5 = vmul.f32 %v5679_v39, %v4162_v44  ;;  %v1252_v53 = vmul.f32 %v5680_v20, %v4162_v44  ;;  %v1700_v30 = vmul.f32 %v5681_v28, %v4235_v61  ;;  %v1922_v23 = vmax.f32 %v1794_v36, 1e-06  ;;  %5683 = vst [vmem:[#allocation85_spill] sm:$0xff] %v4259_v9 }
 0x115   :  { %v2411_v22 = vadd.f32 %v2189_v41, %v2188_v56  ;;  %v1923_v45 = vmax.f32 %v1795_v31, 1e-06  ;;  %v930_v1 = vadd.f32 %v802_v48, %v481_v62  ;;  %v931_v17 = vadd.f32 %v803_v34, %v482_v47 }
 0x116   :  { %v1701_v19 = vmul.f32 %v5682_v10, %v4235_v61  ;;  %v345_v8 = vmul.f32 %v5663_v3, %v5610_v37  ;;  %v346_v52 = vmul.f32 %v5665_v12, %v5610_v37  ;;  %v2050_v25 = vmul.f32 %v1922_v23, %v1922_v23  ;;  %v5691_v3 = vld [vmem:[#allocation40_spill] sm:$0xff] }
 0x117   :  { %2412 = vadd.xlane.f32.xlu1 %v2411_v22  ;;  %v2051_v40 = vmul.f32 %v1923_v45, %v1923_v45  ;;  %v1379_v16 = vadd.f32 %v1251_v5, %v930_v1  ;;  %v794_v56 = vmul.f32 %v5595_v26, %v5613_v11  ;;  %v1380_v48 = vadd.f32 %v1252_v53, %v931_v17 }
 0x118   :  { %v473_v34 = vadd.f32 %v345_v8, %v5616_v57  ;;  %v474_v41 = vadd.f32 %v346_v52, %v5616_v57  ;;  %v795_v36 = vmul.f32 %v5596_v35, %v5613_v11  ;;  %v2178_v31 = vmul.f32 %v2050_v25, %v1922_v23 }
 0x119   :  { %v2179_v62 = vmul.f32 %v2051_v40, %v1923_v45  ;;  %v1828_v47 = vadd.f32 %v1700_v30, %v1379_v16  ;;  %v1243_v22 = vmul.f32 %v5666_v18, %v3906_v54  ;;  %v1829_v9 = vadd.f32 %v1701_v19, %v1380_v48  ;;  %v5684_v30 = vld [vmem:[#allocation26_spill] sm:$0xff]  ;;  %v4277_v19 = vpop.permute.xlu1 %591 }
 0x11a   :  { %v922_v12 = vadd.f32 %v794_v56, %v473_v34  ;;  %v923_v1 = vadd.f32 %v795_v36, %v474_v41  ;;  %v1244_v5 = vmul.f32 %v5667_v27, %v3906_v54  ;;  %v1692_v8 = vmul.f32 %v5668_v14, %v3970_v60  ;;  %5685 = vst [vmem:[#allocation70_spill] sm:$0xff] %v4277_v19  ;;  %v5686_v56 = vld [vmem:[#allocation27_spill] sm:$0xff]  ;;  %v5687_v34 = vld [vmem:[#allocation28_spill] sm:$0xff]  ;;  %v5688_v36 = vld [vmem:[#allocation29_spill] sm:$0xff] }
 0x11b   :  { %v2504_v53 = vadd.f32 %v2179_v62, %v2178_v31  ;;  %v1956_v17 = vmax.f32 %v1828_v47, 1e-06  ;;  %v1693_v52 = vmul.f32 %v5669_v15, %v3970_v60  ;;  %v1957_v23 = vmax.f32 %v1829_v9, 1e-06  ;;  %v5690_v19 = vld [vmem:[#allocation31_spill] sm:$0xff] }
 0x11c   :  { %v1371_v45 = vadd.f32 %v1243_v22, %v922_v12  ;;  %v1372_v16 = vadd.f32 %v1244_v5, %v923_v1  ;;  %v355_v25 = vmul.f32 %v5684_v30, %v5672_v46  ;;  %v356_v48 = vmul.f32 %v5686_v56, %v5672_v46  ;;  %v5689_v5 = vld [vmem:[#allocation30_spill] sm:$0xff] }
 0x11d   :  { %2505 = vadd.xlane.f32.xlu0 %v2504_v53  ;;  %v2084_v40 = vmul.f32 %v1956_v17, %v1956_v17  ;;  %v804_v41 = vmul.f32 %v5687_v34, %v5675_v59  ;;  %v805_v31 = vmul.f32 %v5688_v36, %v5675_v59  ;;  %v2085_v62 = vmul.f32 %v1957_v23, %v1957_v23  ;;  %v4297_v24 = vpop.permute.xlu1 %1479 }
 0x11e   :  { %v1820_v9 = vadd.f32 %v1692_v8, %v1371_v45  ;;  %v1821_v12 = vadd.f32 %v1693_v52, %v1372_v16  ;;  %v483_v47 = vadd.f32 %v355_v25, %v5678_v55  ;;  %v484_v1 = vadd.f32 %v356_v48, %v5678_v55  ;;  %v5692_v52 = vld [vmem:[#allocation41_spill] sm:$0xff] }
 0x11f   :  { %v2212_v22 = vmul.f32 %v2084_v40, %v1956_v17  ;;  %v1253_v53 = vmul.f32 %v5689_v5, %v4162_v44  ;;  %v1254_v15 = vmul.f32 %v5690_v19, %v4162_v44  ;;  %v2213_v14 = vmul.f32 %v2085_v62, %v1957_v23  ;;  %v5693_v17 = vld [vmem:[#allocation92_spill] sm:$0xff] }
 0x120   :  { %v1948_v27 = vmax.f32 %v1820_v9, 1e-06  ;;  %v1949_v18 = vmax.f32 %v1821_v12, 1e-06  ;;  %v932_v35 = vadd.f32 %v804_v41, %v483_v47  ;;  %v933_v26 = vadd.f32 %v805_v31, %v484_v1  ;;  %v5694_v31 = vld [vmem:[#allocation77_spill] sm:$0xff]  ;;  %v5695_v9 = vld [vmem:[#allocation88_spill] sm:$0xff] }
 0x121   :  { %v1702_v8 = vmul.f32 %v5691_v3, %v4235_v61  ;;  %v1703_v45 = vmul.f32 %v5692_v52, %v4235_v61  ;;  %v369_v16 = vmul.f32 %v5673_v38, %v5693_v17  ;;  %v2288_v25 = vadd.f32 %v2213_v14, %v2212_v22 }
 0x122   :  { %v2076_v40 = vmul.f32 %v1948_v27, %v1948_v27  ;;  %v2077_v48 = vmul.f32 %v1949_v18, %v1949_v18  ;;  %v1381_v6 = vadd.f32 %v1253_v53, %v932_v35  ;;  %v1382_v23 = vadd.f32 %v1254_v15, %v933_v26 }
 0x123   :  { %v370_v41 = vmul.f32 %v5674_v42, %v5693_v17  ;;  %v497_v62 = vadd.f32 %v369_v16, %v5694_v31  ;;  %v818_v12 = vmul.f32 %v5676_v21, %v5695_v9  ;;  %2289 = vadd.xlane.f32.xlu1 %v2288_v25  ;;  %v819_v14 = vmul.f32 %v5677_v51, %v5695_v9  ;;  %v5701_v51 = vld [vmem:[#allocation59_spill] sm:$0xff] }
 0x124   :  { %v2204_v47 = vmul.f32 %v2076_v40, %v1948_v27  ;;  %v2205_v1 = vmul.f32 %v2077_v48, %v1949_v18  ;;  %v1830_v2 = vadd.f32 %v1702_v8, %v1381_v6  ;;  %v1831_v22 = vadd.f32 %v1703_v45, %v1382_v23  ;;  %v5696_v40 = vld [vmem:[#allocation54_spill] sm:$0xff]  ;;  %v5697_v23 = vld [vmem:[#allocation55_spill] sm:$0xff] }
 0x125   :  { %v498_v35 = vadd.f32 %v370_v41, %v5694_v31  ;;  %v946_v53 = vadd.f32 %v818_v12, %v497_v62  ;;  %v1267_v26 = vmul.f32 %v5679_v39, %v4233_v50  ;;  %v1268_v16 = vmul.f32 %v5680_v20, %v4233_v50  ;;  %v5698_v41 = vld [vmem:[#allocation56_spill] sm:$0xff] }
 0x126   :  { %v2414_v15 = vadd.f32 %v2205_v1, %v2204_v47  ;;  %v1958_v42 = vmax.f32 %v1830_v2, 1e-06  ;;  %v1716_v27 = vmul.f32 %v5681_v28, %v4297_v24  ;;  %v1959_v18 = vmax.f32 %v1831_v22, 1e-06 }
 0x127   :  { %v947_v6 = vadd.f32 %v819_v14, %v498_v35  ;;  %v1395_v8 = vadd.f32 %v1267_v26, %v946_v53  ;;  %v1717_v45 = vmul.f32 %v5682_v10, %v4297_v24  ;;  %v331_v48 = vmul.f32 %v5696_v40, %v5600_v0  ;;  %v5699_v14 = vld [vmem:[#allocation57_spill] sm:$0xff] }
 0x128   :  { %2415 = vadd.xlane.f32.xlu0 %v2414_v15  ;;  %v2086_v25 = vmul.f32 %v1958_v42, %v1958_v42  ;;  %v332_v2 = vmul.f32 %v5697_v23, %v5600_v0  ;;  %v780_v62 = vmul.f32 %v5698_v41, %v5604_v49  ;;  %v2087_v12 = vmul.f32 %v1959_v18, %v1959_v18  ;;  %v5700_v15 = vld [vmem:[#allocation58_spill] sm:$0xff] }
 0x129   :  { %v1396_v47 = vadd.f32 %v1268_v16, %v947_v6  ;;  %v1844_v1 = vadd.f32 %v1716_v27, %v1395_v8  ;;  %v781_v22 = vmul.f32 %v5699_v14, %v5604_v49  ;;  %v459_v53 = vadd.f32 %v331_v48, %v5606_v63  ;;  %v5702_v27 = vld [vmem:[#allocation62_spill] sm:$0xff] }
 0x12a   :  { %v2214_v35 = vmul.f32 %v2086_v25, %v1958_v42  ;;  %v460_v26 = vadd.f32 %v332_v2, %v5606_v63  ;;  %v1229_v10 = vmul.f32 %v5700_v15, %v3876_v7  ;;  %v2215_v28 = vmul.f32 %v2087_v12, %v1959_v18  ;;  %v5703_v42 = vld [vmem:[#allocation63_spill] sm:$0xff] }
 0x12b   :  { %v1845_v20 = vadd.f32 %v1717_v45, %v1396_v47  ;;  %v1972_v39 = vmax.f32 %v1844_v1, 1e-06  ;;  %v1230_v21 = vmul.f32 %v5701_v51, %v3876_v7  ;;  %v908_v38 = vadd.f32 %v780_v62, %v459_v53 }
 0x12c   :  { %v909_v16 = vadd.f32 %v781_v22, %v460_v26  ;;  %v1678_v6 = vmul.f32 %v5702_v27, %v3911_v33  ;;  %v1679_v8 = vmul.f32 %v5703_v42, %v3911_v33  ;;  %v2321_v25 = vadd.f32 %v2215_v28, %v2214_v35 }
 0x12d   :  { %v1973_v48 = vmax.f32 %v1845_v20, 1e-06  ;;  %v2100_v2 = vmul.f32 %v1972_v39, %v1972_v39  ;;  %v371_v32 = vmul.f32 %v5684_v30, %v5693_v17  ;;  %v1357_v18 = vadd.f32 %v1229_v10, %v908_v38 }
 0x12e   :  { %v1358_v45 = vadd.f32 %v1230_v21, %v909_v16  ;;  %v372_v12 = vmul.f32 %v5686_v56, %v5693_v17  ;;  %v820_v62 = vmul.f32 %v5687_v34, %v5695_v9  ;;  %2322 = vadd.xlane.f32.xlu1 %v2321_v25  ;;  %v821_v20 = vmul.f32 %v5688_v36, %v5695_v9 }
 0x12f   :  { %v2101_v47 = vmul.f32 %v1973_v48, %v1973_v48  ;;  %v2228_v1 = vmul.f32 %v2100_v2, %v1972_v39  ;;  %v499_v22 = vadd.f32 %v371_v32, %v5694_v31  ;;  %v1806_v28 = vadd.f32 %v1678_v6, %v1357_v18 }
 0x130   :  { %v1807_v35 = vadd.f32 %v1679_v8, %v1358_v45  ;;  %v500_v53 = vadd.f32 %v372_v12, %v5694_v31  ;;  %v1269_v38 = vmul.f32 %v5689_v5, %v4233_v50  ;;  %v1270_v26 = vmul.f32 %v5690_v19, %v4233_v50  ;;  %v5707_v19 = vld [vmem:[#allocation39_spill] sm:$0xff] }
 0x131   :  { %v2229_v21 = vmul.f32 %v2101_v47, %v1973_v48  ;;  %v948_v10 = vadd.f32 %v820_v62, %v499_v22  ;;  %v1718_v39 = vmul.f32 %v5691_v3, %v4297_v24  ;;  %v1934_v16 = vmax.f32 %v1806_v28, 1e-06  ;;  %v5705_v3 = vld [vmem:[#allocation25_spill] sm:$0xff] }
 0x132   :  { %v1935_v32 = vmax.f32 %v1807_v35, 1e-06  ;;  %v949_v25 = vadd.f32 %v821_v20, %v500_v53  ;;  %v1719_v6 = vmul.f32 %v5692_v52, %v4297_v24  ;;  %v357_v18 = vmul.f32 %v5629_v58, %v5672_v46 }
 0x133   :  { %v2291_v8 = vadd.f32 %v2229_v21, %v2228_v1  ;;  %v1397_v2 = vadd.f32 %v1269_v38, %v948_v10  ;;  %v358_v48 = vmul.f32 %v5630_v4, %v5672_v46  ;;  %v2062_v45 = vmul.f32 %v1934_v16, %v1934_v16  ;;  %v5704_v21 = vld [vmem:[#allocation24_spill] sm:$0xff] }
 0x134   :  { %v2063_v12 = vmul.f32 %v1935_v32, %v1935_v32  ;;  %v1398_v62 = vadd.f32 %v1270_v26, %v949_v25  ;;  %v806_v47 = vmul.f32 %v5631_v29, %v5675_v59  ;;  %v485_v20 = vadd.f32 %v357_v18, %v5678_v55  ;;  %v5706_v18 = vld [vmem:[#allocation38_spill] sm:$0xff] }
 0x135   :  { %2292 = vadd.xlane.f32.xlu0 %v2291_v8  ;;  %v1846_v22 = vadd.f32 %v1718_v39, %v1397_v2  ;;  %v486_v28 = vadd.f32 %v358_v48, %v5678_v55  ;;  %v807_v1 = vmul.f32 %v5632_v43, %v5675_v59  ;;  %v2190_v35 = vmul.f32 %v2062_v45, %v1934_v16 }
 0x136   :  { %v2191_v53 = vmul.f32 %v2063_v12, %v1935_v32  ;;  %v1847_v38 = vadd.f32 %v1719_v6, %v1398_v62  ;;  %v1255_v10 = vmul.f32 %v5704_v21, %v4162_v44  ;;  %v934_v26 = vadd.f32 %v806_v47, %v485_v20 }
 0x137   :  { %v1974_v52 = vmax.f32 %v1846_v22, 1e-06  ;;  %v935_v25 = vadd.f32 %v807_v1, %v486_v28  ;;  %v1256_v8 = vmul.f32 %v5705_v3, %v4162_v44  ;;  %v1704_v48 = vmul.f32 %v5706_v18, %v4235_v61 }
 0x138   :  { %v2443_v39 = vadd.f32 %v2191_v53, %v2190_v35  ;;  %v1975_v2 = vmax.f32 %v1847_v38, 1e-06  ;;  %v1705_v5 = vmul.f32 %v5707_v19, %v4235_v61  ;;  %v1383_v32 = vadd.f32 %v1255_v10, %v934_v26 }
 0x139   :  { %v2102_v16 = vmul.f32 %v1974_v52, %v1974_v52  ;;  %v1384_v6 = vadd.f32 %v1256_v8, %v935_v25  ;;  %v347_v45 = vmul.f32 %v5696_v40, %v5610_v37  ;;  %v348_v62 = vmul.f32 %v5697_v23, %v5610_v37  ;;  %v5714_v23 = vld [vmem:[#allocation72_spill] sm:$0xff] }
 0x13a   :  { %2444 = vadd.xlane.f32.xlu1 %v2443_v39  ;;  %v2103_v12 = vmul.f32 %v1975_v2, %v1975_v2  ;;  %v796_v47 = vmul.f32 %v5698_v41, %v5613_v11  ;;  %v797_v22 = vmul.f32 %v5699_v14, %v5613_v11  ;;  %v1832_v28 = vadd.f32 %v1704_v48, %v1383_v32 }
 0x13b   :  { %v2230_v20 = vmul.f32 %v2102_v16, %v1974_v52  ;;  %v1833_v1 = vadd.f32 %v1705_v5, %v1384_v6  ;;  %v475_v35 = vadd.f32 %v347_v45, %v5616_v57  ;;  %v476_v38 = vadd.f32 %v348_v62, %v5616_v57 }
 0x13c   :  { %v2231_v53 = vmul.f32 %v2103_v12, %v1975_v2  ;;  %v1245_v10 = vmul.f32 %v5700_v15, %v3906_v54  ;;  %v1246_v26 = vmul.f32 %v5701_v51, %v3906_v54  ;;  %v1960_v25 = vmax.f32 %v1832_v28, 1e-06  ;;  %v5708_v2 = vld [vmem:[#allocation60_spill] sm:$0xff]  ;;  %v5709_v12 = vld [vmem:[#allocation61_spill] sm:$0xff] }
 0x13d   :  { %v1961_v8 = vmax.f32 %v1833_v1, 1e-06  ;;  %v924_v39 = vadd.f32 %v796_v47, %v475_v35  ;;  %v1694_v14 = vmul.f32 %v5702_v27, %v3970_v60  ;;  %v925_v48 = vadd.f32 %v797_v22, %v476_v38  ;;  %v5710_v1 = vld [vmem:[#allocation64_spill] sm:$0xff]  ;;  %v5711_v22 = vld [vmem:[#allocation65_spill] sm:$0xff] }
 0x13e   :  { %v2324_v52 = vadd.f32 %v2231_v53, %v2230_v20  ;;  %v1695_v5 = vmul.f32 %v5703_v42, %v3970_v60  ;;  %v333_v16 = vmul.f32 %v5708_v2, %v5600_v0  ;;  %v2088_v32 = vmul.f32 %v1960_v25, %v1960_v25 }
 0x13f   :  { %v2089_v6 = vmul.f32 %v1961_v8, %v1961_v8  ;;  %v1373_v45 = vadd.f32 %v1245_v10, %v924_v39  ;;  %v334_v62 = vmul.f32 %v5709_v12, %v5600_v0  ;;  %v1374_v28 = vadd.f32 %v1246_v26, %v925_v48  ;;  %v5712_v39 = vld [vmem:[#allocation66_spill] sm:$0xff]  ;;  %v5713_v26 = vld [vmem:[#allocation67_spill] sm:$0xff] }
 0x140   :  { %2325 = vadd.xlane.f32.xlu0 %v2324_v52  ;;  %v461_v47 = vadd.f32 %v333_v16, %v5606_v63  ;;  %v782_v20 = vmul.f32 %v5710_v1, %v5604_v49  ;;  %v783_v35 = vmul.f32 %v5711_v22, %v5604_v49  ;;  %v2216_v53 = vmul.f32 %v2088_v32, %v1960_v25 }
 0x141   :  { %v2217_v38 = vmul.f32 %v2089_v6, %v1961_v8  ;;  %v1822_v42 = vadd.f32 %v1694_v14, %v1373_v45  ;;  %v462_v27 = vadd.f32 %v334_v62, %v5606_v63  ;;  %v1823_v51 = vadd.f32 %v1695_v5, %v1374_v28  ;;  %v5715_v14 = vld [vmem:[#allocation73_spill] sm:$0xff] }
 0x142   :  { %v910_v10 = vadd.f32 %v782_v20, %v461_v47  ;;  %v1231_v15 = vmul.f32 %v5712_v39, %v3876_v7  ;;  %v1232_v52 = vmul.f32 %v5713_v26, %v3876_v7  ;;  %v1680_v40 = vmul.f32 %v5714_v23, %v3911_v33 }
 0x143   :  { %v2353_v48 = vadd.f32 %v2217_v38, %v2216_v53  ;;  %v1950_v16 = vmax.f32 %v1822_v42, 1e-06  ;;  %v911_v41 = vadd.f32 %v783_v35, %v462_v27  ;;  %v1951_v36 = vmax.f32 %v1823_v51, 1e-06 }
 0x144   :  { %v1359_v25 = vadd.f32 %v1231_v15, %v910_v10  ;;  %v1681_v8 = vmul.f32 %v5715_v14, %v3911_v33  ;;  %v373_v5 = vmul.f32 %v5629_v58, %v5693_v17  ;;  %v374_v45 = vmul.f32 %v5630_v4, %v5693_v17 }
 0x145   :  { %2354 = vadd.xlane.f32.xlu1 %v2353_v48  ;;  %v2078_v32 = vmul.f32 %v1950_v16, %v1950_v16  ;;  %v1360_v6 = vadd.f32 %v1232_v52, %v911_v41  ;;  %v822_v27 = vmul.f32 %v5631_v29, %v5695_v9  ;;  %v2079_v42 = vmul.f32 %v1951_v36, %v1951_v36 }
 0x146   :  { %v1808_v62 = vadd.f32 %v1680_v40, %v1359_v25  ;;  %v501_v51 = vadd.f32 %v373_v5, %v5694_v31  ;;  %v823_v15 = vmul.f32 %v5632_v43, %v5695_v9  ;;  %v502_v20 = vadd.f32 %v374_v45, %v5694_v31  ;;  %v5716_v45 = vld [vmem:[#allocation33_spill] sm:$0xff] }
 0x147   :  { %v2206_v28 = vmul.f32 %v2078_v32, %v1950_v16  ;;  %v1809_v47 = vadd.f32 %v1681_v8, %v1360_v6  ;;  %v1271_v41 = vmul.f32 %v5704_v21, %v4233_v50  ;;  %v2207_v35 = vmul.f32 %v2079_v42, %v1951_v36  ;;  %v5717_v42 = vld [vmem:[#allocation36_spill] sm:$0xff] }
 0x148   :  { %v1936_v53 = vmax.f32 %v1808_v62, 1e-06  ;;  %v950_v38 = vadd.f32 %v822_v27, %v501_v51  ;;  %v1272_v10 = vmul.f32 %v5705_v3, %v4233_v50  ;;  %v951_v40 = vadd.f32 %v823_v15, %v502_v20  ;;  %v5720_v3 = vld [vmem:[#allocation43_spill] sm:$0xff] }
 0x149   :  { %v1937_v52 = vmax.f32 %v1809_v47, 1e-06  ;;  %v1720_v48 = vmul.f32 %v5706_v18, %v4297_v24  ;;  %v1721_v16 = vmul.f32 %v5707_v19, %v4297_v24  ;;  %v2446_v25 = vadd.f32 %v2207_v35, %v2206_v28  ;;  %v5718_v28 = vld [vmem:[#allocation37_spill] sm:$0xff] }
 0x14a   :  { %v2064_v8 = vmul.f32 %v1936_v53, %v1936_v53  ;;  %v1399_v5 = vadd.f32 %v1271_v41, %v950_v38  ;;  %v359_v32 = vmul.f32 %v5644_v13, %v5672_v46  ;;  %v1400_v6 = vadd.f32 %v1272_v10, %v951_v40  ;;  %v5719_v10 = vld [vmem:[#allocation42_spill] sm:$0xff] }
 0x14b   :  { %v2065_v36 = vmul.f32 %v1937_v52, %v1937_v52  ;;  %v360_v27 = vmul.f32 %v5716_v45, %v5672_v46  ;;  %v808_v62 = vmul.f32 %v5717_v42, %v5675_v59  ;;  %2447 = vadd.xlane.f32.xlu0 %v2446_v25  ;;  %v809_v20 = vmul.f32 %v5718_v28, %v5675_v59 }
 0x14c   :  { %v2192_v51 = vmul.f32 %v2064_v8, %v1936_v53  ;;  %v1848_v15 = vadd.f32 %v1720_v48, %v1399_v5  ;;  %v487_v47 = vadd.f32 %v359_v32, %v5678_v55  ;;  %v1849_v35 = vadd.f32 %v1721_v16, %v1400_v6  ;;  %v5721_v53 = vld [vmem:[#allocation44_spill] sm:$0xff]  ;;  %v5722_v32 = vld [vmem:[#allocation45_spill] sm:$0xff] }
 0x14d   :  { %v2193_v41 = vmul.f32 %v2065_v36, %v1937_v52  ;;  %v488_v38 = vadd.f32 %v360_v27, %v5678_v55  ;;  %v1257_v40 = vmul.f32 %v5719_v10, %v4162_v44  ;;  %v1258_v21 = vmul.f32 %v5720_v3, %v4162_v44 }
 0x14e   :  { %v1976_v19 = vmax.f32 %v1848_v15, 1e-06  ;;  %v936_v18 = vadd.f32 %v808_v62, %v487_v47  ;;  %v1706_v48 = vmul.f32 %v5721_v53, %v4235_v61  ;;  %v1977_v8 = vmax.f32 %v1849_v35, 1e-06 }
 0x14f   :  { %v2475_v25 = vadd.f32 %v2193_v41, %v2192_v51  ;;  %v937_v5 = vadd.f32 %v809_v20, %v488_v38  ;;  %v1707_v52 = vmul.f32 %v5722_v32, %v4235_v61  ;;  %v349_v6 = vmul.f32 %v5708_v2, %v5610_v37  ;;  %v5729_v2 = vld [vmem:[#allocation80_spill] sm:$0xff] }
 0x150   :  { %v2104_v16 = vmul.f32 %v1976_v19, %v1976_v19  ;;  %v1385_v36 = vadd.f32 %v1257_v40, %v936_v18  ;;  %v350_v27 = vmul.f32 %v5709_v12, %v5610_v37  ;;  %v2105_v62 = vmul.f32 %v1977_v8, %v1977_v8 }
 0x151   :  { %2476 = vadd.xlane.f32.xlu1 %v2475_v25  ;;  %v1386_v15 = vadd.f32 %v1258_v21, %v937_v5  ;;  %v798_v47 = vmul.f32 %v5710_v1, %v5613_v11  ;;  %v799_v51 = vmul.f32 %v5711_v22, %v5613_v11  ;;  %v477_v35 = vadd.f32 %v349_v6, %v5616_v57 }
 0x152   :  { %v2232_v20 = vmul.f32 %v2104_v16, %v1976_v19  ;;  %v1834_v41 = vadd.f32 %v1706_v48, %v1385_v36  ;;  %v478_v18 = vadd.f32 %v350_v27, %v5616_v57  ;;  %v2233_v38 = vmul.f32 %v2105_v62, %v1977_v8  ;;  %v5723_v8 = vld [vmem:[#allocation68_spill] sm:$0xff]  ;;  %v5724_v62 = vld [vmem:[#allocation69_spill] sm:$0xff] }
 0x153   :  { %v1835_v40 = vadd.f32 %v1707_v52, %v1386_v15  ;;  %v1247_v12 = vmul.f32 %v5712_v39, %v3906_v54  ;;  %v1248_v21 = vmul.f32 %v5713_v26, %v3906_v54  ;;  %v926_v5 = vadd.f32 %v798_v47, %v477_v35  ;;  %v5726_v35 = vld [vmem:[#allocation75_spill] sm:$0xff] }
 0x154   :  { %v1962_v25 = vmax.f32 %v1834_v41, 1e-06  ;;  %v927_v1 = vadd.f32 %v799_v51, %v478_v18  ;;  %v1696_v22 = vmul.f32 %v5714_v23, %v3970_v60  ;;  %v2356_v19 = vadd.f32 %v2233_v38, %v2232_v20  ;;  %v5725_v41 = vld [vmem:[#allocation74_spill] sm:$0xff] }
 0x155   :  { %v1963_v48 = vmax.f32 %v1835_v40, 1e-06  ;;  %v1697_v16 = vmul.f32 %v5715_v14, %v3970_v60  ;;  %v335_v52 = vmul.f32 %v5723_v8, %v5600_v0  ;;  %v1375_v6 = vadd.f32 %v1247_v12, %v926_v5  ;;  %v5728_v5 = vld [vmem:[#allocation83_spill] sm:$0xff] }
 0x156   :  { %v2090_v36 = vmul.f32 %v1962_v25, %v1962_v25  ;;  %v1376_v27 = vadd.f32 %v1248_v21, %v927_v1  ;;  %v336_v15 = vmul.f32 %v5724_v62, %v5600_v0  ;;  %2357 = vadd.xlane.f32.xlu0 %v2356_v19  ;;  %v784_v20 = vmul.f32 %v5725_v41, %v5604_v49  ;;  %v5727_v21 = vld [vmem:[#allocation79_spill] sm:$0xff] }
 0x157   :  { %v2091_v47 = vmul.f32 %v1963_v48, %v1963_v48  ;;  %v463_v51 = vadd.f32 %v335_v52, %v5606_v63  ;;  %v785_v18 = vmul.f32 %v5726_v35, %v5604_v49  ;;  %v1824_v40 = vadd.f32 %v1696_v22, %v1375_v6  ;;  %v5730_v22 = vld [vmem:[#allocation86_spill] sm:$0xff] }
 0x158   :  { %v2218_v38 = vmul.f32 %v2090_v36, %v1962_v25  ;;  %v1825_v14 = vadd.f32 %v1697_v16, %v1376_v27  ;;  %v464_v23 = vadd.f32 %v336_v15, %v5606_v63  ;;  %v1233_v0 = vmul.f32 %v5727_v21, %v3876_v7 }
 0x159   :  { %v2219_v12 = vmul.f32 %v2091_v47, %v1963_v48  ;;  %v912_v1 = vadd.f32 %v784_v20, %v463_v51  ;;  %v1234_v19 = vmul.f32 %v5728_v5, %v3876_v7  ;;  %v1952_v52 = vmax.f32 %v1824_v40, 1e-06 }
 0x15a   :  { %v1953_v26 = vmax.f32 %v1825_v14, 1e-06  ;;  %v913_v39 = vadd.f32 %v785_v18, %v464_v23  ;;  %v1682_v43 = vmul.f32 %v5729_v2, %v3911_v33  ;;  %v1683_v16 = vmul.f32 %v5730_v22, %v3911_v33 }
 0x15b   :  { %v2385_v49 = vadd.f32 %v2219_v12, %v2218_v38  ;;  %v1361_v25 = vadd.f32 %v1233_v0, %v912_v1  ;;  %v375_v63 = vmul.f32 %v5644_v13, %v5693_v17  ;;  %v2080_v48 = vmul.f32 %v1952_v52, %v1952_v52 }
 0x15c   :  { %v2081_v36 = vmul.f32 %v1953_v26, %v1953_v26  ;;  %v1362_v6 = vadd.f32 %v1234_v19, %v913_v39  ;;  %v376_v7 = vmul.f32 %v5716_v45, %v5693_v17  ;;  %v824_v27 = vmul.f32 %v5717_v42, %v5695_v9 }
 0x15d   :  { %2386 = vadd.xlane.f32.xlu1 %v2385_v49  ;;  %v1810_v14 = vadd.f32 %v1682_v43, %v1361_v25  ;;  %v503_v23 = vadd.f32 %v375_v63, %v5694_v31  ;;  %v825_v15 = vmul.f32 %v5718_v28, %v5695_v9  ;;  %v2208_v33 = vmul.f32 %v2080_v48, %v1952_v52  ;;  %v5731_v49 = vld [vmem:[#allocation46_spill] sm:$0xff]  ;;  %v5732_v48 = vld [vmem:[#allocation47_spill] sm:$0xff] }
 0x15e   :  { %v2209_v47 = vmul.f32 %v2081_v36, %v1953_v26  ;;  %v1811_v51 = vadd.f32 %v1683_v16, %v1362_v6  ;;  %v504_v20 = vadd.f32 %v376_v7, %v5694_v31  ;;  %v1273_v38 = vmul.f32 %v5719_v10, %v4233_v50  ;;  %v5733_v6 = vld [vmem:[#allocation48_spill] sm:$0xff] }
 0x15f   :  { %v1938_v18 = vmax.f32 %v1810_v14, 1e-06  ;;  %v952_v39 = vadd.f32 %v824_v27, %v503_v23  ;;  %v1274_v43 = vmul.f32 %v5720_v3, %v4233_v50  ;;  %v1722_v0 = vmul.f32 %v5721_v53, %v4297_v24  ;;  %v5738_v53 = vld [vmem:[#allocation53_spill] sm:$0xff]  ;;  %v5748_v3 = vld [vmem:[#allocation34_spill] sm:$0xff] }
 0x160   :  { %v2478_v40 = vadd.f32 %v2209_v47, %v2208_v33  ;;  %v1939_v12 = vmax.f32 %v1811_v51, 1e-06  ;;  %v953_v1 = vadd.f32 %v825_v15, %v504_v20  ;;  %v1723_v26 = vmul.f32 %v5722_v32, %v4297_v24  ;;  %v5734_v15 = vld [vmem:[#allocation49_spill] sm:$0xff] }
 0x161   :  { %v2066_v19 = vmul.f32 %v1938_v18, %v1938_v18  ;;  %v1401_v52 = vadd.f32 %v1273_v38, %v952_v39  ;;  %v361_v25 = vmul.f32 %v5731_v49, %v5672_v46  ;;  %v362_v36 = vmul.f32 %v5732_v48, %v5672_v46  ;;  %v5735_v39 = vld [vmem:[#allocation50_spill] sm:$0xff] }
 0x162   :  { %2479 = vadd.xlane.f32.xlu0 %v2478_v40  ;;  %v2067_v16 = vmul.f32 %v1939_v12, %v1939_v12  ;;  %v1402_v63 = vadd.f32 %v1274_v43, %v953_v1  ;;  %v810_v7 = vmul.f32 %v5733_v6, %v5675_v59  ;;  %v811_v33 = vmul.f32 %v5734_v15, %v5675_v59  ;;  %v5736_v1 = vld [vmem:[#allocation51_spill] sm:$0xff] }
 0x163   :  { %v2194_v14 = vmul.f32 %v2066_v19, %v1938_v18  ;;  %v1850_v23 = vadd.f32 %v1722_v0, %v1401_v52  ;;  %v489_v27 = vadd.f32 %v361_v25, %v5678_v55  ;;  %v490_v20 = vadd.f32 %v362_v36, %v5678_v55  ;;  %v5737_v18 = vld [vmem:[#allocation52_spill] sm:$0xff] }
 0x164   :  { %v2195_v47 = vmul.f32 %v2067_v16, %v1939_v12  ;;  %v1851_v51 = vadd.f32 %v1723_v26, %v1402_v63  ;;  %v1259_v38 = vmul.f32 %v5735_v39, %v4162_v44  ;;  %v1260_v32 = vmul.f32 %v5736_v1, %v4162_v44 }
 0x165   :  { %v1978_v43 = vmax.f32 %v1850_v23, 1e-06  ;;  %v938_v40 = vadd.f32 %v810_v7, %v489_v27  ;;  %v1708_v0 = vmul.f32 %v5737_v18, %v4235_v61  ;;  %v939_v25 = vadd.f32 %v811_v33, %v490_v20  ;;  %v4517_v7 = vpop.permute.xlu0 %1035 }
 0x166   :  { %v2507_v19 = vadd.f32 %v2195_v47, %v2194_v14  ;;  %v1979_v52 = vmax.f32 %v1851_v51, 1e-06  ;;  %v1709_v12 = vmul.f32 %v5738_v53, %v4235_v61  ;;  %v351_v63 = vmul.f32 %v5723_v8, %v5610_v37 }
 0x167   :  { %v2106_v26 = vmul.f32 %v1978_v43, %v1978_v43  ;;  %v1387_v16 = vadd.f32 %v1259_v38, %v938_v40  ;;  %v352_v36 = vmul.f32 %v5724_v62, %v5610_v37  ;;  %v1388_v27 = vadd.f32 %v1260_v32, %v939_v25 }
 0x168   :  { %2508 = vadd.xlane.f32.xlu1 %v2507_v19  ;;  %v2107_v23 = vmul.f32 %v1979_v52, %v1979_v52  ;;  %v800_v14 = vmul.f32 %v5725_v41, %v5613_v11  ;;  %v801_v33 = vmul.f32 %v5726_v35, %v5613_v11  ;;  %v479_v20 = vadd.f32 %v351_v63, %v5616_v57 }
 0x169   :  { %v2234_v47 = vmul.f32 %v2106_v26, %v1978_v43  ;;  %v1836_v51 = vadd.f32 %v1708_v0, %v1387_v16  ;;  %v480_v38 = vadd.f32 %v352_v36, %v5616_v57  ;;  %v1837_v8 = vadd.f32 %v1709_v12, %v1388_v27  ;;  %v5739_v57 = vld [vmem:[#allocation89_spill] sm:$0xff]  ;;  %v4537_v27 = vpop.permute.xlu0 %1484 }
 0x16a   :  { %v2235_v40 = vmul.f32 %v2107_v23, %v1979_v52  ;;  %v1249_v37 = vmul.f32 %v5727_v21, %v3906_v54  ;;  %v1250_v32 = vmul.f32 %v5728_v5, %v3906_v54  ;;  %v928_v25 = vadd.f32 %v800_v14, %v479_v20  ;;  %v5740_v52 = vld [vmem:[#allocation12_spill] sm:$0xff]  ;;  %v5741_v23 = vld [vmem:[#allocation13_spill] sm:$0xff] }
 0x16b   :  { %v1964_v19 = vmax.f32 %v1836_v51, 1e-06  ;;  %v929_v41 = vadd.f32 %v801_v33, %v480_v38  ;;  %v1698_v11 = vmul.f32 %v5729_v2, %v3970_v60  ;;  %v1965_v0 = vmax.f32 %v1837_v8, 1e-06  ;;  %v5742_v33 = vld [vmem:[#allocation84_spill] sm:$0xff]  ;;  %v5744_v8 = vld [vmem:[#allocation14_spill] sm:$0xff] }
 0x16c   :  { %v2388_v43 = vadd.f32 %v2235_v40, %v2234_v47  ;;  %v1699_v26 = vmul.f32 %v5730_v22, %v3970_v60  ;;  %v385_v12 = vmul.f32 %v5740_v52, %v5739_v57  ;;  %v1377_v63 = vadd.f32 %v1249_v37, %v928_v25  ;;  %v5743_v47 = vld [vmem:[#allocation87_spill] sm:$0xff]  ;;  %v5746_v25 = vld [vmem:[#allocation16_spill] sm:$0xff] }
 0x16d   :  { %v2092_v16 = vmul.f32 %v1964_v19, %v1964_v19  ;;  %v1378_v36 = vadd.f32 %v1250_v32, %v929_v41  ;;  %v386_v54 = vmul.f32 %v5741_v23, %v5739_v57  ;;  %v2093_v14 = vmul.f32 %v1965_v0, %v1965_v0  ;;  %v5745_v60 = vld [vmem:[#allocation15_spill] sm:$0xff] }
 0x16e   :  { %2389 = vadd.xlane.f32.xlu0 %v2388_v43  ;;  %v513_v51 = vadd.f32 %v385_v12, %v5742_v33  ;;  %v834_v20 = vmul.f32 %v5744_v8, %v5743_v47  ;;  %v835_v38 = vmul.f32 %v5745_v60, %v5743_v47  ;;  %v1826_v22 = vadd.f32 %v1698_v11, %v1377_v63  ;;  %v5747_v43 = vld [vmem:[#allocation17_spill] sm:$0xff]  ;;  %v5749_v11 = vld [vmem:[#allocation35_spill] sm:$0xff] }
 0x16f   :  { %v2220_v40 = vmul.f32 %v2092_v16, %v1964_v19  ;;  %v1827_v2 = vadd.f32 %v1699_v26, %v1378_v36  ;;  %v514_v41 = vadd.f32 %v386_v54, %v5742_v33  ;;  %v2221_v37 = vmul.f32 %v2093_v14, %v1965_v0 }
 0x170   :  { %v962_v32 = vadd.f32 %v834_v20, %v513_v51  ;;  %v1283_v5 = vmul.f32 %v5746_v25, %v4517_v7  ;;  %v1284_v21 = vmul.f32 %v5747_v43, %v4517_v7  ;;  %v1954_v12 = vmax.f32 %v1826_v22, 1e-06 }
 0x171   :  { %v1955_v35 = vmax.f32 %v1827_v2, 1e-06  ;;  %v963_v62 = vadd.f32 %v835_v38, %v514_v41  ;;  %v1732_v10 = vmul.f32 %v5748_v3, %v4537_v27  ;;  %v2417_v28 = vadd.f32 %v2221_v37, %v2220_v40 }
 0x172   :  { %v1411_v19 = vadd.f32 %v1283_v5, %v962_v32  ;;  %v1733_v26 = vmul.f32 %v5749_v11, %v4537_v27  ;;  %v377_v0 = vmul.f32 %v5731_v49, %v5693_v17  ;;  %v2082_v16 = vmul.f32 %v1954_v12, %v1954_v12  ;;  %v5764_v49 = vld [vmem:[#allocation62_spill] sm:$0xff] }
 0x173   :  { %v2083_v63 = vmul.f32 %v1955_v35, %v1955_v35  ;;  %v1412_v36 = vadd.f32 %v1284_v21, %v963_v62  ;;  %v378_v54 = vmul.f32 %v5732_v48, %v5693_v17  ;;  %2418 = vadd.xlane.f32.xlu1 %v2417_v28  ;;  %v826_v14 = vmul.f32 %v5733_v6, %v5695_v9 }
 0x174   :  { %v1860_v2 = vadd.f32 %v1732_v10, %v1411_v19  ;;  %v505_v22 = vadd.f32 %v377_v0, %v5694_v31  ;;  %v827_v5 = vmul.f32 %v5734_v15, %v5695_v9  ;;  %v2210_v51 = vmul.f32 %v2082_v16, %v1954_v12  ;;  %v4573_v16 = vpop.permute.xlu1 %1040  ;;  %v5756_v15 = vld [vmem:[#allocation70_spill] sm:$0xff] }
 0x175   :  { %v2211_v20 = vmul.f32 %v2083_v63, %v1955_v35  ;;  %v1861_v38 = vadd.f32 %v1733_v26, %v1412_v36  ;;  %v506_v40 = vadd.f32 %v378_v54, %v5694_v31  ;;  %v1275_v21 = vmul.f32 %v5735_v39, %v4233_v50 }
 0x176   :  { %v1988_v41 = vmax.f32 %v1860_v2, 1e-06  ;;  %v954_v62 = vadd.f32 %v826_v14, %v505_v22  ;;  %v1276_v28 = vmul.f32 %v5736_v1, %v4233_v50  ;;  %v1724_v19 = vmul.f32 %v5737_v18, %v4297_v24  ;;  %v5754_v1 = vld [vmem:[#allocation41_spill] sm:$0xff] }
 0x177   :  { %v2510_v10 = vadd.f32 %v2211_v20, %v2210_v51  ;;  %v1989_v37 = vmax.f32 %v1861_v38, 1e-06  ;;  %v955_v32 = vadd.f32 %v827_v5, %v506_v40  ;;  %v1725_v35 = vmul.f32 %v5738_v53, %v4297_v24  ;;  %v5750_v51 = vld [vmem:[#allocation29_spill] sm:$0xff]  ;;  %v5752_v53 = vld [vmem:[#allocation31_spill] sm:$0xff] }
 0x178   :  { %v2116_v0 = vmul.f32 %v1988_v41, %v1988_v41  ;;  %v1403_v12 = vadd.f32 %v1275_v21, %v954_v62  ;;  %v387_v26 = vmul.f32 %v5684_v30, %v5739_v57  ;;  %v388_v54 = vmul.f32 %v5686_v56, %v5739_v57  ;;  %v5751_v21 = vld [vmem:[#allocation30_spill] sm:$0xff] }
 0x179   :  { %2511 = vadd.xlane.f32.xlu0 %v2510_v10  ;;  %v2117_v63 = vmul.f32 %v1989_v37, %v1989_v37  ;;  %v1404_v36 = vadd.f32 %v1276_v28, %v955_v32  ;;  %v836_v2 = vmul.f32 %v5687_v34, %v5743_v47  ;;  %v837_v20 = vmul.f32 %v5750_v51, %v5743_v47 }
 0x17a   :  { %v2244_v22 = vmul.f32 %v2116_v0, %v1988_v41  ;;  %v1852_v14 = vadd.f32 %v1724_v19, %v1403_v12  ;;  %v515_v5 = vadd.f32 %v387_v26, %v5742_v33  ;;  %v516_v62 = vadd.f32 %v388_v54, %v5742_v33  ;;  %v5753_v41 = vld [vmem:[#allocation40_spill] sm:$0xff] }
 0x17b   :  { %v2245_v38 = vmul.f32 %v2117_v63, %v1989_v37  ;;  %v1853_v40 = vadd.f32 %v1725_v35, %v1404_v36  ;;  %v1285_v28 = vmul.f32 %v5751_v21, %v4517_v7  ;;  %v1286_v18 = vmul.f32 %v5752_v53, %v4517_v7  ;;  %v5755_v36 = vld [vmem:[#allocation81_spill] sm:$0xff] }
 0x17c   :  { %v1980_v10 = vmax.f32 %v1852_v14, 1e-06  ;;  %v964_v32 = vadd.f32 %v836_v2, %v515_v5  ;;  %v1734_v19 = vmul.f32 %v5753_v41, %v4537_v27  ;;  %v965_v26 = vadd.f32 %v837_v20, %v516_v62  ;;  %v4595_v14 = vpop.permute.xlu1 %1489  ;;  %v5757_v62 = vld [vmem:[#allocation85_spill] sm:$0xff] }
 0x17d   :  { %v2294_v0 = vadd.f32 %v2245_v38, %v2244_v22  ;;  %v1981_v12 = vmax.f32 %v1853_v40, 1e-06  ;;  %v1735_v37 = vmul.f32 %v5754_v1, %v4537_v27  ;;  %v401_v54 = vmul.f32 %v5740_v52, %v5755_v36 }
 0x17e   :  { %v2108_v35 = vmul.f32 %v1980_v10, %v1980_v10  ;;  %v1413_v63 = vadd.f32 %v1285_v28, %v964_v32  ;;  %v402_v2 = vmul.f32 %v5741_v23, %v5755_v36  ;;  %v1414_v39 = vadd.f32 %v1286_v18, %v965_v26 }
 0x17f   :  { %2295 = vadd.xlane.f32.xlu1 %v2294_v0  ;;  %v2109_v5 = vmul.f32 %v1981_v12, %v1981_v12  ;;  %v850_v22 = vmul.f32 %v5744_v8, %v5756_v15  ;;  %v851_v20 = vmul.f32 %v5745_v60, %v5756_v15  ;;  %v529_v28 = vadd.f32 %v401_v54, %v5757_v62  ;;  %v5759_v54 = vld [vmem:[#allocation55_spill] sm:$0xff] }
 0x180   :  { %v2236_v38 = vmul.f32 %v2108_v35, %v1980_v10  ;;  %v1862_v40 = vadd.f32 %v1734_v19, %v1413_v63  ;;  %v530_v52 = vadd.f32 %v402_v2, %v5757_v62  ;;  %v1863_v6 = vadd.f32 %v1735_v37, %v1414_v39 }
 0x181   :  { %v2237_v32 = vmul.f32 %v2109_v5, %v1981_v12  ;;  %v1299_v23 = vmul.f32 %v5746_v25, %v4573_v16  ;;  %v1300_v18 = vmul.f32 %v5747_v43, %v4573_v16  ;;  %v978_v26 = vadd.f32 %v850_v22, %v529_v28  ;;  %v5758_v12 = vld [vmem:[#allocation54_spill] sm:$0xff] }
 0x182   :  { %v1990_v0 = vmax.f32 %v1862_v40, 1e-06  ;;  %v979_v8 = vadd.f32 %v851_v20, %v530_v52  ;;  %v1748_v60 = vmul.f32 %v5748_v3, %v4595_v14  ;;  %v1991_v19 = vmax.f32 %v1863_v6, 1e-06  ;;  %v5760_v3 = vld [vmem:[#allocation56_spill] sm:$0xff]  ;;  %v5761_v6 = vld [vmem:[#allocation57_spill] sm:$0xff] }
 0x183   :  { %v2420_v10 = vadd.f32 %v2237_v32, %v2236_v38  ;;  %v1749_v35 = vmul.f32 %v5749_v11, %v4595_v14  ;;  %v363_v39 = vmul.f32 %v5758_v12, %v5672_v46  ;;  %v1427_v63 = vadd.f32 %v1299_v23, %v978_v26  ;;  %v5762_v23 = vld [vmem:[#allocation58_spill] sm:$0xff]  ;;  %v5763_v26 = vld [vmem:[#allocation59_spill] sm:$0xff] }
 0x184   :  { %v2118_v37 = vmul.f32 %v1990_v0, %v1990_v0  ;;  %v1428_v25 = vadd.f32 %v1300_v18, %v979_v8  ;;  %v364_v43 = vmul.f32 %v5759_v54, %v5672_v46  ;;  %v2119_v2 = vmul.f32 %v1991_v19, %v1991_v19 }
 0x185   :  { %2421 = vadd.xlane.f32.xlu0 %v2420_v10  ;;  %v491_v5 = vadd.f32 %v363_v39, %v5678_v55  ;;  %v812_v22 = vmul.f32 %v5760_v3, %v5675_v59  ;;  %v813_v20 = vmul.f32 %v5761_v6, %v5675_v59  ;;  %v1876_v38 = vadd.f32 %v1748_v60, %v1427_v63  ;;  %v5765_v60 = vld [vmem:[#allocation63_spill] sm:$0xff] }
 0x186   :  { %v2246_v11 = vmul.f32 %v2118_v37, %v1990_v0  ;;  %v1877_v40 = vadd.f32 %v1749_v35, %v1428_v25  ;;  %v492_v28 = vadd.f32 %v364_v43, %v5678_v55  ;;  %v2247_v52 = vmul.f32 %v2119_v2, %v1991_v19 }
 0x187   :  { %v940_v32 = vadd.f32 %v812_v22, %v491_v5  ;;  %v1261_v18 = vmul.f32 %v5762_v23, %v4162_v44  ;;  %v1262_v8 = vmul.f32 %v5763_v26, %v4162_v44  ;;  %v2004_v10 = vmax.f32 %v1876_v38, 1e-06 }
 0x188   :  { %v2005_v39 = vmax.f32 %v1877_v40, 1e-06  ;;  %v941_v48 = vadd.f32 %v813_v20, %v492_v28  ;;  %v1710_v42 = vmul.f32 %v5764_v49, %v4235_v61  ;;  %v2327_v45 = vadd.f32 %v2247_v52, %v2246_v11 }
 0x189   :  { %v1389_v0 = vadd.f32 %v1261_v18, %v940_v32  ;;  %v1711_v35 = vmul.f32 %v5765_v60, %v4235_v61  ;;  %v403_v19 = vmul.f32 %v5684_v30, %v5755_v36  ;;  %v2132_v37 = vmul.f32 %v2004_v10, %v2004_v10 }
 0x18a   :  { %v2133_v63 = vmul.f32 %v2005_v39, %v2005_v39  ;;  %v1390_v25 = vadd.f32 %v1262_v8, %v941_v48  ;;  %v404_v43 = vmul.f32 %v5686_v56, %v5755_v36  ;;  %2328 = vadd.xlane.f32.xlu1 %v2327_v45  ;;  %v852_v22 = vmul.f32 %v5687_v34, %v5756_v15 }
 0x18b   :  { %v1838_v2 = vadd.f32 %v1710_v42, %v1389_v0  ;;  %v531_v5 = vadd.f32 %v403_v19, %v5757_v62  ;;  %v853_v20 = vmul.f32 %v5750_v51, %v5756_v15  ;;  %v2260_v11 = vmul.f32 %v2132_v37, %v2004_v10  ;;  %v4645_v51 = vpop.xlane.xlu0 %2277 }
 0x18c   :  { %v2261_v38 = vmul.f32 %v2133_v63, %v2005_v39  ;;  %v1839_v40 = vadd.f32 %v1711_v35, %v1390_v25  ;;  %v532_v30 = vadd.f32 %v404_v43, %v5757_v62  ;;  %v1301_v56 = vmul.f32 %v5751_v21, %v4573_v16  ;;  %5766 = vst [vmem:[#allocation78_spill] sm:$0xff] %v4645_v51  ;;  %v5767_v63 = vld [vmem:[#allocation23_spill] sm:$0xff] }
 0x18d   :  { %v1966_v28 = vmax.f32 %v1838_v2, 1e-06  ;;  %v980_v48 = vadd.f32 %v852_v22, %v531_v5  ;;  %v1302_v45 = vmul.f32 %v5752_v53, %v4573_v16  ;;  %v1750_v34 = vmul.f32 %v5753_v41, %v4595_v14  ;;  %v5768_v5 = vld [vmem:[#allocation24_spill] sm:$0xff] }
 0x18e   :  { %v2297_v42 = vadd.f32 %v2261_v38, %v2260_v11  ;;  %v1967_v52 = vmax.f32 %v1839_v40, 1e-06  ;;  %v981_v32 = vadd.f32 %v853_v20, %v532_v30  ;;  %v1751_v10 = vmul.f32 %v5754_v1, %v4595_v14  ;;  %v5769_v38 = vld [vmem:[#allocation25_spill] sm:$0xff]  ;;  %v5770_v30 = vld [vmem:[#allocation38_spill] sm:$0xff] }
 0x18f   :  { %v2094_v18 = vmul.f32 %v1966_v28, %v1966_v28  ;;  %v1429_v8 = vadd.f32 %v1301_v56, %v980_v48  ;;  %v389_v39 = vmul.f32 %v5629_v58, %v5739_v57  ;;  %v390_v53 = vmul.f32 %v5630_v4, %v5739_v57 }
 0x190   :  { %2298 = vadd.xlane.f32.xlu0 %v2297_v42  ;;  %v2095_v21 = vmul.f32 %v1967_v52, %v1967_v52  ;;  %v1430_v0 = vadd.f32 %v1302_v45, %v981_v32  ;;  %v838_v35 = vmul.f32 %v5631_v29, %v5743_v47  ;;  %v839_v25 = vmul.f32 %v5767_v63, %v5743_v47  ;;  %v5771_v42 = vld [vmem:[#allocation39_spill] sm:$0xff]  ;;  %v4667_v32 = vpop.xlane.xlu0 %2310 }
 0x191   :  { %v2222_v41 = vmul.f32 %v2094_v18, %v1966_v28  ;;  %v1878_v19 = vadd.f32 %v1750_v34, %v1429_v8  ;;  %v517_v37 = vadd.f32 %v389_v39, %v5742_v33  ;;  %v518_v2 = vadd.f32 %v390_v53, %v5742_v33  ;;  %5772 = vst [vmem:[#allocation71_spill] sm:$0xff] %v4667_v32 }
 0x192   :  { %v2223_v1 = vmul.f32 %v2095_v21, %v1967_v52  ;;  %v1879_v43 = vadd.f32 %v1751_v10, %v1430_v0  ;;  %v1287_v22 = vmul.f32 %v5768_v5, %v4517_v7  ;;  %v1288_v40 = vmul.f32 %v5769_v38, %v4517_v7 }
 0x193   :  { %v2006_v20 = vmax.f32 %v1878_v19, 1e-06  ;;  %v966_v11 = vadd.f32 %v838_v35, %v517_v37  ;;  %v1736_v28 = vmul.f32 %v5770_v30, %v4537_v27  ;;  %v967_v45 = vadd.f32 %v839_v25, %v518_v2 }
 0x194   :  { %v2449_v48 = vadd.f32 %v2223_v1, %v2222_v41  ;;  %v2007_v56 = vmax.f32 %v1879_v43, 1e-06  ;;  %v1737_v52 = vmul.f32 %v5771_v42, %v4537_v27  ;;  %v379_v8 = vmul.f32 %v5758_v12, %v5693_v17 }
 0x195   :  { %v2134_v34 = vmul.f32 %v2006_v20, %v2006_v20  ;;  %v1415_v18 = vadd.f32 %v1287_v22, %v966_v11  ;;  %v380_v10 = vmul.f32 %v5759_v54, %v5693_v17  ;;  %v1416_v21 = vadd.f32 %v1288_v40, %v967_v45 }
 0x196   :  { %2450 = vadd.xlane.f32.xlu1 %v2449_v48  ;;  %v2135_v39 = vmul.f32 %v2007_v56, %v2007_v56  ;;  %v828_v0 = vmul.f32 %v5760_v3, %v5695_v9  ;;  %v829_v53 = vmul.f32 %v5761_v6, %v5695_v9  ;;  %v507_v19 = vadd.f32 %v379_v8, %v5694_v31 }
 0x197   :  { %v2262_v35 = vmul.f32 %v2134_v34, %v2006_v20  ;;  %v1864_v41 = vadd.f32 %v1736_v28, %v1415_v18  ;;  %v508_v37 = vadd.f32 %v380_v10, %v5694_v31  ;;  %v1865_v1 = vadd.f32 %v1737_v52, %v1416_v21  ;;  %v4689_v34 = vpop.xlane.xlu1 %2280  ;;  %v4691_v18 = vpop.xlane.xlu0 %2313  ;;  %v5776_v21 = vld [vmem:[#allocation61_spill] sm:$0xff] }
 0x198   :  { %v2263_v25 = vmul.f32 %v2135_v39, %v2007_v56  ;;  %v1277_v43 = vmul.f32 %v5762_v23, %v4233_v50  ;;  %v1278_v2 = vmul.f32 %v5763_v26, %v4233_v50  ;;  %v956_v11 = vadd.f32 %v828_v0, %v507_v19  ;;  %v5773_v56 = vld [vmem:[#allocation60_spill] sm:$0xff]  ;;  %5774 = vst [vmem:[#allocation82_spill] sm:$0xff] %v4689_v34 }
 0x199   :  { %v1992_v22 = vmax.f32 %v1864_v41, 1e-06  ;;  %v957_v40 = vadd.f32 %v829_v53, %v508_v37  ;;  %v1726_v48 = vmul.f32 %v5764_v49, %v4297_v24  ;;  %v1993_v28 = vmax.f32 %v1865_v1, 1e-06  ;;  %5775 = vst [vmem:[#allocation20_spill] sm:$0xff] %v4691_v18  ;;  %v5777_v41 = vld [vmem:[#allocation64_spill] sm:$0xff] }
 0x19a   :  { %v2330_v20 = vadd.f32 %v2263_v25, %v2262_v35  ;;  %v1727_v45 = vmul.f32 %v5765_v60, %v4297_v24  ;;  %v365_v52 = vmul.f32 %v5773_v56, %v5672_v46  ;;  %v1405_v10 = vadd.f32 %v1277_v43, %v956_v11  ;;  %v5778_v37 = vld [vmem:[#allocation65_spill] sm:$0xff]  ;;  %v5779_v11 = vld [vmem:[#allocation66_spill] sm:$0xff]  ;;  %v5781_v26 = vld [vmem:[#allocation72_spill] sm:$0xff] }
 0x19b   :  { %v2120_v8 = vmul.f32 %v1992_v22, %v1992_v22  ;;  %v1406_v39 = vadd.f32 %v1278_v2, %v957_v40  ;;  %v366_v0 = vmul.f32 %v5776_v21, %v5672_v46  ;;  %v2121_v53 = vmul.f32 %v1993_v28, %v1993_v28 }
 0x19c   :  { %2331 = vadd.xlane.f32.xlu0 %v2330_v20  ;;  %v493_v35 = vadd.f32 %v365_v52, %v5678_v55  ;;  %v814_v19 = vmul.f32 %v5777_v41, %v5675_v59  ;;  %v815_v25 = vmul.f32 %v5778_v37, %v5675_v59  ;;  %v1854_v34 = vadd.f32 %v1726_v48, %v1405_v10  ;;  %v5780_v20 = vld [vmem:[#allocation67_spill] sm:$0xff]  ;;  %v5782_v48 = vld [vmem:[#allocation73_spill] sm:$0xff]  ;;  %v4713_v10 = vpop.xlane.xlu0 %2345 }
 0x19d   :  { %v2248_v1 = vmul.f32 %v2120_v8, %v1992_v22  ;;  %v1855_v32 = vadd.f32 %v1727_v45, %v1406_v39  ;;  %v494_v18 = vadd.f32 %v366_v0, %v5678_v55  ;;  %v2249_v43 = vmul.f32 %v2121_v53, %v1993_v28  ;;  %v4711_v8 = vpop.xlane.xlu1 %2342  ;;  %5784 = vst [vmem:[#allocation22_spill] sm:$0xff] %v4713_v10 }
 0x19e   :  { %v942_v2 = vadd.f32 %v814_v19, %v493_v35  ;;  %v1263_v40 = vmul.f32 %v5779_v11, %v4162_v44  ;;  %v1264_v51 = vmul.f32 %v5780_v20, %v4162_v44  ;;  %v1982_v52 = vmax.f32 %v1854_v34, 1e-06  ;;  %5783 = vst [vmem:[#allocation21_spill] sm:$0xff] %v4711_v8 }
 0x19f   :  { %v1983_v60 = vmax.f32 %v1855_v32, 1e-06  ;;  %v943_v49 = vadd.f32 %v815_v25, %v494_v18  ;;  %v1712_v23 = vmul.f32 %v5781_v26, %v4235_v61  ;;  %v2359_v6 = vadd.f32 %v2249_v43, %v2248_v1 }
 0x1a0   :  { %v1391_v22 = vadd.f32 %v1263_v40, %v942_v2  ;;  %v1713_v45 = vmul.f32 %v5782_v48, %v4235_v61  ;;  %v405_v28 = vmul.f32 %v5629_v58, %v5755_v36  ;;  %v2110_v39 = vmul.f32 %v1982_v52, %v1982_v52 }
 0x1a1   :  { %v2111_v0 = vmul.f32 %v1983_v60, %v1983_v60  ;;  %v1392_v34 = vadd.f32 %v1264_v51, %v943_v49  ;;  %v406_v32 = vmul.f32 %v5630_v4, %v5755_v36  ;;  %2360 = vadd.xlane.f32.xlu1 %v2359_v6  ;;  %v854_v35 = vmul.f32 %v5631_v29, %v5756_v15 }
 0x1a2   :  { %v1840_v18 = vadd.f32 %v1712_v23, %v1391_v22  ;;  %v533_v53 = vadd.f32 %v405_v28, %v5757_v62  ;;  %v855_v58 = vmul.f32 %v5767_v63, %v5756_v15  ;;  %v2238_v19 = vmul.f32 %v2110_v39, %v1982_v52  ;;  %v5787_v39 = vld [vmem:[#allocation33_spill] sm:$0xff] }
 0x1a3   :  { %v2239_v25 = vmul.f32 %v2111_v0, %v1983_v60  ;;  %v1841_v1 = vadd.f32 %v1713_v45, %v1392_v34  ;;  %v534_v43 = vadd.f32 %v406_v32, %v5757_v62  ;;  %v1303_v4 = vmul.f32 %v5768_v5, %v4573_v16  ;;  %v4733_v45 = vpop.xlane.xlu1 %2374  ;;  %v4735_v5 = vpop.xlane.xlu0 %2377 }
 0x1a4   :  { %v1968_v2 = vmax.f32 %v1840_v18, 1e-06  ;;  %v982_v49 = vadd.f32 %v854_v35, %v533_v53  ;;  %v1304_v6 = vmul.f32 %v5769_v38, %v4573_v16  ;;  %v1752_v29 = vmul.f32 %v5770_v30, %v4595_v14  ;;  %5785 = vst [vmem:[#allocation76_spill] sm:$0xff] %v4733_v45  ;;  %5786 = vst [vmem:[#allocation32_spill] sm:$0xff] %v4735_v5  ;;  %v5788_v30 = vld [vmem:[#allocation36_spill] sm:$0xff]  ;;  %v5789_v53 = vld [vmem:[#allocation37_spill] sm:$0xff] }
 0x1a5   :  { %v2452_v23 = vadd.f32 %v2239_v25, %v2238_v19  ;;  %v1969_v51 = vmax.f32 %v1841_v1, 1e-06  ;;  %v983_v40 = vadd.f32 %v855_v58, %v534_v43  ;;  %v1753_v60 = vmul.f32 %v5771_v42, %v4595_v14  ;;  %v5790_v1 = vld [vmem:[#allocation42_spill] sm:$0xff] }
 0x1a6   :  { %v2096_v63 = vmul.f32 %v1968_v2, %v1968_v2  ;;  %v1431_v52 = vadd.f32 %v1303_v4, %v982_v49  ;;  %v391_v22 = vmul.f32 %v5644_v13, %v5739_v57  ;;  %v392_v0 = vmul.f32 %v5787_v39, %v5739_v57 }
 0x1a7   :  { %2453 = vadd.xlane.f32.xlu0 %v2452_v23  ;;  %v2097_v38 = vmul.f32 %v1969_v51, %v1969_v51  ;;  %v1432_v28 = vadd.f32 %v1304_v6, %v983_v40  ;;  %v840_v34 = vmul.f32 %v5788_v30, %v5743_v47  ;;  %v841_v35 = vmul.f32 %v5789_v53, %v5743_v47  ;;  %v5791_v6 = vld [vmem:[#allocation43_spill] sm:$0xff] }
 0x1a8   :  { %v2224_v32 = vmul.f32 %v2096_v63, %v1968_v2  ;;  %v1880_v18 = vadd.f32 %v1752_v29, %v1431_v52  ;;  %v519_v42 = vadd.f32 %v391_v22, %v5742_v33  ;;  %v520_v25 = vadd.f32 %v392_v0, %v5742_v33  ;;  %v5792_v2 = vld [vmem:[#allocation44_spill] sm:$0xff]  ;;  %v5793_v22 = vld [vmem:[#allocation45_spill] sm:$0xff] }
 0x1a9   :  { %v2225_v58 = vmul.f32 %v2097_v38, %v1969_v51  ;;  %v1881_v19 = vadd.f32 %v1753_v60, %v1432_v28  ;;  %v1289_v43 = vmul.f32 %v5790_v1, %v4517_v7  ;;  %v1290_v23 = vmul.f32 %v5791_v6, %v4517_v7 }
 0x1aa   :  { %v2008_v49 = vmax.f32 %v1880_v18, 1e-06  ;;  %v968_v4 = vadd.f32 %v840_v34, %v519_v42  ;;  %v1738_v40 = vmul.f32 %v5792_v2, %v4537_v27  ;;  %v969_v52 = vadd.f32 %v841_v35, %v520_v25  ;;  %v4757_v34 = vpop.xlane.xlu1 %2406  ;;  %v4759_v18 = vpop.xlane.xlu0 %2409 }
 0x1ab   :  { %v2481_v29 = vadd.f32 %v2225_v58, %v2224_v32  ;;  %v2009_v63 = vmax.f32 %v1881_v19, 1e-06  ;;  %v1739_v51 = vmul.f32 %v5793_v22, %v4537_v27  ;;  %v381_v28 = vmul.f32 %v5773_v56, %v5693_v17  ;;  %5794 = vst [vmem:[#allocation10_spill] sm:$0xff] %v4757_v34  ;;  %5795 = vst [vmem:[#allocation11_spill] sm:$0xff] %v4759_v18 }
 0x1ac   :  { %v2136_v60 = vmul.f32 %v2008_v49, %v2008_v49  ;;  %v1417_v38 = vadd.f32 %v1289_v43, %v968_v4  ;;  %v382_v0 = vmul.f32 %v5776_v21, %v5693_v17  ;;  %v1418_v32 = vadd.f32 %v1290_v23, %v969_v52 }
 0x1ad   :  { %2482 = vadd.xlane.f32.xlu1 %v2481_v29  ;;  %v2137_v42 = vmul.f32 %v2009_v63, %v2009_v63  ;;  %v830_v35 = vmul.f32 %v5777_v41, %v5695_v9  ;;  %v831_v58 = vmul.f32 %v5778_v37, %v5695_v9  ;;  %v509_v43 = vadd.f32 %v381_v28, %v5694_v31 }
 0x1ae   :  { %v2264_v19 = vmul.f32 %v2136_v60, %v2008_v49  ;;  %v1866_v25 = vadd.f32 %v1738_v40, %v1417_v38  ;;  %v510_v4 = vadd.f32 %v382_v0, %v5694_v31  ;;  %v1867_v10 = vadd.f32 %v1739_v51, %v1418_v32  ;;  %v4773_v49 = vpop.xlane.xlu1 %2283  ;;  %v5797_v51 = vld [vmem:[#allocation68_spill] sm:$0xff]  ;;  %v5798_v32 = vld [vmem:[#allocation69_spill] sm:$0xff] }
 0x1af   :  { %v2265_v5 = vmul.f32 %v2137_v42, %v2009_v63  ;;  %v1279_v18 = vmul.f32 %v5779_v11, %v4233_v50  ;;  %v1280_v23 = vmul.f32 %v5780_v20, %v4233_v50  ;;  %v958_v52 = vadd.f32 %v830_v35, %v509_v43  ;;  %5796 = vst [vmem:[#allocation18_spill] sm:$0xff] %v4773_v49  ;;  %v5804_v11 = vld [vmem:[#allocation80_spill] sm:$0xff] }
 0x1b0   :  { %v1994_v29 = vmax.f32 %v1866_v25, 1e-06  ;;  %v959_v34 = vadd.f32 %v831_v58, %v510_v4  ;;  %v1728_v45 = vmul.f32 %v5781_v26, %v4297_v24  ;;  %v1995_v60 = vmax.f32 %v1867_v10, 1e-06  ;;  %v4781_v58 = vpop.xlane.xlu0 %2286  ;;  %v5800_v10 = vld [vmem:[#allocation74_spill] sm:$0xff] }
 0x1b1   :  { %v2362_v40 = vadd.f32 %v2265_v5, %v2264_v19  ;;  %v1729_v63 = vmul.f32 %v5782_v48, %v4297_v24  ;;  %v367_v38 = vmul.f32 %v5797_v51, %v5672_v46  ;;  %v1407_v0 = vadd.f32 %v1279_v18, %v958_v52  ;;  %5799 = vst [vmem:[#allocation19_spill] sm:$0xff] %v4781_v58  ;;  %v5801_v19 = vld [vmem:[#allocation75_spill] sm:$0xff] }
 0x1b2   :  { %v2122_v28 = vmul.f32 %v1994_v29, %v1994_v29  ;;  %v1408_v42 = vadd.f32 %v1280_v23, %v959_v34  ;;  %v368_v35 = vmul.f32 %v5798_v32, %v5672_v46  ;;  %v2123_v25 = vmul.f32 %v1995_v60, %v1995_v60  ;;  %v5802_v46 = vld [vmem:[#allocation79_spill] sm:$0xff] }
 0x1b3   :  { %2363 = vadd.xlane.f32.xlu0 %v2362_v40  ;;  %v495_v43 = vadd.f32 %v367_v38, %v5678_v55  ;;  %v816_v5 = vmul.f32 %v5800_v10, %v5675_v59  ;;  %v817_v4 = vmul.f32 %v5801_v19, %v5675_v59  ;;  %v1856_v8 = vadd.f32 %v1728_v45, %v1407_v0  ;;  %v5803_v40 = vld [vmem:[#allocation83_spill] sm:$0xff]  ;;  %v4795_v59 = vpop.xlane.xlu1 %2316 }
 0x1b4   :  { %v2250_v49 = vmul.f32 %v2122_v28, %v1994_v29  ;;  %v1857_v48 = vadd.f32 %v1729_v63, %v1408_v42  ;;  %v496_v34 = vadd.f32 %v368_v35, %v5678_v55  ;;  %v2251_v18 = vmul.f32 %v2123_v25, %v1995_v60  ;;  %v5805_v55 = vld [vmem:[#allocation86_spill] sm:$0xff] }
 0x1b5   :  { %v944_v23 = vadd.f32 %v816_v5, %v495_v43  ;;  %v1265_v52 = vmul.f32 %v5802_v46, %v4162_v44  ;;  %v1266_v58 = vmul.f32 %v5803_v40, %v4162_v44  ;;  %v1984_v38 = vmax.f32 %v1856_v8, 1e-06 }
 0x1b6   :  { %v1985_v26 = vmax.f32 %v1857_v48, 1e-06  ;;  %v945_v20 = vadd.f32 %v817_v4, %v496_v34  ;;  %v1714_v37 = vmul.f32 %v5804_v11, %v4235_v61  ;;  %v2391_v45 = vadd.f32 %v2251_v18, %v2250_v49  ;;  %v4803_v48 = vpop.xlane.xlu0 %2319 }
 0x1b7   :  { %v1393_v29 = vadd.f32 %v1265_v52, %v944_v23  ;;  %v1715_v60 = vmul.f32 %v5805_v55, %v4235_v61  ;;  %v407_v63 = vmul.f32 %v5644_v13, %v5755_v36  ;;  %v2112_v28 = vmul.f32 %v1984_v38, %v1984_v38 }
 0x1b8   :  { %v2113_v0 = vmul.f32 %v1985_v26, %v1985_v26  ;;  %v1394_v42 = vadd.f32 %v1266_v58, %v945_v20  ;;  %v408_v44 = vmul.f32 %v5787_v39, %v5755_v36  ;;  %2392 = vadd.xlane.f32.xlu1 %v2391_v45  ;;  %v856_v49 = vmul.f32 %v5788_v30, %v5756_v15 }
 0x1b9   :  { %v1842_v8 = vadd.f32 %v1714_v37, %v1393_v29  ;;  %v535_v35 = vadd.f32 %v407_v63, %v5757_v62  ;;  %v857_v61 = vmul.f32 %v5789_v53, %v5756_v15  ;;  %v2240_v25 = vmul.f32 %v2112_v28, %v1984_v38  ;;  %v4817_v53 = vpop.xlane.xlu1 %2438  ;;  %v5806_v38 = vld [vmem:[#allocation46_spill] sm:$0xff]  ;;  %v5808_v63 = vld [vmem:[#allocation48_spill] sm:$0xff] }
 0x1ba   :  { %v2241_v13 = vmul.f32 %v2113_v0, %v1985_v26  ;;  %v1843_v43 = vadd.f32 %v1715_v60, %v1394_v42  ;;  %v536_v20 = vadd.f32 %v408_v44, %v5757_v62  ;;  %v1305_v39 = vmul.f32 %v5790_v1, %v4573_v16 }
 0x1bb   :  { %v1970_v58 = vmax.f32 %v1842_v8, 1e-06  ;;  %v984_v5 = vadd.f32 %v856_v49, %v535_v35  ;;  %v1306_v37 = vmul.f32 %v5791_v6, %v4573_v16  ;;  %v1754_v30 = vmul.f32 %v5792_v2, %v4595_v14  ;;  %v5807_v6 = vld [vmem:[#allocation47_spill] sm:$0xff]  ;;  %v4827_v2 = vpop.xlane.xlu0 %2441 }
 0x1bc   :  { %v2484_v4 = vadd.f32 %v2241_v13, %v2240_v25  ;;  %v1971_v34 = vmax.f32 %v1843_v43, 1e-06  ;;  %v985_v18 = vadd.f32 %v857_v61, %v536_v20  ;;  %v1755_v52 = vmul.f32 %v5793_v22, %v4595_v14  ;;  %5809 = vst [vmem:[#allocation90_spill] sm:$0xff] %v4827_v2  ;;  %v5810_v22 = vld [vmem:[#allocation49_spill] sm:$0xff]  ;;  %v5811_v25 = vld [vmem:[#allocation50_spill] sm:$0xff] }
 0x1bd   :  { %v2098_v26 = vmul.f32 %v1970_v58, %v1970_v58  ;;  %v1433_v23 = vadd.f32 %v1305_v39, %v984_v5  ;;  %v393_v45 = vmul.f32 %v5806_v38, %v5739_v57  ;;  %v394_v60 = vmul.f32 %v5807_v6, %v5739_v57  ;;  %v5812_v5 = vld [vmem:[#allocation51_spill] sm:$0xff] }
 0x1be   :  { %2485 = vadd.xlane.f32.xlu0 %v2484_v4  ;;  %v2099_v1 = vmul.f32 %v1971_v34, %v1971_v34  ;;  %v1434_v29 = vadd.f32 %v1306_v37, %v985_v18  ;;  %v842_v28 = vmul.f32 %v5808_v63, %v5743_v47  ;;  %v843_v8 = vmul.f32 %v5810_v22, %v5743_v47 }
 0x1bf   :  { %v2226_v0 = vmul.f32 %v2098_v26, %v1970_v58  ;;  %v1882_v42 = vadd.f32 %v1754_v30, %v1433_v23  ;;  %v521_v44 = vadd.f32 %v393_v45, %v5742_v33  ;;  %v522_v61 = vadd.f32 %v394_v60, %v5742_v33  ;;  %v5813_v58 = vld [vmem:[#allocation52_spill] sm:$0xff]  ;;  %v5814_v26 = vld [vmem:[#allocation53_spill] sm:$0xff]  ;;  %v4841_v23 = vpop.xlane.xlu1 %2348 }
 0x1c0   :  { %v2227_v35 = vmul.f32 %v2099_v1, %v1971_v34  ;;  %v1883_v49 = vadd.f32 %v1755_v52, %v1434_v29  ;;  %v1291_v13 = vmul.f32 %v5811_v25, %v4517_v7  ;;  %v1292_v39 = vmul.f32 %v5812_v5, %v4517_v7  ;;  %5815 = vst [vmem:[#allocation93_spill] sm:$0xff] %v4841_v23 }
 0x1c1   :  { %v2010_v43 = vmax.f32 %v1882_v42, 1e-06  ;;  %v970_v20 = vadd.f32 %v842_v28, %v521_v44  ;;  %v1740_v37 = vmul.f32 %v5813_v58, %v4537_v27  ;;  %v971_v30 = vadd.f32 %v843_v8, %v522_v61  ;;  %v4851_v44 = vpop.xlane.xlu0 %2351 }
 0x1c2   :  { %v2513_v4 = vadd.f32 %v2227_v35, %v2226_v0  ;;  %v2011_v18 = vmax.f32 %v1883_v49, 1e-06  ;;  %v1741_v34 = vmul.f32 %v5814_v26, %v4537_v27  ;;  %v383_v1 = vmul.f32 %v5797_v51, %v5693_v17  ;;  %5816 = vst [vmem:[#allocation91_spill] sm:$0xff] %v4851_v44 }
 0x1c3   :  { %v2138_v52 = vmul.f32 %v2010_v43, %v2010_v43  ;;  %v1419_v45 = vadd.f32 %v1291_v13, %v970_v20  ;;  %v384_v29 = vmul.f32 %v5798_v32, %v5693_v17  ;;  %v1420_v28 = vadd.f32 %v1292_v39, %v971_v30 }
 0x1c4   :  { %2514 = vadd.xlane.f32.xlu1 %v2513_v4  ;;  %v2139_v60 = vmul.f32 %v2011_v18, %v2011_v18  ;;  %v832_v0 = vmul.f32 %v5800_v10, %v5695_v9  ;;  %v833_v42 = vmul.f32 %v5801_v19, %v5695_v9  ;;  %v511_v49 = vadd.f32 %v383_v1, %v5694_v31 }
 0x1c5   :  { %v2266_v8 = vmul.f32 %v2138_v52, %v2010_v43  ;;  %v1868_v35 = vadd.f32 %v1740_v37, %v1419_v45  ;;  %v512_v61 = vadd.f32 %v384_v29, %v5694_v31  ;;  %v1869_v20 = vadd.f32 %v1741_v34, %v1420_v28 }
 0x1c6   :  { %v2267_v13 = vmul.f32 %v2139_v60, %v2011_v18  ;;  %v1281_v17 = vmul.f32 %v5802_v46, %v4233_v50  ;;  %v1282_v39 = vmul.f32 %v5803_v40, %v4233_v50  ;;  %v960_v30 = vadd.f32 %v832_v0, %v511_v49  ;;  %v4865_v18 = vpop.xlane.xlu1 %2470 }
 0x1c7   :  { %v1996_v4 = vmax.f32 %v1868_v35, 1e-06  ;;  %v961_v2 = vadd.f32 %v833_v42, %v512_v61  ;;  %v1730_v9 = vmul.f32 %v5804_v11, %v4297_v24  ;;  %v1997_v37 = vmax.f32 %v1869_v20, 1e-06  ;;  %5817 = vst [vmem:[#allocation26_spill] sm:$0xff] %v4865_v18  ;;  %v4874_v42 = vpop.xlane.xlu0 %2473  ;;  %v5820_v20 = vld [vmem:[#allocation58_spill] sm:$0xff] }
 0x1c8   :  { %v2394_v43 = vadd.f32 %v2267_v13, %v2266_v8  ;;  %v1731_v52 = vmul.f32 %v5805_v55, %v4297_v24  ;;  %v395_v31 = vmul.f32 %v5758_v12, %v5739_v57  ;;  %v1409_v45 = vadd.f32 %v1281_v17, %v960_v30  ;;  %v5818_v24 = vld [vmem:[#allocation57_spill] sm:$0xff]  ;;  %5819 = vst [vmem:[#allocation27_spill] sm:$0xff] %v4874_v42  ;;  %v5822_v18 = vld [vmem:[#allocation62_spill] sm:$0xff] }
 0x1c9   :  { %v2124_v34 = vmul.f32 %v1996_v4, %v1996_v4  ;;  %v1410_v1 = vadd.f32 %v1282_v39, %v961_v2  ;;  %v396_v50 = vmul.f32 %v5759_v54, %v5739_v57  ;;  %v2125_v29 = vmul.f32 %v1997_v37, %v1997_v37  ;;  %v5821_v39 = vld [vmem:[#allocation59_spill] sm:$0xff] }
 0x1ca   :  { %2395 = vadd.xlane.f32.xlu0 %v2394_v43  ;;  %v523_v60 = vadd.f32 %v395_v31, %v5742_v33  ;;  %v844_v28 = vmul.f32 %v5760_v3, %v5743_v47  ;;  %v845_v0 = vmul.f32 %v5818_v24, %v5743_v47  ;;  %v1858_v35 = vadd.f32 %v1730_v9, %v1409_v45  ;;  %v5823_v9 = vld [vmem:[#allocation63_spill] sm:$0xff] }
 0x1cb   :  { %v2252_v8 = vmul.f32 %v2124_v34, %v1996_v4  ;;  %v1859_v49 = vadd.f32 %v1731_v52, %v1410_v1  ;;  %v524_v2 = vadd.f32 %v396_v50, %v5742_v33  ;;  %v2253_v61 = vmul.f32 %v2125_v29, %v1997_v37  ;;  %v4887_v34 = vpop.xlane.xlu1 %2380 }
 0x1cc   :  { %v972_v13 = vadd.f32 %v844_v28, %v523_v60  ;;  %v1293_v17 = vmul.f32 %v5820_v20, %v4517_v7  ;;  %v1294_v30 = vmul.f32 %v5821_v39, %v4517_v7  ;;  %v1986_v43 = vmax.f32 %v1858_v35, 1e-06  ;;  %v4896_v35 = vpop.xlane.xlu0 %2383 }
 0x1cd   :  { %v1987_v31 = vmax.f32 %v1859_v49, 1e-06  ;;  %v973_v44 = vadd.f32 %v845_v0, %v524_v2  ;;  %v1742_v23 = vmul.f32 %v5822_v18, %v4537_v27  ;;  %v2423_v42 = vadd.f32 %v2253_v61, %v2252_v8 }
 0x1ce   :  { %v1421_v4 = vadd.f32 %v1293_v17, %v972_v13  ;;  %v1743_v52 = vmul.f32 %v5823_v9, %v4537_v27  ;;  %v409_v37 = vmul.f32 %v5806_v38, %v5755_v36  ;;  %v2114_v45 = vmul.f32 %v1986_v43, %v1986_v43 }
 0x1cf   :  { %v2115_v1 = vmul.f32 %v1987_v31, %v1987_v31  ;;  %v1422_v50 = vadd.f32 %v1294_v30, %v973_v44  ;;  %v410_v29 = vmul.f32 %v5807_v6, %v5755_v36  ;;  %2424 = vadd.xlane.f32.xlu1 %v2423_v42  ;;  %v858_v0 = vmul.f32 %v5808_v63, %v5756_v15 }
 0x1d0   :  { %v1870_v60 = vadd.f32 %v1742_v23, %v1421_v4  ;;  %v537_v28 = vadd.f32 %v409_v37, %v5757_v62  ;;  %v859_v8 = vmul.f32 %v5810_v22, %v5756_v15  ;;  %v2242_v38 = vmul.f32 %v2114_v45, %v1986_v43 }
 0x1d1   :  { %v2243_v49 = vmul.f32 %v2115_v1, %v1987_v31  ;;  %v1871_v2 = vadd.f32 %v1743_v52, %v1422_v50  ;;  %v538_v44 = vadd.f32 %v410_v29, %v5757_v62  ;;  %v1307_v6 = vmul.f32 %v5811_v25, %v4573_v16  ;;  %v4909_v52 = vpop.xlane.xlu1 %2502 }
 0x1d2   :  { %v1998_v61 = vmax.f32 %v1870_v60, 1e-06  ;;  %v986_v13 = vadd.f32 %v858_v0, %v537_v28  ;;  %v1308_v23 = vmul.f32 %v5812_v5, %v4573_v16  ;;  %v1756_v22 = vmul.f32 %v5813_v58, %v4595_v14  ;;  %v4918_v60 = vpop.xlane.xlu0 %2505 }
 0x1d3   :  { %v2516_v42 = vadd.f32 %v2243_v49, %v2242_v38  ;;  %v1999_v63 = vmax.f32 %v1871_v2, 1e-06  ;;  %v987_v17 = vadd.f32 %v859_v8, %v538_v44  ;;  %v1757_v31 = vmul.f32 %v5814_v26, %v4595_v14  ;;  %v5824_v26 = vld [vmem:[#allocation65_spill] sm:$0xff]  ;;  %v5825_v38 = vld [vmem:[#allocation66_spill] sm:$0xff] }
 0x1d4   :  { %v2126_v30 = vmul.f32 %v1998_v61, %v1998_v61  ;;  %v1435_v43 = vadd.f32 %v1307_v6, %v986_v13  ;;  %v397_v4 = vmul.f32 %v5773_v56, %v5739_v57  ;;  %v398_v5 = vmul.f32 %v5776_v21, %v5739_v57  ;;  %v5826_v13 = vld [vmem:[#allocation67_spill] sm:$0xff]  ;;  %v5827_v6 = vld [vmem:[#allocation72_spill] sm:$0xff] }
 0x1d5   :  { %2517 = vadd.xlane.f32.xlu0 %v2516_v42  ;;  %v2127_v25 = vmul.f32 %v1999_v63, %v1999_v63  ;;  %v1436_v37 = vadd.f32 %v1308_v23, %v987_v17  ;;  %v846_v45 = vmul.f32 %v5777_v41, %v5743_v47  ;;  %v847_v29 = vmul.f32 %v5824_v26, %v5743_v47 }
 0x1d6   :  { %v2254_v58 = vmul.f32 %v2126_v30, %v1998_v61  ;;  %v1884_v1 = vadd.f32 %v1756_v22, %v1435_v43  ;;  %v525_v50 = vadd.f32 %v397_v4, %v5742_v33  ;;  %v526_v8 = vadd.f32 %v398_v5, %v5742_v33  ;;  %v5828_v30 = vld [vmem:[#allocation73_spill] sm:$0xff] }
 0x1d7   :  { %v2255_v28 = vmul.f32 %v2127_v25, %v1999_v63  ;;  %v1885_v0 = vadd.f32 %v1757_v31, %v1436_v37  ;;  %v1295_v49 = vmul.f32 %v5825_v38, %v4517_v7  ;;  %v1296_v61 = vmul.f32 %v5826_v13, %v4517_v7  ;;  %v4933_v37 = vpop.xlane.xlu1 %2412 }
 0x1d8   :  { %v2012_v2 = vmax.f32 %v1884_v1, 1e-06  ;;  %v974_v44 = vadd.f32 %v846_v45, %v525_v50  ;;  %v1744_v23 = vmul.f32 %v5827_v6, %v4537_v27  ;;  %v975_v22 = vadd.f32 %v847_v29, %v526_v8 }
 0x1d9   :  { %v2455_v42 = vadd.f32 %v2255_v28, %v2254_v58  ;;  %v2013_v17 = vmax.f32 %v1885_v0, 1e-06  ;;  %v1745_v63 = vmul.f32 %v5828_v30, %v4537_v27  ;;  %v411_v4 = vmul.f32 %v5758_v12, %v5755_v36  ;;  %v4941_v0 = vpop.xlane.xlu0 %2415 }
 0x1da   :  { %v2140_v43 = vmul.f32 %v2012_v2, %v2012_v2  ;;  %v1423_v31 = vadd.f32 %v1295_v49, %v974_v44  ;;  %v412_v25 = vmul.f32 %v5759_v54, %v5755_v36  ;;  %v1424_v45 = vadd.f32 %v1296_v61, %v975_v22 }
 0x1db   :  { %2456 = vadd.xlane.f32.xlu1 %v2455_v42  ;;  %v2141_v5 = vmul.f32 %v2013_v17, %v2013_v17  ;;  %v860_v58 = vmul.f32 %v5760_v3, %v5756_v15  ;;  %v861_v1 = vmul.f32 %v5818_v24, %v5756_v15  ;;  %v539_v28 = vadd.f32 %v411_v4, %v5757_v62 }
 0x1dc   :  { %v2268_v50 = vmul.f32 %v2140_v43, %v2012_v2  ;;  %v1872_v29 = vadd.f32 %v1744_v23, %v1423_v31  ;;  %v540_v12 = vadd.f32 %v412_v25, %v5757_v62  ;;  %v1873_v8 = vadd.f32 %v1745_v63, %v1424_v45  ;;  %v4955_v31 = vpop.xlane.xlu1 %2289 }
 0x1dd   :  { %v2269_v54 = vmul.f32 %v2141_v5, %v2013_v17  ;;  %v1309_v49 = vmul.f32 %v5820_v20, %v4573_v16  ;;  %v1310_v44 = vmul.f32 %v5821_v39, %v4573_v16  ;;  %v988_v61 = vadd.f32 %v860_v58, %v539_v28 }
 0x1de   :  { %v2000_v3 = vmax.f32 %v1872_v29, 1e-06  ;;  %v989_v42 = vadd.f32 %v861_v1, %v540_v12  ;;  %v1758_v24 = vmul.f32 %v5822_v18, %v4595_v14  ;;  %v2001_v23 = vmax.f32 %v1873_v8, 1e-06 }
 0x1df   :  { %v2426_v2 = vadd.f32 %v2269_v54, %v2268_v50  ;;  %v1759_v22 = vmul.f32 %v5823_v9, %v4595_v14  ;;  %v399_v17 = vmul.f32 %v5797_v51, %v5739_v57  ;;  %v1437_v43 = vadd.f32 %v1309_v49, %v988_v61  ;;  %v4963_v50 = vpop.xlane.xlu0 %2292 }
 0x1e0   :  { %v2128_v63 = vmul.f32 %v2000_v3, %v2000_v3  ;;  %v1438_v20 = vadd.f32 %v1310_v44, %v989_v42  ;;  %v400_v39 = vmul.f32 %v5798_v32, %v5739_v57  ;;  %v2129_v4 = vmul.f32 %v2001_v23, %v2001_v23 }
 0x1e1   :  { %2427 = vadd.xlane.f32.xlu0 %v2426_v2  ;;  %v527_v18 = vadd.f32 %v399_v17, %v5742_v33  ;;  %v848_v25 = vmul.f32 %v5800_v10, %v5743_v47  ;;  %v849_v9 = vmul.f32 %v5801_v19, %v5743_v47  ;;  %v1886_v45 = vadd.f32 %v1758_v24, %v1437_v43 }
 0x1e2   :  { %v2256_v5 = vmul.f32 %v2128_v63, %v2000_v3  ;;  %v1887_v58 = vadd.f32 %v1759_v22, %v1438_v20  ;;  %v528_v1 = vadd.f32 %v400_v39, %v5742_v33  ;;  %v2257_v57 = vmul.f32 %v2129_v4, %v2001_v23  ;;  %v4977_v23 = vpop.xlane.xlu1 %2322 }
 0x1e3   :  { %v976_v29 = vadd.f32 %v848_v25, %v527_v18  ;;  %v1297_v28 = vmul.f32 %v5802_v46, %v4517_v7  ;;  %v1298_v12 = vmul.f32 %v5803_v40, %v4517_v7  ;;  %v2014_v54 = vmax.f32 %v1886_v45, 1e-06  ;;  %v4985_v4 = vpop.xlane.xlu0 %2325 }
 0x1e4   :  { %v2015_v8 = vmax.f32 %v1887_v58, 1e-06  ;;  %v977_v49 = vadd.f32 %v849_v9, %v528_v1  ;;  %v1746_v47 = vmul.f32 %v5804_v11, %v4537_v27  ;;  %v2487_v44 = vadd.f32 %v2257_v57, %v2256_v5 }
 0x1e5   :  { %v1425_v3 = vadd.f32 %v1297_v28, %v976_v29  ;;  %v1747_v33 = vmul.f32 %v5805_v55, %v4537_v27  ;;  %v413_v61 = vmul.f32 %v5773_v56, %v5755_v36  ;;  %v2142_v42 = vmul.f32 %v2014_v54, %v2014_v54 }
 0x1e6   :  { %v2143_v24 = vmul.f32 %v2015_v8, %v2015_v8  ;;  %v1426_v2 = vadd.f32 %v1298_v12, %v977_v49  ;;  %v414_v7 = vmul.f32 %v5776_v21, %v5755_v36  ;;  %2488 = vadd.xlane.f32.xlu1 %v2487_v44  ;;  %v862_v63 = vmul.f32 %v5777_v41, %v5756_v15 }
 0x1e7   :  { %v1874_v22 = vadd.f32 %v1746_v47, %v1425_v3  ;;  %v541_v17 = vadd.f32 %v413_v61, %v5757_v62  ;;  %v863_v27 = vmul.f32 %v5824_v26, %v5756_v15  ;;  %v2270_v43 = vmul.f32 %v2142_v42, %v2014_v54  ;;  %v5001_v54 = vpop.xlane.xlu1 %2444 }
 0x1e8   :  { %v2271_v56 = vmul.f32 %v2143_v24, %v2015_v8  ;;  %v1875_v20 = vadd.f32 %v1747_v33, %v1426_v2  ;;  %v542_v39 = vadd.f32 %v414_v7, %v5757_v62  ;;  %v1311_v25 = vmul.f32 %v5825_v38, %v4573_v16 }
 0x1e9   :  { %v2002_v21 = vmax.f32 %v1874_v22, 1e-06  ;;  %v990_v18 = vadd.f32 %v862_v63, %v541_v17  ;;  %v1312_v9 = vmul.f32 %v5826_v13, %v4573_v16  ;;  %v1760_v26 = vmul.f32 %v5827_v6, %v4595_v14  ;;  %v5829_v22 = vld [vmem:[#allocation78_spill] sm:$0xff] }
 0x1ea   :  { %v2458_v5 = vadd.f32 %v2271_v56, %v2270_v43  ;;  %v2003_v41 = vmax.f32 %v1875_v20, 1e-06  ;;  %v991_v45 = vadd.f32 %v863_v27, %v542_v39  ;;  %v1761_v57 = vmul.f32 %v5828_v30, %v4595_v14  ;;  %v5830_v27 = vld [vmem:[#allocation21_spill] sm:$0xff]  ;;  %v5831_v43 = vld [vmem:[#allocation71_spill] sm:$0xff] }
 0x1eb   :  { %v2130_v58 = vmul.f32 %v2002_v21, %v2002_v21  ;;  %v1439_v1 = vadd.f32 %v1311_v25, %v990_v18  ;;  %v415_v29 = vmul.f32 %v5797_v51, %v5755_v36  ;;  %v416_v13 = vmul.f32 %v5798_v32, %v5755_v36  ;;  %v5009_v36 = vpop.xlane.xlu0 %2447  ;;  %v5018_v63 = vpop.xlane.xlu1 %2354 }
 0x1ec   :  { %2459 = vadd.xlane.f32.xlu0 %v2458_v5  ;;  %v2131_v28 = vmul.f32 %v2003_v41, %v2003_v41  ;;  %v1440_v38 = vadd.f32 %v1312_v9, %v991_v45  ;;  %v864_v12 = vmul.f32 %v5800_v10, %v5756_v15  ;;  %v865_v30 = vmul.f32 %v5801_v19, %v5756_v15  ;;  %v5833_v9 = vld [vmem:[#allocation20_spill] sm:$0xff] }
 0x1ed   :  { %v2258_v6 = vmul.f32 %v2130_v58, %v2002_v21  ;;  %v1888_v8 = vadd.f32 %v1760_v26, %v1439_v1  ;;  %v543_v49 = vadd.f32 %v415_v29, %v5757_v62  ;;  %v544_v44 = vadd.f32 %v416_v13, %v5757_v62  ;;  %v5834_v26 = vld [vmem:[#allocation10_spill] sm:$0xff] }
 0x1ee   :  { %v2259_v47 = vmul.f32 %v2131_v28, %v2003_v41  ;;  %v1889_v51 = vadd.f32 %v1761_v57, %v1440_v38  ;;  %v1313_v3 = vmul.f32 %v5802_v46, %v4573_v16  ;;  %v1314_v33 = vmul.f32 %v5803_v40, %v4573_v16  ;;  %v5835_v57 = vld [vmem:[#allocation82_spill] sm:$0xff] }
 0x1ef   :  { %v2016_v32 = vmax.f32 %v1888_v8, 1e-06  ;;  %v992_v10 = vadd.f32 %v864_v12, %v543_v49  ;;  %v1762_v61 = vmul.f32 %v5804_v11, %v4595_v14  ;;  %v993_v15 = vadd.f32 %v865_v30, %v544_v44  ;;  %v5023_v21 = vpop.xlane.xlu0 %2357  ;;  %v5836_v38 = vld [vmem:[#allocation22_spill] sm:$0xff]  ;;  %v5837_v8 = vld [vmem:[#allocation32_spill] sm:$0xff]  ;;  %v2477_v30 = vpop.xlane.xlu1 %2476 }
 0x1f0   :  { %v2519_v42 = vadd.f32 %v2259_v47, %v2258_v6  ;;  %v2017_v24 = vmax.f32 %v1889_v51, 1e-06  ;;  %v1763_v19 = vmul.f32 %v5805_v55, %v4595_v14  ;;  %v2301_v17 = vmul.f32 0.00390625, %v5829_v22  ;;  %v5832_v14 = vld [vmem:[#allocation76_spill] sm:$0xff] }
 0x1f1   :  { %v2144_v62 = vmul.f32 %v2016_v32, %v2016_v32  ;;  %v1441_v2 = vadd.f32 %v1313_v3, %v992_v10  ;;  %v1442_v7 = vadd.f32 %v1314_v33, %v993_v15  ;;  %v2365_v11 = vmul.f32 0.00390625, %v5830_v27  ;;  %v5838_v3 = vld [vmem:[#allocation11_spill] sm:$0xff] }
 0x1f2   :  { %2520 = vadd.xlane.f32.xlu1 %v2519_v42  ;;  %v2145_v46 = vmul.f32 %v2017_v24, %v2017_v24  ;;  %v2333_v56 = vmul.f32 0.00390625, %v5831_v43  ;;  %v2397_v55 = vmul.f32 0.00390625, %v5832_v14  ;;  %v2334_v5 = vmul.f32 0.00390625, %v5833_v9  ;;  %v5843_v43 = vld [vmem:[#allocation26_spill] sm:$0xff]  ;;  %v5845_v14 = vld [vmem:[#allocation27_spill] sm:$0xff] }
 0x1f3   :  { %v2272_v16 = vmul.f32 %v2144_v62, %v2016_v32  ;;  %v1890_v40 = vadd.f32 %v1762_v61, %v1441_v2  ;;  %v1891_v39 = vadd.f32 %v1763_v19, %v1442_v7  ;;  %v2429_v58 = vmul.f32 0.00390625, %v5834_v26  ;;  %v5839_v61 = vld [vmem:[#allocation18_spill] sm:$0xff]  ;;  %v2480_v15 = vpop.xlane.xlu0 %2479  ;;  %v5840_v7 = vld [vmem:[#allocation19_spill] sm:$0xff] }
 0x1f4   :  { %v2273_v20 = vmul.f32 %v2145_v46, %v2017_v24  ;;  %v2534_v25 = vsel %vm2533_vm0, %v2301_v17, %v2333_v56  ;;  %v2302_v29 = vmul.f32 0.00390625, %v5835_v57  ;;  %v2366_v13 = vmul.f32 0.00390625, %v5836_v38  ;;  %v5841_v17 = vld [vmem:[#allocation93_spill] sm:$0xff]  ;;  %v5844_v56 = vld [vmem:[#allocation91_spill] sm:$0xff] }
 0x1f5   :  { %v2018_v18 = vmax.f32 %v1890_v40, 1e-06  ;;  %v2019_v45 = vmax.f32 %v1891_v39, 1e-06  ;;  %v2543_v28 = vsel %vm2542_vm1, %v2534_v25, %v2365_v11  ;;  %v2398_v49 = vmul.f32 0.00390625, %v5837_v8  ;;  %v5842_v40 = vld [vmem:[#allocation90_spill] sm:$0xff] }
 0x1f6   :  { %v2490_v41 = vadd.f32 %v2273_v20, %v2272_v16  ;;  %v2552_v6 = vsel %vm2551_vm2, %v2543_v28, %v2397_v55  ;;  %v2535_v51 = vsel %vm2533_vm0, %v2302_v29, %v2334_v5  ;;  %v2430_v32 = vmul.f32 0.00390625, %v5838_v3 }
 0x1f7   :  { %v2146_v1 = vmul.f32 %v2018_v18, %v2018_v18  ;;  %v2147_v12 = vmul.f32 %v2019_v45, %v2019_v45  ;;  %v2561_v44 = vsel %vm2560_vm3, %v2552_v6, %v2429_v58  ;;  %v2544_v33 = vsel %vm2542_vm1, %v2535_v51, %v2366_v13 }
 0x1f8   :  { %2491 = vadd.xlane.f32.xlu0 %v2490_v41  ;;  %v2303_v42 = vmul.f32 0.00390625, %v5839_v61  ;;  %v2335_v24 = vmul.f32 0.00390625, %v4795_v59  ;;  %v2553_v19 = vsel %vm2551_vm2, %v2544_v33, %v2398_v49  ;;  %v2461_v62 = vmul.f32 0.00390625, %v4817_v53  ;;  %v2640_v41 = vld [vmem:[%s5225_s4] sm:$0xff] }
 0x1f9   :  { %v2274_v47 = vmul.f32 %v2146_v1, %v2018_v18  ;;  %v2275_v10 = vmul.f32 %v2147_v12, %v2019_v45  ;;  %v2336_v2 = vmul.f32 0.00390625, %v4803_v48  ;;  %v2304_v22 = vmul.f32 0.00390625, %v5840_v7  ;;  %v2387_v18 = vpop.xlane.xlu1 %2386 }
 0x1fa   :  { %v2367_v16 = vmul.f32 0.00390625, %v5841_v17  ;;  %v2462_v27 = vmul.f32 0.00390625, %v5842_v40  ;;  %v2562_v11 = vsel %vm2560_vm3, %v2553_v19, %v2430_v32  ;;  %v2493_v59 = vmul.f32 0.00390625, %v5843_v43  ;;  %v2641_v43 = vld [vmem:[%s5225_s4 + $0x8] sm:$0xff] }
 0x1fb   :  { %v2522_v46 = vadd.f32 %v2275_v10, %v2274_v47  ;;  %v2368_v20 = vmul.f32 0.00390625, %v5844_v56  ;;  %v2536_v39 = vsel %vm2533_vm0, %v2303_v42, %v2335_v24  ;;  %v2570_v53 = vsel %vm2569_vm4, %v2561_v44, %v2461_v62  ;;  %v2390_v1 = vpop.xlane.xlu0 %2389 }
 0x1fc   :  { %v2399_v48 = vmul.f32 0.00390625, %v4887_v34  ;;  %v2494_v55 = vmul.f32 0.00390625, %v5845_v14  ;;  %v2537_v25 = vsel %vm2533_vm0, %v2304_v22, %v2336_v2  ;;  %v2545_v9 = vsel %vm2542_vm1, %v2536_v39, %v2367_v16 }
 0x1fd   :  { %2523 = vadd.xlane.f32.xlu0 %v2522_v46  ;;  %v2525_v5 = vmul.f32 0.00390625, %v4909_v52  ;;  %v2571_v45 = vsel %vm2569_vm4, %v2562_v11, %v2462_v27  ;;  %v2579_v26 = vsel %vm2578_vm5, %v2570_v53, %v2493_v59  ;;  %v2546_v34 = vsel %vm2542_vm1, %v2537_v25, %v2368_v20 }
 0x1fe   :  { %v2554_v58 = vsel %vm2551_vm2, %v2545_v9, %v2399_v48  ;;  %v2580_v57 = vsel %vm2578_vm5, %v2571_v45, %v2494_v55  ;;  %v2431_v28 = vmul.f32 0.00390625, %v4933_v37  ;;  %v2526_v52 = vmul.f32 0.00390625, %v4918_v60  ;;  %v2642_v60 = vld [vmem:[%s5225_s4 + $0x10] sm:$0xff] }
 0x1ff   :  { %v2588_v29 = vsel %vm2587_vm6, %v2579_v26, %v2525_v5  ;;  %v2400_v38 = vmul.f32 0.00390625, %v4896_v35  ;;  %v2305_v13 = vmul.f32 0.00390625, %v4955_v31  ;;  %v2337_v12 = vmul.f32 0.00390625, %v4977_v23  ;;  %v2509_v23 = vpop.xlane.xlu1 %2508 }
 0x200   :  { %3085 = vlog2.f32 %v2588_v29  ;;  %v2589_v6 = vsel %vm2587_vm6, %v2580_v57, %v2526_v52  ;;  %v2432_v8 = vmul.f32 0.00390625, %v4941_v0  ;;  %v2306_v49 = vmul.f32 0.00390625, %v4963_v50  ;;  %v2636_v57 = vld [vmem:[%s5224_s3] sm:$0xff] }
 0x201   :  { %v2463_v47 = vmul.f32 0.00390625, %v5001_v54  ;;  %3087 = vlog2.f32 %v2589_v6  ;;  %v2538_v35 = vsel %vm2533_vm0, %v2305_v13, %v2337_v12  ;;  %v2338_v37 = vmul.f32 0.00390625, %v4985_v4  ;;  %3037 = vmatprep.mubr.msk.f32.mxu0 %vm2664_vm7, %v2636_v57 }
 0x202   :  { %v2369_v31 = vmul.f32 0.00390625, %v5018_v63  ;;  %v2563_v51 = vsel %vm2560_vm3, %v2554_v58, %v2431_v28  ;;  %v2464_v0 = vmul.f32 0.00390625, %v5009_v36  ;;  %v2495_v44 = vmul.f32 0.00390625, %v2477_v30  ;;  %v2643_v36 = vld [vmem:[%s5225_s4 + $0x18] sm:$0xff] }
 0x203   :  { %2646 = vperm.xlu1 %3084, %v2640_v41   ;;  %v2370_v50 = vmul.f32 0.00390625, %v5023_v21  ;;  %v2539_v54 = vsel %vm2533_vm0, %v2306_v49, %v2338_v37  ;;  %v2401_v32 = vmul.f32 0.00390625, %v2387_v18  ;;  %v2496_v10 = vmul.f32 0.00390625, %v2480_v15 }
 0x204   :  { %v2547_v3 = vsel %vm2542_vm1, %v2538_v35, %v2369_v31  ;;  %v2555_v4 = vsel %vm2551_vm2, %v2546_v34, %v2400_v38  ;;  %v2572_v63 = vsel %vm2569_vm4, %v2563_v51, %v2463_v47  ;;  %v2527_v42 = vmul.f32 0.00390625, %v2509_v23 }
 0x205   :  { %v2548_v61 = vsel %vm2542_vm1, %v2539_v54, %v2370_v50  ;;  %v2564_v21 = vsel %vm2560_vm3, %v2555_v4, %v2432_v8  ;;  %v2581_v30 = vsel %vm2578_vm5, %v2572_v63, %v2495_v44  ;;  %v5093_v24 = vsel %vm2551_vm2, %v2547_v3, %v2401_v32 }
 0x206   :  { %v2512_v33 = vpop.xlane.xlu0 %2511  ;;  %v2402_v15 = vmul.f32 0.00390625, %v2390_v1  ;;  %v2573_v19 = vsel %vm2569_vm4, %v2564_v21, %v2464_v0  ;;  %v2590_v62 = vsel %vm2587_vm6, %v2581_v30, %v2527_v42  ;;  %v2419_v1 = vpop.xlane.xlu1 %2418 }
 0x207   :  { %2656 = vperm.xlu1 %3084, %v2642_v60   ;;  %v2528_v2 = vmul.f32 0.00390625, %v2512_v33  ;;  %v2582_v46 = vsel %vm2578_vm5, %v2573_v19, %v2496_v10  ;;  %3089 = vlog2.f32 %v2590_v62  ;;  %v2433_v35 = vmul.f32 0.00390625, %v2419_v1 }
 0x208   :  { %v5099_v7 = vsel %vm2551_vm2, %v2548_v61, %v2402_v15 }
 0x209   :  { %v2591_v22 = vsel %vm2587_vm6, %v2582_v46, %v2528_v2  ;;  %v2565_v44 = vsel %vm2560_vm3, %v5093_v24, %v2433_v35 }
 0x20a   :  { %v3086_v17 = vpop.eup %3085  ;;  %3091 = vlog2.f32 %v2591_v22 }
 0x20b   :  { %2661 = vperm.xlu1 %3084, %v2643_v36   ;;  %v2597_v16 = vmul.f32 0.6931472, %v3086_v17  ;;  %v3088_v40 = vpop.eup %3087 }
 0x20c   :  { %v2599_v11 = vmul.f32 0.6931472, %v3088_v40  ;;  %v2296_v29 = vpop.xlane.xlu1 %2295 }
 0x20d   :  { %v2612_v27 = vmul.f32 0.33333334, %v2597_v16 }
 0x20e   :  { %v2613_v56 = vmul.f32 0.33333334, %v2599_v11 }
 0x20f   :  { %v2620_v59 = vmul.f32 1.442695, %v2612_v27 }
 0x210   :  { %v2622_v20 = vmul.f32 1.442695, %v2613_v56 }
 0x211   :  { %v3090_v39 = vpop.eup %3089  ;;  %3093 = vpow2.f32 %v2620_v59  ;;  %v2307_v59 = vmul.f32 0.00390625, %v2296_v29 }
 0x212   :  { %3095 = vpow2.f32 %v2622_v20  ;;  %v2601_v53 = vmul.f32 0.6931472, %v3090_v39  ;;  %v2422_v52 = vpop.xlane.xlu0 %2421 }
 0x213   :  { %2651 = vperm.xlu0 %3083, %v2641_v43   ;;  %v2434_v10 = vmul.f32 0.00390625, %v2422_v52 }
 0x214   :  { %v3092_v48 = vpop.eup %3091  ;;  %v2614_v14 = vmul.f32 0.33333334, %v2601_v53 }
 0x215   :  { %v2603_v55 = vmul.f32 0.6931472, %v3092_v48  ;;  %v2566_v63 = vsel %vm2560_vm3, %v5099_v7, %v2434_v10 }
 0x216   :  { %v2624_v18 = vmul.f32 1.442695, %v2614_v14 }
 0x217   :  { %v2615_v25 = vmul.f32 0.33333334, %v2603_v55  ;;  %v2329_v28 = vpop.xlane.xlu1 %2328 }
 0x218   :  { %3097 = vpow2.f32 %v2624_v18  ;;  %v2339_v7 = vmul.f32 0.00390625, %v2329_v28 }
 0x219   :  { %v2626_v9 = vmul.f32 1.442695, %v2615_v25 }
 0x21a   :  { %v2540_v39 = vsel %vm2533_vm0, %v2307_v59, %v2339_v7 }
 0x21b   :  { %3099 = vpow2.f32 %v2626_v9  ;;  %v3094_v5 = vpop.eup %3093 }
 0x21c   :  { %v3096_v41 = vpop.eup %3095 }
 0x21d   :  { %v3054_v45 = vpack.c.bf16 %v3096_v41, %v3094_v5  ;;  %v5109_v13 = vpop.xlane.xlu0 %2298 }
 0x21e   :  { %v2308_v52 = vmul.f32 0.00390625, %v5109_v13 }
 0x21f   :  { %3055 = vmatprep.subr.bf16.mxu0 %v3054_v45 }
 0x220   :  { %3057 = vmatpush3.bf16.msra.mxu0 %v3054_v45 }
 0x222   :  { %v3098_v26 = vpop.eup %3097 }
 0x223   :  { %v2451_v38 = vpop.xlane.xlu1 %2450 }
 0x224   :  { %v2465_v31 = vmul.f32 0.00390625, %v2451_v38 }
 0x225   :  { %v3100_v34 = vpop.eup %3099 }
 0x226   :  { %v3058_v58 = vpack.c.bf16 %v3100_v34, %v3098_v26  ;;  %v2574_v50 = vsel %vm2569_vm4, %v2565_v44, %v2465_v31 }
 0x228   :  { %3059 = vmatprep.subr.bf16.mxu0 %v3058_v58 }
 0x229   :  { %3061 = vmatpush3.bf16.msra.mxu0 %v3058_v58  ;;  %v2332_v6 = vpop.xlane.xlu0 %2331 }
 0x22a   :  { %v2340_v57 = vmul.f32 0.00390625, %v2332_v6 }
 0x22e   :  { %v2361_v12 = vpop.xlane.xlu1 %2360 }
 0x22f   :  { %v2371_v43 = vmul.f32 0.00390625, %v2361_v12 }
 0x231   :  { %v2549_v48 = vsel %vm2542_vm1, %v2540_v39, %v2371_v43 }
 0x234   :  { %v2454_v49 = vpop.xlane.xlu0 %2453 }
 0x235   :  { %v2466_v33 = vmul.f32 0.00390625, %v2454_v49 }
 0x237   :  { %v2575_v42 = vsel %vm2569_vm4, %v2566_v63, %v2466_v33 }
 0x23a   :  { %v2483_v8 = vpop.xlane.xlu1 %2482 }
 0x23b   :  { %v2497_v23 = vmul.f32 0.00390625, %v2483_v8  ;;  %v2541_v8 = vsel %vm2533_vm0, %v2308_v52, %v2340_v57  ;;  %vm2915_vm0 = vcmask 57344  }
 0x23d   :  { %v2583_v54 = vsel %vm2578_vm5, %v2574_v50, %v2497_v23 }
 0x240   :  { %v2364_v60 = vpop.xlane.xlu0 %2363 }
 0x241   :  { %v2372_v29 = vmul.f32 0.00390625, %v2364_v60 }
 0x245   :  { %v2393_v47 = vpop.xlane.xlu1 %2392 }
 0x246   :  { %v2403_v56 = vmul.f32 0.00390625, %v2393_v47  ;;  %v2550_v47 = vsel %vm2542_vm1, %v2541_v8, %v2372_v29 }
 0x248   :  { %v2558_v55 = vsel %vm2551_vm2, %v2549_v48, %v2403_v56 }
 0x24b   :  { %v2486_v51 = vpop.xlane.xlu0 %2485 }
 0x24c   :  { %v2498_v4 = vmul.f32 0.00390625, %v2486_v51 }
 0x24e   :  { %v2584_v21 = vsel %vm2578_vm5, %v2575_v42, %v2498_v4  ;;  %v2637_v42 = vld [vmem:[%s5224_s3 + $0x8] sm:$0xff] }
 0x251   :  { %v2515_v37 = vpop.xlane.xlu1 %2514 }
 0x252   :  { %v2529_v0 = vmul.f32 0.00390625, %v2515_v37 }
 0x254   :  { %v2592_v3 = vsel %vm2587_vm6, %v2583_v54, %v2529_v0 }
 0x255   :  { %3101 = vlog2.f32 %v2592_v3 }
 0x257   :  { %v2396_v32 = vpop.xlane.xlu0 %2395 }
 0x258   :  { %v2404_v38 = vmul.f32 0.00390625, %v2396_v32 }
 0x25a   :  { %v2559_v37 = vsel %vm2551_vm2, %v2550_v47, %v2404_v38 }
 0x25c   :  { %v2425_v19 = vpop.xlane.xlu1 %2424 }
 0x25d   :  { %v2435_v20 = vmul.f32 0.00390625, %v2425_v19 }
 0x25f   :  { %v3102_v24 = vpop.eup %3101  ;;  %v2567_v9 = vsel %vm2560_vm3, %v2558_v55, %v2435_v20 }
 0x260   :  { %v2605_v15 = vmul.f32 0.6931472, %v3102_v24 }
 0x262   :  { %v2518_v61 = vpop.xlane.xlu0 %2517  ;;  %v2616_v62 = vmul.f32 0.33333334, %v2605_v15 }
 0x263   :  { %v2530_v36 = vmul.f32 0.00390625, %v2518_v61 }
 0x264   :  { %v2628_v22 = vmul.f32 1.442695, %v2616_v62 }
 0x265   :  { %v2593_v30 = vsel %vm2587_vm6, %v2584_v21, %v2530_v36  ;;  %v2638_v36 = vld [vmem:[%s5224_s3 + $0x10] sm:$0xff]  ;;  %v2639_v21 = vld [vmem:[%s5224_s3 + $0x18] sm:$0xff] }
 0x266   :  { %3103 = vlog2.f32 %v2593_v30  ;;  %v2800_v30 = vld [vmem:[%s5227_s6] sm:$0xff] }
 0x267   :  { %3105 = vpow2.f32 %v2628_v22  ;;  %3051 = vmatprep.mubr.msk.f32.mxu1 %vm2806_vm8, %v2800_v30 }
 0x268   :  { %v2457_v17 = vpop.xlane.xlu1 %2456 }
 0x269   :  { %v2467_v53 = vmul.f32 0.00390625, %v2457_v17 }
 0x26b   :  { %v2576_v45 = vsel %vm2569_vm4, %v2567_v9, %v2467_v53 }
 0x26e   :  { %v2428_v27 = vpop.xlane.xlu0 %2427 }
 0x26f   :  { %v2436_v12 = vmul.f32 0.00390625, %v2428_v27 }
 0x270   :  { %v3104_v2 = vpop.eup %3103 }
 0x271   :  { %v2607_v46 = vmul.f32 0.6931472, %v3104_v2  ;;  %v3106_v41 = vpop.eup %3105  ;;  %v2568_v31 = vsel %vm2560_vm3, %v2559_v37, %v2436_v12  ;;  %v2767_v2 = vstv %s5226_s5 }
 0x273   :  { %v2617_v16 = vmul.f32 0.33333334, %v2607_v46  ;;  %v2489_v11 = vpop.xlane.xlu1 %2488 }
 0x274   :  { %v2499_v14 = vmul.f32 0.00390625, %v2489_v11 }
 0x275   :  { %v2630_v40 = vmul.f32 1.442695, %v2617_v16 }
 0x276   :  { %v2585_v34 = vsel %vm2578_vm5, %v2576_v45, %v2499_v14 }
 0x277   :  { %3107 = vpow2.f32 %v2630_v40 }
 0x279   :  { %v2460_v18 = vpop.xlane.xlu0 %2459 }
 0x27a   :  { %v2468_v49 = vmul.f32 0.00390625, %v2460_v18 }
 0x27c   :  { %v2577_v60 = vsel %vm2569_vm4, %v2568_v31, %v2468_v49 }
 0x27f   :  { %v2521_v25 = vpop.xlane.xlu1 %2520 }
 0x280   :  { %v2531_v5 = vmul.f32 0.00390625, %v2521_v25 }
 0x281   :  { %v3108_v26 = vpop.eup %3107 }
 0x282   :  { %v2594_v58 = vsel %vm2587_vm6, %v2585_v34, %v2531_v5  ;;  %v3062_v1 = vpack.c.bf16 %v3108_v26, %v3106_v41 }
 0x283   :  { %3109 = vlog2.f32 %v2594_v58  ;;  %v2647_v24 = vpop.permute.xlu1 %2646 }
 0x284   :  { %3063 = vmatprep.subr.bf16.mxu0 %v3062_v1 }
 0x285   :  { %v2492_v28 = vpop.xlane.xlu0 %2491  ;;  %3065 = vmatpush3.bf16.msra.mxu0 %v3062_v1 }
 0x286   :  { %v2500_v35 = vmul.f32 0.00390625, %v2492_v28 }
 0x287   :  { %v2657_v15 = vpop.permute.xlu1 %2656 }
 0x288   :  { %v2586_v13 = vsel %vm2578_vm5, %v2577_v60, %v2500_v35 }
 0x28a   :  { %v2524_v6 = vpop.xlane.xlu0 %2523 }
 0x28b   :  { %v2532_v23 = vmul.f32 0.00390625, %v2524_v6  ;;  %v2662_v40 = vpop.permute.xlu1 %2661 }
 0x28d   :  { %v2595_v51 = vsel %vm2587_vm6, %v2586_v13, %v2532_v23  ;;  %v3110_v0 = vpop.eup %3109  ;;  %v2801_v23 = vld [vmem:[%s5227_s6 + $0x8] sm:$0xff]  ;;  %s3175_s6 = smov [#allocation5]  }
 0x28e   :  { %3111 = vlog2.f32 %v2595_v51  ;;  %v2609_v44 = vmul.f32 0.6931472, %v3110_v0 }
 0x290   :  { %v2618_v50 = vmul.f32 0.33333334, %v2609_v44 }
 0x292   :  { %v2632_v32 = vmul.f32 1.442695, %v2618_v50  ;;  %v2652_v19 = vpop.permute.xlu0 %2651 }
 0x294   :  { %3113 = vpow2.f32 %v2632_v32 }
 0x298   :  { %v3112_v54 = vpop.eup %3111 }
 0x299   :  { %v2611_v3 = vmul.f32 0.6931472, %v3112_v54 }
 0x29b   :  { %v2619_v10 = vmul.f32 0.33333334, %v2611_v3 }
 0x29d   :  { %v2634_v33 = vmul.f32 1.442695, %v2619_v10  ;;  %v5846_v10 = vld [vmem:[#allocation9_spill] sm:$0xff] }
 0x29e   :  { %v3114_v4 = vpop.eup %3113 }
 0x29f   :  { %3115 = vpow2.f32 %v2634_v33  ;;  %v2919_v33 = vadd.s32 8, %v5846_v10 }
 0x2a9   :  { %v3116_v63 = vpop.eup %3115 }
 0x2aa   :  { %v3066_v61 = vpack.c.bf16 %v3116_v63, %v3114_v4 }
 0x2ac   :  { %3067 = vmatprep.subr.bf16.mxu0 %v3066_v61 }
 0x2ad   :  { %3069 = vmatpush3.bf16.msra.mxu0 %v3066_v61  ;;  %v2920_v61 = vcvt.s32.f32 %v5846_v10 }
 0x2b0   :  { %3038 = vmatmul.mubr.msk.f32.vlgmr.msra.gmra.mrb[0].mxu0 %vm2664_vm7, %v2637_v42  ;;  %v2921_v42 = vcvt.s32.f32 %v2919_v33 }
 0x2b1   :  { %3040 = vmatprep.mubr.msk.f32.mxu0 %vm2664_vm7, %v2638_v36 }
 0x2b4   :  { %3041 = vmatmul.mubr.msk.f32.gmra.mrb[2].mxu0 %vm2664_vm7, %v2639_v21 }
 0x383   :  { %v3039_v62 = vpop.f32.mrb[0].mxu0 }
 0x384   :  { %v2749_v46 = vadd.f32 %v3039_v62, %v2652_v19  ;;  %v2743_v22 = vpop.f32.mrb[1].mxu0 }
 0x385   :  { %v2744_v17 = vadd.f32 %v2743_v22, %v2647_v24 }
 0x386   :  { %vm2764_vm9 = vcmp.gt.f32.partialorder %v2749_v46, 0.0  ;;  %v2769_v16 = vmul.f32 %v2767_v2, %v2749_v46 }
 0x387   :  { %vm2763_vm11 = vcmp.gt.f32.partialorder %v2744_v17, 0.0  ;;  %v2768_v7 = vmul.f32 %v2767_v2, %v2744_v17  ;;  %v3042_v27 = vpop.f32.mrb[2].mxu0 }
 0x388   :  { %v2773_v11 = vsel %vm2764_vm9, %v2749_v46, %v2769_v16  ;;  %v2759_v43 = vadd.f32 %v3042_v27, %v2662_v40  ;;  %v2753_v59 = vpop.f32.mrb[3].mxu0 }
 0x389   :  { %2778 = vst.msk [vmem:[%s5228_s7 + $0x8] sm:$0xff] %vm2776_vm10, %v2773_v11  ;;  %v2782_v56 = vmul.f32 %v2773_v11, %v2773_v11  ;;  %v2772_v20 = vsel %vm2763_vm11, %v2744_v17, %v2768_v7  ;;  %v2754_v39 = vadd.f32 %v2753_v59, %v2657_v15 }
 0x38a   :  { %2777 = vst.msk [vmem:[%s5228_s7] sm:$0xff] %vm2776_vm10, %v2772_v20  ;;  %v2781_v53 = vmul.f32 %v2772_v20, %v2772_v20  ;;  %vm2766_vm12 = vcmp.gt.f32.partialorder %v2759_v43, 0.0  ;;  %v2771_v48 = vmul.f32 %v2767_v2, %v2759_v43 }
 0x38b   :  { %v2786_v14 = vsel %vm2776_vm10, %v2782_v56, 0.0  ;;  %vm2765_vm13 = vcmp.gt.f32.partialorder %v2754_v39, 0.0  ;;  %v2770_v55 = vmul.f32 %v2767_v2, %v2754_v39 }
 0x38c   :  { %v2785_v18 = vsel %vm2776_vm10, %v2781_v53, 0.0  ;;  %v2775_v25 = vsel %vm2766_vm12, %v2759_v43, %v2771_v48 }
 0x38d   :  { %v2787_v9 = vadd.f32 %v2786_v14, %v2785_v18  ;;  %2780 = vst.msk [vmem:[%s5228_s7 + $0x18] sm:$0xff] %vm2776_vm10, %v2775_v25  ;;  %v2774_v5 = vsel %vm2765_vm13, %v2754_v39, %v2770_v55  ;;  %v2784_v41 = vmul.f32 %v2775_v25, %v2775_v25 }
 0x38e   :  { %2779 = vst.msk [vmem:[%s5228_s7 + $0x10] sm:$0xff] %vm2776_vm10, %v2774_v5  ;;  %v2783_v45 = vmul.f32 %v2774_v5, %v2774_v5 }
 0x38f   :  { %v2790_v58 = vsel %vm2776_vm10, %v2784_v41, 0.0 }
 0x390   :  { %v2788_v26 = vsel %vm2776_vm10, %v2783_v45, 0.0 }
 0x391   :  { %v2789_v34 = vadd.f32 %v2788_v26, %v2787_v9 }
 0x393   :  { %v2791_v1 = vadd.f32 %v2790_v58, %v2789_v34 }
 0x395   :  { %v2792_v57 = vrot.slane %v2791_v1, 4 }
 0x397   :  { %v2793_v29 = vadd.f32 %v2792_v57, %v2791_v1 }
 0x399   :  { %v2794_v28 = vrot.slane %v2793_v29, 2 }
 0x39b   :  { %v2795_v52 = vadd.f32 %v2794_v28, %v2793_v29 }
 0x39d   :  { %v2796_v38 = vrot.slane %v2795_v52, 1 }
 0x39f   :  { %v2797_v12 = vadd.f32 %v2796_v38, %v2795_v52 }
 0x3a1   :  { %v2798_v8 = vmax.f32 %v2797_v12, 1e-24 }
 0x3a3   :  { %3117 = vrsqrt.f32 %v2798_v8 }
 0x3ad   :  { %v3118_v49 = vpop.eup %3117 }
 0x3ae   :  { %v2802_v47 = vmul.f32 %v3118_v49, %v2772_v20  ;;  %v2803_v35 = vmul.f32 %v3118_v49, %v2773_v11  ;;  %v2804_v37 = vmul.f32 %v3118_v49, %v2774_v5  ;;  %v2805_v31 = vmul.f32 %v3118_v49, %v2775_v25 }
 0x3b0   :  { %v3070_v6 = vpack.c.bf16 %v2803_v35, %v2802_v47  ;;  %v3074_v60 = vpack.c.bf16 %v2805_v31, %v2804_v37 }
 0x3b2   :  { %3071 = vmatprep.subr.bf16.mxu1 %v3070_v6 }
 0x3b3   :  { %3073 = vmatpush3.bf16.msra.mxu1 %v3070_v6 }
 0x3b4   :  { %3075 = vmatprep.subr.bf16.mxu1 %v3074_v60 }
 0x3b7   :  { %3077 = vmatpush3.bf16.msra.mxu1 %v3074_v60 }
 0x3ba   :  { %3052 = vmatmul.mubr.msk.f32.vlgmr.msra.gmra.mrb[0].mxu1 %vm2806_vm8, %v2801_v23 }
 0x48d   :  { %v3053_v13 = vpop.f32.mrb[0].mxu1 }
 0x48e   :  { %2889 = vst.msk [vmem:[%s5229_s8 + $0x8] sm:$0xff] %vm2776_vm10, %v3053_v13  ;;  %v2879_v51 = vpop.f32.mrb[1].mxu1  ;;  %v2891_v0 = vsel %vm2776_vm10, %v3053_v13, -inf }
 0x48f   :  { %2888 = vst.msk [vmem:[%s5229_s8] sm:$0xff] %vm2776_vm10, %v2879_v51  ;;  %v2890_v44 = vsel %vm2776_vm10, %v2879_v51, -inf  ;;  %s2957_s8 = sshll.u32 %s3175_s6, 4  ;;  %s2958_s8 = int_to_ptr.vmem [resolvable:$true] %s2957_s8 }
 0x490   :  { %v2892_v50 = vmax.f32 %v2890_v44, %v2891_v0  ;;  %s3126_s1 = scalar_lea.vmem %s2958_s8, 16  ;;  %s3130_s4 = scalar_lea.vmem %s2958_s8, 32 }
 0x491   :  { %p3127_p0 = scmp.ne.s32.totalorder %s2958_s8, %s3126_s1  ;;  %p3131_p1 = scmp.lt.s32.totalorder %s2958_s8, %s2958_s8 }
 0x492   :  { %v2893_v54 = vrot.slane %v2892_v50, 4  ;;  %p3132_p2 = scmp.lt.s32.totalorder %s3130_s4, %s3126_s1 }
 0x494   :  { %v2894_v3 = vmax.f32 %v2892_v50, %v2893_v54  ;;  %p3133_p3 = por %p3132_p2, %p3131_p1 }
 0x496   :  { %v2895_v32 = vrot.slane %v2894_v3, 2  ;;  %p3134_p4 = pnand %p3133_p3, %p3127_p0 }
 0x498   :  { %v2896_v4 = vmax.f32 %v2894_v3, %v2895_v32 }
 0x49a   :  { %v2897_v63 = vrot.slane %v2896_v4, 1 }
 0x49c   :  { %v2898_v36 = vmax.f32 %v2896_v4, %v2897_v63 }
 0x49e   :  { %v2899_v21 = vsub.f32 %v2879_v51, %v2898_v36  ;;  %v2900_v30 = vsub.f32 %v3053_v13, %v2898_v36  ;;  %vm2922_vm14 = vcmp.eq.f32.partialorder %v2879_v51, %v2898_v36  ;;  %vm2923_vm15 = vcmp.eq.f32.partialorder %v3053_v13, %v2898_v36 }
 0x49f   :  { %v2924_v24 = vsel %vm2922_vm14, %v2920_v61, 16.0  ;;  %v2925_v15 = vsel %vm2923_vm15, %v2921_v42, 16.0 }
 0x4a0   :  { %v2901_v19 = vmul.f32 1.442695, %v2899_v21  ;;  %v2903_v62 = vmul.f32 1.442695, %v2900_v30  ;;  %v2926_v2 = vsel %vm2776_vm10, %v2924_v24, inf  ;;  %v2927_v46 = vsel %vm2776_vm10, %v2925_v15, inf }
 0x4a1   :  { %v2928_v22 = vmin.f32 %v2926_v2, %v2927_v46 }
 0x4a2   :  { %3119 = vpow2.f32 %v2901_v19 }
 0x4a3   :  { %3121 = vpow2.f32 %v2903_v62  ;;  %v2929_v17 = vrot.slane %v2928_v22, 4 }
 0x4a5   :  { %v2930_v16 = vmin.f32 %v2928_v22, %v2929_v17 }
 0x4a7   :  { %v2931_v40 = vrot.slane %v2930_v16, 2 }
 0x4a9   :  { %v2932_v7 = vmin.f32 %v2930_v16, %v2931_v40 }
 0x4ab   :  { %v2933_v27 = vrot.slane %v2932_v7, 1 }
 0x4ac   :  { %v3120_v11 = vpop.eup %3119 }
 0x4ad   :  { %v3122_v43 = vpop.eup %3121  ;;  %v2905_v59 = vsel %vm2776_vm10, %v3120_v11, 0.0  ;;  %v2934_v56 = vmin.f32 %v2932_v7, %v2933_v27 }
 0x4ae   :  { %v2906_v20 = vsel %vm2776_vm10, %v3122_v43, 0.0 }
 0x4af   :  { %v2907_v39 = vadd.f32 %v2906_v20, %v2905_v59  ;;  %v3078_v53 = vtrunc.f32 %v2934_v56 }
 0x4b1   :  { %v2908_v48 = vrot.slane %v2907_v39, 4  ;;  %v3079_v14 = vcvt.f32.s32 %v3078_v53 }
 0x4b3   :  { %v2909_v55 = vadd.f32 %v2908_v48, %v2907_v39  ;;  %2936 = vst.msk [vmem:[#allocation5] sm:$0x1] %vm2915_vm0, %v3079_v14 }
 0x4b4   :  { %3137 = shalt.err (!%p3134_p4)
}
 0x4b5   :  { %s3138_s16 = scalar_lea.hbm %s5231_s10, 16 }
 0x4b6   :  { %p3139_p5 = scmp.ne.s32.totalorder %s5231_s10, %s3138_s16  ;;  %p3142_p6 = scmp.lt.u32.totalorder %s3138_s16, %s5231_s10 }
 0x4b8   :  { %p3144_p7 = pnand %p3142_p6, %p3139_p5 }
 0x4ba   :  { %3147 = shalt.err (!%p3144_p7)
}
 0x4bb   :  { %2960 = dma.vmem_to_hbm [thread:$0]  %s2958_s8, 16, %s5231_s10, [#allocation6]   ;;  %v2910_v18 = vrot.slane %v2909_v55, 2 }
 0x4bc   :  { %s3176_s23 = smov [#allocation3]  }
 0x4bd   :  { %v2911_v25 = vadd.f32 %v2910_v18, %v2909_v55  ;;  %s2947_s24 = sshll.u32 %s3176_s23, 4  ;;  %s2948_s24 = int_to_ptr.vmem [resolvable:$true] %s2947_s24 }
 0x4be   :  { %s3148_s3 = scalar_lea.vmem %s2948_s24, 16  ;;  %s3152_s2 = scalar_lea.vmem %s2948_s24, 32 }
 0x4bf   :  { %v2912_v9 = vrot.slane %v2911_v25, 1  ;;  %p3149_p8 = scmp.ne.s32.totalorder %s2948_s24, %s3148_s3  ;;  %p3153_p9 = scmp.lt.s32.totalorder %s2948_s24, %s2948_s24 }
 0x4c0   :  { %p3154_p10 = scmp.lt.s32.totalorder %s3152_s2, %s3148_s3 }
 0x4c1   :  { %v2913_v5 = vadd.f32 %v2912_v9, %v2911_v25 }
 0x4c2   :  { %p3155_p11 = por %p3154_p10, %p3153_p9 }
 0x4c3   :  { %3123 = vrcp.f32 %v2913_v5 }
 0x4c4   :  { %p3156_p12 = pnand %p3155_p11, %p3149_p8 }
 0x4cd   :  { %v3124_v41 = vpop.eup %3123 }
 0x4ce   :  { %2916 = vst.msk [vmem:[#allocation3] sm:$0x1] %vm2915_vm0, %v3124_v41 }
 0x4cf   :  { %3159 = shalt.err (!%p3156_p12)
}
 0x4d0   :  { %s3160_s25 = scalar_lea.hbm %s5230_s9, 16 }
 0x4d1   :  { %p3161_p13 = scmp.ne.s32.totalorder %s5230_s9, %s3160_s25  ;;  %p3164_p0 = scmp.lt.u32.totalorder %s3160_s25, %s5230_s9 }
 0x4d3   :  { %p3166_p1 = pnand %p3164_p0, %p3161_p13 }
 0x4d5   :  { %3169 = shalt.err (!%p3166_p1)
}
 0x4d6   :  { %2950 = dma.vmem_to_hbm [thread:$0]  %s2948_s24, 16, %s5230_s9, [#allocation4]  }
 0x4d7   :  { %3170 = dma.done.wait [#allocation4], 16  }
 0x4d8   :  { %3171 = vsyncadd [#allocation4], 4294967280 }
 0x4d9   :  { %3172 = dma.done.wait [#allocation6], 16  }
 0x4da   :  { %3173 = vsyncadd [#allocation6], 4294967280 }
 0x4db   :  { %2971 = vsyncpa [#allocation4], 1 }
 0x4dc   :  { %2972 = vsyncpa [#allocation6], 1 }

</bundles_post_ra>
